<compile_context>
chip_gen: v6e
topology: v6e:2x2x1
jax: 0.10.0
libtpu: 0.0.40
codegen_flags: <defaults>
</compile_context>

<pallas_src>
import functools

import jax
import jax.numpy as jnp
import numpy as np
from jax.experimental import pallas as pl
from jax.experimental.pallas import tpu as pltpu

BETA = 0.85
THRESH = 1.0
N_STEPS = 25
HIDDEN = 128
LANES = 128     # TPU vreg lane width
SUBLANES = 8    # TPU vreg sublane count (f32)


def _leaky(cur, mem):
    # snntorch Leaky (reset_mechanism="subtract", threshold=1.0):
    #   reset   = heaviside(mem_prev - thr) * thr   (from previous-step membrane)
    #   mem_new = beta * mem_prev + cur - reset
    #   spk     = heaviside(mem_new - thr)
    reset = jnp.where(mem > THRESH, THRESH, 0.0)
    mem_new = BETA * mem + cur - reset
    spk = (mem_new > THRESH).astype(jnp.float32)
    return spk, mem_new


def spiked_dqn_kernel(x_ref, w1t_ref, b1_ref, w2t_ref, b2_ref, w3t_ref, b3_ref,
                      spk_out_ref, mem_out_ref):
    B = x_ref.shape[0]
    hid = w1t_ref.shape[1]
    act_pad = w3t_ref.shape[1]

    # ---- Layer 1: loop-invariant current (one small matmul, bias added once).
    cur1 = jnp.dot(x_ref[...], w1t_ref[...],
                   preferred_element_type=jnp.float32) + b1_ref[...]

    # ---- Layer-1 membrane scan (strictly sequential in t; pure VPU work).
    mem1 = jnp.zeros((B, hid), jnp.float32)
    spk1_steps = []
    for _ in range(N_STEPS):
        spk1, mem1 = _leaky(cur1, mem1)
        spk1_steps.append(spk1)
    spk1_all = jnp.concatenate(spk1_steps, axis=0)            # (N_STEPS*B, hid)

    # ---- Layer 2: ONE batched MXU matmul over all 25 steps (+ bias once).
    cur2_all = jnp.dot(spk1_all, w2t_ref[...],
                       preferred_element_type=jnp.float32) + b2_ref[...]

    mem2 = jnp.zeros((B, hid), jnp.float32)
    spk2_steps = []
    for t in range(N_STEPS):
        spk2, mem2 = _leaky(cur2_all[t * B:(t + 1) * B, :], mem2)
        spk2_steps.append(spk2)
    spk2_all = jnp.concatenate(spk2_steps, axis=0)            # (N_STEPS*B, hid)

    # ---- Output layer: ONE batched MXU matmul over all 25 steps (+ bias once).
    cur3_all = jnp.dot(spk2_all, w3t_ref[...],
                       preferred_element_type=jnp.float32) + b3_ref[...]

    memo = jnp.zeros((B, act_pad), jnp.float32)
    spko_steps, memo_steps = [], []
    for t in range(N_STEPS):
        spko, memo = _leaky(cur3_all[t * B:(t + 1) * B, :], memo)
        spko_steps.append(spko)
        memo_steps.append(memo)

    # Two bulk, lane-dense stores; (N_STEPS*B, act_pad) -> (N_STEPS, B, act_pad)
    # is tile-aligned (B is a sublane multiple), so no data movement.
    spk_out_ref[...] = jnp.concatenate(spko_steps, axis=0).reshape(
        N_STEPS, B, act_pad)
    mem_out_ref[...] = jnp.concatenate(memo_steps, axis=0).reshape(
        N_STEPS, B, act_pad)


def prepare_spiked_dqn_params(w1, b1, w2, b2, w3, b3):
    """One-time (model-load) preprocessing: transpose weights to (in, out) and
    zero-pad the action dim to a full 128-lane tile."""
    action = w3.shape[0]
    act_pad = ((action + LANES - 1) // LANES) * LANES
    w1t = jnp.asarray(w1, jnp.float32).T                                # (obs, 128)
    w2t = jnp.asarray(w2, jnp.float32).T                                # (128, 128)
    w3t = jnp.pad(jnp.asarray(w3, jnp.float32).T,
                  ((0, 0), (0, act_pad - action)))                      # (128, act_pad)
    b1r = jnp.asarray(b1, jnp.float32).reshape(1, HIDDEN)
    b2r = jnp.asarray(b2, jnp.float32).reshape(1, HIDDEN)
    b3r = jnp.pad(jnp.asarray(b3, jnp.float32).reshape(1, action),
                  ((0, 0), (0, act_pad - action)))
    return (w1t, b1r, w2t, b2r, w3t, b3r), action


@functools.partial(jax.jit, static_argnames=("action",))
def spiked_dqn_forward(x, params, *, action):
    """x: [B, obs] f32; params from prepare_spiked_dqn_params.
    Returns (spk_rec, mem_rec), each [N_STEPS, B, action]."""
    w1t, b1r, w2t, b2r, w3t, b3r = params
    B, obs = x.shape
    act_pad = w3t.shape[1]

    # Pad batch to a sublane multiple so in-kernel row slices stay tile aligned.
    B_pad = ((B + SUBLANES - 1) // SUBLANES) * SUBLANES
    x_p = jnp.pad(x, ((0, B_pad - B), (0, 0))) if B_pad != B else x

    def full_block(shape):
        n = len(shape)
        return pl.BlockSpec(shape, lambda i, _n=n: (0,) * _n)

    out_struct = jax.ShapeDtypeStruct((N_STEPS, B_pad, act_pad), jnp.float32)
    out_spec = full_block((N_STEPS, B_pad, act_pad))

    spk_pad, mem_pad = pl.pallas_call(
        spiked_dqn_kernel,
        out_shape=(out_struct, out_struct),
        grid=(1,),  # single grid step: full recurrence lives inside the body
        in_specs=[
            full_block((B_pad, obs)),
            full_block((obs, HIDDEN)),
            full_block((1, HIDDEN)),
            full_block((HIDDEN, HIDDEN)),
            full_block((1, HIDDEN)),
            full_block((HIDDEN, act_pad)),
            full_block((1, act_pad)),
        ],
        out_specs=(out_spec, out_spec),
        compiler_params=pltpu.CompilerParams(
            dimension_semantics=("arbitrary",),
        ),
    )(x_p, w1t, b1r, w2t, b2r, w3t, b3r)

    # Strip batch/lane padding (padded lanes are identically zero).
    return spk_pad[:, :B, :action], mem_pad[:, :B, :action]


def _ref_forward(x, w1, b1, w2, b2, w3, b3):
    """Pure-JAX reference matching the PyTorch/snntorch forward."""
    B = x.shape[0]
    action = w3.shape[0]
    mem1 = jnp.zeros((B, HIDDEN), jnp.float32)
    mem2 = jnp.zeros((B, HIDDEN), jnp.float32)
    memo = jnp.zeros((B, action), jnp.float32)
    spk_rec, mem_rec = [], []
    for _ in range(N_STEPS):
        cur1 = x @ w1.T + b1
        spk1, mem1 = _leaky(cur1, mem1)
        cur2 = spk1 @ w2.T + b2
        spk2, mem2 = _leaky(cur2, mem2)
        cur3 = spk2 @ w3.T + b3
        spko, memo = _leaky(cur3, memo)
        spk_rec.append(spko)
        mem_rec.append(memo)
    return jnp.stack(spk_rec, 0), jnp.stack(mem_rec, 0)


def _init_linear(key, out_features, in_features):
    # PyTorch nn.Linear default init: U(-1/sqrt(fan_in), 1/sqrt(fan_in))
    kw, kb = jax.random.split(key)
    bound = 1.0 / np.sqrt(in_features)
    w = jax.random.uniform(kw, (out_features, in_features), jnp.float32, -bound, bound)
    b = jax.random.uniform(kb, (out_features,), jnp.float32, -bound, bound)
    return w, b


if __name__ == "__main__":
    OBS, ACTION, BATCH = 16, 4, 8

    key = jax.random.PRNGKey(0)
    k_x, k1, k2, k3 = jax.random.split(key, 4)

    x = jax.random.normal(k_x, (BATCH, OBS), jnp.float32) * 2.0
    w1, b1 = _init_linear(k1, HIDDEN, OBS)
    w2, b2 = _init_linear(k2, HIDDEN, HIDDEN)
    w3, b3 = _init_linear(k3, ACTION, HIDDEN)

    # One-time weight preparation (outside the per-call path).
    params, action = prepare_spiked_dqn_params(w1, b1, w2, b2, w3, b3)

    spk_rec, mem_rec = spiked_dqn_forward(x, params, action=action)
    jax.block_until_ready((spk_rec, mem_rec))

    spk_ref, mem_ref = _ref_forward(x, w1, b1, w2, b2, w3, b3)
    np.testing.assert_allclose(np.asarray(spk_rec), np.asarray(spk_ref), rtol=1e-5, atol=1e-5)
    np.testing.assert_allclose(np.asarray(mem_rec), np.asarray(mem_ref), rtol=1e-5, atol=1e-5)

    assert spk_rec.shape == (N_STEPS, BATCH, ACTION)
    assert mem_rec.shape == (N_STEPS, BATCH, ACTION)
    print("KERNEL_OK")
</pallas_src>

<mosaic_0001>
module attributes {stable_mosaic.version = 11 : i64} {
  func.func @spiked_dqn_kernel(%arg0: i32, %arg1: memref<8x16xf32, #tpu.memory_space<vmem>>, %arg2: memref<16x128xf32, #tpu.memory_space<vmem>>, %arg3: memref<1x128xf32, #tpu.memory_space<vmem>>, %arg4: memref<128x128xf32, #tpu.memory_space<vmem>>, %arg5: memref<1x128xf32, #tpu.memory_space<vmem>>, %arg6: memref<128x128xf32, #tpu.memory_space<vmem>>, %arg7: memref<1x128xf32, #tpu.memory_space<vmem>>, %arg8: memref<25x8x128xf32, #tpu.memory_space<vmem>>, %arg9: memref<25x8x128xf32, #tpu.memory_space<vmem>>) attributes {dimension_semantics = [#tpu.dimension_semantics<arbitrary>], iteration_bounds = array<i64: 1>, scalar_prefetch = 0 : i64, scratch_operands = 0 : i64, tpu.core_type = #tpu.core_type<tc>, window_params = [{pipeline_mode = #tpu.pipeline_mode<synchronous>, transform_indices = @transform_0, window_bounds = array<i64: 8, 16>}, {pipeline_mode = #tpu.pipeline_mode<synchronous>, transform_indices = @transform_1, window_bounds = array<i64: 16, 128>}, {pipeline_mode = #tpu.pipeline_mode<synchronous>, transform_indices = @transform_2, window_bounds = array<i64: 1, 128>}, {pipeline_mode = #tpu.pipeline_mode<synchronous>, transform_indices = @transform_3, window_bounds = array<i64: 128, 128>}, {pipeline_mode = #tpu.pipeline_mode<synchronous>, transform_indices = @transform_4, window_bounds = array<i64: 1, 128>}, {pipeline_mode = #tpu.pipeline_mode<synchronous>, transform_indices = @transform_5, window_bounds = array<i64: 128, 128>}, {pipeline_mode = #tpu.pipeline_mode<synchronous>, transform_indices = @transform_6, window_bounds = array<i64: 1, 128>}, {pipeline_mode = #tpu.pipeline_mode<synchronous>, transform_indices = @transform_7, window_bounds = array<i64: 25, 8, 128>}, {pipeline_mode = #tpu.pipeline_mode<synchronous>, transform_indices = @transform_8, window_bounds = array<i64: 25, 8, 128>}]} {
    %c0 = arith.constant 0 : index
    %c0_0 = arith.constant 0 : index
    %0 = vector.load %arg1[%c0, %c0_0] : memref<8x16xf32, #tpu.memory_space<vmem>>, vector<8x16xf32>
    %c0_1 = arith.constant 0 : index
    %c0_2 = arith.constant 0 : index
    %1 = vector.load %arg2[%c0_1, %c0_2] : memref<16x128xf32, #tpu.memory_space<vmem>>, vector<16x128xf32>
    %cst = arith.constant dense<0.000000e+00> : vector<8x128xf32>
    %2 = tpu.matmul %0, %1, %cst {dimension_numbers = #tpu.dot_dimension_numbers<[1], [0], [0], [1], [0, 0, 1, 1], [], []>} : vector<8x16xf32>, vector<16x128xf32>, vector<8x128xf32> -> vector<8x128xf32>
    %c0_3 = arith.constant 0 : index
    %c0_4 = arith.constant 0 : index
    %3 = vector.load %arg3[%c0_3, %c0_4] : memref<1x128xf32, #tpu.memory_space<vmem>>, vector<1x128xf32>
    %4 = vector.broadcast %3 : vector<1x128xf32> to vector<8x128xf32>
    %5 = arith.addf %2, %4 : vector<8x128xf32>
    %cst_5 = arith.constant 0.000000e+00 : f32
    %6 = vector.broadcast %cst_5 : f32 to vector<8x128xf32>
    %cst_6 = arith.constant 1.000000e+00 : f32
    %7 = vector.broadcast %cst_6 : f32 to vector<8x128xf32>
    %8 = arith.cmpf ogt, %6, %7 : vector<8x128xf32>
    %cst_7 = arith.constant 1.000000e+00 : f32
    %cst_8 = arith.constant 0.000000e+00 : f32
    %9 = vector.broadcast %cst_7 : f32 to vector<8x128xf32>
    %10 = vector.broadcast %cst_8 : f32 to vector<8x128xf32>
    %11 = arith.select %8, %9, %10 : vector<8x128xi1>, vector<8x128xf32>
    %cst_9 = arith.constant 8.500000e-01 : f32
    %12 = vector.broadcast %cst_9 : f32 to vector<8x128xf32>
    %13 = arith.mulf %12, %6 : vector<8x128xf32>
    %14 = arith.addf %13, %5 : vector<8x128xf32>
    %15 = arith.subf %14, %11 : vector<8x128xf32>
    %cst_10 = arith.constant 1.000000e+00 : f32
    %16 = vector.broadcast %cst_10 : f32 to vector<8x128xf32>
    %17 = arith.cmpf ogt, %15, %16 : vector<8x128xf32>
    %18 = arith.extui %17 : vector<8x128xi1> to vector<8x128xi32>
    %19 = arith.sitofp %18 : vector<8x128xi32> to vector<8x128xf32>
    %cst_11 = arith.constant 1.000000e+00 : f32
    %20 = vector.broadcast %cst_11 : f32 to vector<8x128xf32>
    %21 = arith.cmpf ogt, %15, %20 : vector<8x128xf32>
    %cst_12 = arith.constant 1.000000e+00 : f32
    %cst_13 = arith.constant 0.000000e+00 : f32
    %22 = vector.broadcast %cst_12 : f32 to vector<8x128xf32>
    %23 = vector.broadcast %cst_13 : f32 to vector<8x128xf32>
    %24 = arith.select %21, %22, %23 : vector<8x128xi1>, vector<8x128xf32>
    %cst_14 = arith.constant 8.500000e-01 : f32
    %25 = vector.broadcast %cst_14 : f32 to vector<8x128xf32>
    %26 = arith.mulf %25, %15 : vector<8x128xf32>
    %27 = arith.addf %26, %5 : vector<8x128xf32>
    %28 = arith.subf %27, %24 : vector<8x128xf32>
    %cst_15 = arith.constant 1.000000e+00 : f32
    %29 = vector.broadcast %cst_15 : f32 to vector<8x128xf32>
    %30 = arith.cmpf ogt, %28, %29 : vector<8x128xf32>
    %31 = arith.extui %30 : vector<8x128xi1> to vector<8x128xi32>
    %32 = arith.sitofp %31 : vector<8x128xi32> to vector<8x128xf32>
    %cst_16 = arith.constant 1.000000e+00 : f32
    %33 = vector.broadcast %cst_16 : f32 to vector<8x128xf32>
    %34 = arith.cmpf ogt, %28, %33 : vector<8x128xf32>
    %cst_17 = arith.constant 1.000000e+00 : f32
    %cst_18 = arith.constant 0.000000e+00 : f32
    %35 = vector.broadcast %cst_17 : f32 to vector<8x128xf32>
    %36 = vector.broadcast %cst_18 : f32 to vector<8x128xf32>
    %37 = arith.select %34, %35, %36 : vector<8x128xi1>, vector<8x128xf32>
    %cst_19 = arith.constant 8.500000e-01 : f32
    %38 = vector.broadcast %cst_19 : f32 to vector<8x128xf32>
    %39 = arith.mulf %38, %28 : vector<8x128xf32>
    %40 = arith.addf %39, %5 : vector<8x128xf32>
    %41 = arith.subf %40, %37 : vector<8x128xf32>
    %cst_20 = arith.constant 1.000000e+00 : f32
    %42 = vector.broadcast %cst_20 : f32 to vector<8x128xf32>
    %43 = arith.cmpf ogt, %41, %42 : vector<8x128xf32>
    %44 = arith.extui %43 : vector<8x128xi1> to vector<8x128xi32>
    %45 = arith.sitofp %44 : vector<8x128xi32> to vector<8x128xf32>
    %cst_21 = arith.constant 1.000000e+00 : f32
    %46 = vector.broadcast %cst_21 : f32 to vector<8x128xf32>
    %47 = arith.cmpf ogt, %41, %46 : vector<8x128xf32>
    %cst_22 = arith.constant 1.000000e+00 : f32
    %cst_23 = arith.constant 0.000000e+00 : f32
    %48 = vector.broadcast %cst_22 : f32 to vector<8x128xf32>
    %49 = vector.broadcast %cst_23 : f32 to vector<8x128xf32>
    %50 = arith.select %47, %48, %49 : vector<8x128xi1>, vector<8x128xf32>
    %cst_24 = arith.constant 8.500000e-01 : f32
    %51 = vector.broadcast %cst_24 : f32 to vector<8x128xf32>
    %52 = arith.mulf %51, %41 : vector<8x128xf32>
    %53 = arith.addf %52, %5 : vector<8x128xf32>
    %54 = arith.subf %53, %50 : vector<8x128xf32>
    %cst_25 = arith.constant 1.000000e+00 : f32
    %55 = vector.broadcast %cst_25 : f32 to vector<8x128xf32>
    %56 = arith.cmpf ogt, %54, %55 : vector<8x128xf32>
    %57 = arith.extui %56 : vector<8x128xi1> to vector<8x128xi32>
    %58 = arith.sitofp %57 : vector<8x128xi32> to vector<8x128xf32>
    %cst_26 = arith.constant 1.000000e+00 : f32
    %59 = vector.broadcast %cst_26 : f32 to vector<8x128xf32>
    %60 = arith.cmpf ogt, %54, %59 : vector<8x128xf32>
    %cst_27 = arith.constant 1.000000e+00 : f32
    %cst_28 = arith.constant 0.000000e+00 : f32
    %61 = vector.broadcast %cst_27 : f32 to vector<8x128xf32>
    %62 = vector.broadcast %cst_28 : f32 to vector<8x128xf32>
    %63 = arith.select %60, %61, %62 : vector<8x128xi1>, vector<8x128xf32>
    %cst_29 = arith.constant 8.500000e-01 : f32
    %64 = vector.broadcast %cst_29 : f32 to vector<8x128xf32>
    %65 = arith.mulf %64, %54 : vector<8x128xf32>
    %66 = arith.addf %65, %5 : vector<8x128xf32>
    %67 = arith.subf %66, %63 : vector<8x128xf32>
    %cst_30 = arith.constant 1.000000e+00 : f32
    %68 = vector.broadcast %cst_30 : f32 to vector<8x128xf32>
    %69 = arith.cmpf ogt, %67, %68 : vector<8x128xf32>
    %70 = arith.extui %69 : vector<8x128xi1> to vector<8x128xi32>
    %71 = arith.sitofp %70 : vector<8x128xi32> to vector<8x128xf32>
    %cst_31 = arith.constant 1.000000e+00 : f32
    %72 = vector.broadcast %cst_31 : f32 to vector<8x128xf32>
    %73 = arith.cmpf ogt, %67, %72 : vector<8x128xf32>
    %cst_32 = arith.constant 1.000000e+00 : f32
    %cst_33 = arith.constant 0.000000e+00 : f32
    %74 = vector.broadcast %cst_32 : f32 to vector<8x128xf32>
    %75 = vector.broadcast %cst_33 : f32 to vector<8x128xf32>
    %76 = arith.select %73, %74, %75 : vector<8x128xi1>, vector<8x128xf32>
    %cst_34 = arith.constant 8.500000e-01 : f32
    %77 = vector.broadcast %cst_34 : f32 to vector<8x128xf32>
    %78 = arith.mulf %77, %67 : vector<8x128xf32>
    %79 = arith.addf %78, %5 : vector<8x128xf32>
    %80 = arith.subf %79, %76 : vector<8x128xf32>
    %cst_35 = arith.constant 1.000000e+00 : f32
    %81 = vector.broadcast %cst_35 : f32 to vector<8x128xf32>
    %82 = arith.cmpf ogt, %80, %81 : vector<8x128xf32>
    %83 = arith.extui %82 : vector<8x128xi1> to vector<8x128xi32>
    %84 = arith.sitofp %83 : vector<8x128xi32> to vector<8x128xf32>
    %cst_36 = arith.constant 1.000000e+00 : f32
    %85 = vector.broadcast %cst_36 : f32 to vector<8x128xf32>
    %86 = arith.cmpf ogt, %80, %85 : vector<8x128xf32>
    %cst_37 = arith.constant 1.000000e+00 : f32
    %cst_38 = arith.constant 0.000000e+00 : f32
    %87 = vector.broadcast %cst_37 : f32 to vector<8x128xf32>
    %88 = vector.broadcast %cst_38 : f32 to vector<8x128xf32>
    %89 = arith.select %86, %87, %88 : vector<8x128xi1>, vector<8x128xf32>
    %cst_39 = arith.constant 8.500000e-01 : f32
    %90 = vector.broadcast %cst_39 : f32 to vector<8x128xf32>
    %91 = arith.mulf %90, %80 : vector<8x128xf32>
    %92 = arith.addf %91, %5 : vector<8x128xf32>
    %93 = arith.subf %92, %89 : vector<8x128xf32>
    %cst_40 = arith.constant 1.000000e+00 : f32
    %94 = vector.broadcast %cst_40 : f32 to vector<8x128xf32>
    %95 = arith.cmpf ogt, %93, %94 : vector<8x128xf32>
    %96 = arith.extui %95 : vector<8x128xi1> to vector<8x128xi32>
    %97 = arith.sitofp %96 : vector<8x128xi32> to vector<8x128xf32>
    %cst_41 = arith.constant 1.000000e+00 : f32
    %98 = vector.broadcast %cst_41 : f32 to vector<8x128xf32>
    %99 = arith.cmpf ogt, %93, %98 : vector<8x128xf32>
    %cst_42 = arith.constant 1.000000e+00 : f32
    %cst_43 = arith.constant 0.000000e+00 : f32
    %100 = vector.broadcast %cst_42 : f32 to vector<8x128xf32>
    %101 = vector.broadcast %cst_43 : f32 to vector<8x128xf32>
    %102 = arith.select %99, %100, %101 : vector<8x128xi1>, vector<8x128xf32>
    %cst_44 = arith.constant 8.500000e-01 : f32
    %103 = vector.broadcast %cst_44 : f32 to vector<8x128xf32>
    %104 = arith.mulf %103, %93 : vector<8x128xf32>
    %105 = arith.addf %104, %5 : vector<8x128xf32>
    %106 = arith.subf %105, %102 : vector<8x128xf32>
    %cst_45 = arith.constant 1.000000e+00 : f32
    %107 = vector.broadcast %cst_45 : f32 to vector<8x128xf32>
    %108 = arith.cmpf ogt, %106, %107 : vector<8x128xf32>
    %109 = arith.extui %108 : vector<8x128xi1> to vector<8x128xi32>
    %110 = arith.sitofp %109 : vector<8x128xi32> to vector<8x128xf32>
    %cst_46 = arith.constant 1.000000e+00 : f32
    %111 = vector.broadcast %cst_46 : f32 to vector<8x128xf32>
    %112 = arith.cmpf ogt, %106, %111 : vector<8x128xf32>
    %cst_47 = arith.constant 1.000000e+00 : f32
    %cst_48 = arith.constant 0.000000e+00 : f32
    %113 = vector.broadcast %cst_47 : f32 to vector<8x128xf32>
    %114 = vector.broadcast %cst_48 : f32 to vector<8x128xf32>
    %115 = arith.select %112, %113, %114 : vector<8x128xi1>, vector<8x128xf32>
    %cst_49 = arith.constant 8.500000e-01 : f32
    %116 = vector.broadcast %cst_49 : f32 to vector<8x128xf32>
    %117 = arith.mulf %116, %106 : vector<8x128xf32>
    %118 = arith.addf %117, %5 : vector<8x128xf32>
    %119 = arith.subf %118, %115 : vector<8x128xf32>
    %cst_50 = arith.constant 1.000000e+00 : f32
    %120 = vector.broadcast %cst_50 : f32 to vector<8x128xf32>
    %121 = arith.cmpf ogt, %119, %120 : vector<8x128xf32>
    %122 = arith.extui %121 : vector<8x128xi1> to vector<8x128xi32>
    %123 = arith.sitofp %122 : vector<8x128xi32> to vector<8x128xf32>
    %cst_51 = arith.constant 1.000000e+00 : f32
    %124 = vector.broadcast %cst_51 : f32 to vector<8x128xf32>
    %125 = arith.cmpf ogt, %119, %124 : vector<8x128xf32>
    %cst_52 = arith.constant 1.000000e+00 : f32
    %cst_53 = arith.constant 0.000000e+00 : f32
    %126 = vector.broadcast %cst_52 : f32 to vector<8x128xf32>
    %127 = vector.broadcast %cst_53 : f32 to vector<8x128xf32>
    %128 = arith.select %125, %126, %127 : vector<8x128xi1>, vector<8x128xf32>
    %cst_54 = arith.constant 8.500000e-01 : f32
    %129 = vector.broadcast %cst_54 : f32 to vector<8x128xf32>
    %130 = arith.mulf %129, %119 : vector<8x128xf32>
    %131 = arith.addf %130, %5 : vector<8x128xf32>
    %132 = arith.subf %131, %128 : vector<8x128xf32>
    %cst_55 = arith.constant 1.000000e+00 : f32
    %133 = vector.broadcast %cst_55 : f32 to vector<8x128xf32>
    %134 = arith.cmpf ogt, %132, %133 : vector<8x128xf32>
    %135 = arith.extui %134 : vector<8x128xi1> to vector<8x128xi32>
    %136 = arith.sitofp %135 : vector<8x128xi32> to vector<8x128xf32>
    %cst_56 = arith.constant 1.000000e+00 : f32
    %137 = vector.broadcast %cst_56 : f32 to vector<8x128xf32>
    %138 = arith.cmpf ogt, %132, %137 : vector<8x128xf32>
    %cst_57 = arith.constant 1.000000e+00 : f32
    %cst_58 = arith.constant 0.000000e+00 : f32
    %139 = vector.broadcast %cst_57 : f32 to vector<8x128xf32>
    %140 = vector.broadcast %cst_58 : f32 to vector<8x128xf32>
    %141 = arith.select %138, %139, %140 : vector<8x128xi1>, vector<8x128xf32>
    %cst_59 = arith.constant 8.500000e-01 : f32
    %142 = vector.broadcast %cst_59 : f32 to vector<8x128xf32>
    %143 = arith.mulf %142, %132 : vector<8x128xf32>
    %144 = arith.addf %143, %5 : vector<8x128xf32>
    %145 = arith.subf %144, %141 : vector<8x128xf32>
    %cst_60 = arith.constant 1.000000e+00 : f32
    %146 = vector.broadcast %cst_60 : f32 to vector<8x128xf32>
    %147 = arith.cmpf ogt, %145, %146 : vector<8x128xf32>
    %148 = arith.extui %147 : vector<8x128xi1> to vector<8x128xi32>
    %149 = arith.sitofp %148 : vector<8x128xi32> to vector<8x128xf32>
    %cst_61 = arith.constant 1.000000e+00 : f32
    %150 = vector.broadcast %cst_61 : f32 to vector<8x128xf32>
    %151 = arith.cmpf ogt, %145, %150 : vector<8x128xf32>
    %cst_62 = arith.constant 1.000000e+00 : f32
    %cst_63 = arith.constant 0.000000e+00 : f32
    %152 = vector.broadcast %cst_62 : f32 to vector<8x128xf32>
    %153 = vector.broadcast %cst_63 : f32 to vector<8x128xf32>
    %154 = arith.select %151, %152, %153 : vector<8x128xi1>, vector<8x128xf32>
    %cst_64 = arith.constant 8.500000e-01 : f32
    %155 = vector.broadcast %cst_64 : f32 to vector<8x128xf32>
    %156 = arith.mulf %155, %145 : vector<8x128xf32>
    %157 = arith.addf %156, %5 : vector<8x128xf32>
    %158 = arith.subf %157, %154 : vector<8x128xf32>
    %cst_65 = arith.constant 1.000000e+00 : f32
    %159 = vector.broadcast %cst_65 : f32 to vector<8x128xf32>
    %160 = arith.cmpf ogt, %158, %159 : vector<8x128xf32>
    %161 = arith.extui %160 : vector<8x128xi1> to vector<8x128xi32>
    %162 = arith.sitofp %161 : vector<8x128xi32> to vector<8x128xf32>
    %cst_66 = arith.constant 1.000000e+00 : f32
    %163 = vector.broadcast %cst_66 : f32 to vector<8x128xf32>
    %164 = arith.cmpf ogt, %158, %163 : vector<8x128xf32>
    %cst_67 = arith.constant 1.000000e+00 : f32
    %cst_68 = arith.constant 0.000000e+00 : f32
    %165 = vector.broadcast %cst_67 : f32 to vector<8x128xf32>
    %166 = vector.broadcast %cst_68 : f32 to vector<8x128xf32>
    %167 = arith.select %164, %165, %166 : vector<8x128xi1>, vector<8x128xf32>
    %cst_69 = arith.constant 8.500000e-01 : f32
    %168 = vector.broadcast %cst_69 : f32 to vector<8x128xf32>
    %169 = arith.mulf %168, %158 : vector<8x128xf32>
    %170 = arith.addf %169, %5 : vector<8x128xf32>
    %171 = arith.subf %170, %167 : vector<8x128xf32>
    %cst_70 = arith.constant 1.000000e+00 : f32
    %172 = vector.broadcast %cst_70 : f32 to vector<8x128xf32>
    %173 = arith.cmpf ogt, %171, %172 : vector<8x128xf32>
    %174 = arith.extui %173 : vector<8x128xi1> to vector<8x128xi32>
    %175 = arith.sitofp %174 : vector<8x128xi32> to vector<8x128xf32>
    %cst_71 = arith.constant 1.000000e+00 : f32
    %176 = vector.broadcast %cst_71 : f32 to vector<8x128xf32>
    %177 = arith.cmpf ogt, %171, %176 : vector<8x128xf32>
    %cst_72 = arith.constant 1.000000e+00 : f32
    %cst_73 = arith.constant 0.000000e+00 : f32
    %178 = vector.broadcast %cst_72 : f32 to vector<8x128xf32>
    %179 = vector.broadcast %cst_73 : f32 to vector<8x128xf32>
    %180 = arith.select %177, %178, %179 : vector<8x128xi1>, vector<8x128xf32>
    %cst_74 = arith.constant 8.500000e-01 : f32
    %181 = vector.broadcast %cst_74 : f32 to vector<8x128xf32>
    %182 = arith.mulf %181, %171 : vector<8x128xf32>
    %183 = arith.addf %182, %5 : vector<8x128xf32>
    %184 = arith.subf %183, %180 : vector<8x128xf32>
    %cst_75 = arith.constant 1.000000e+00 : f32
    %185 = vector.broadcast %cst_75 : f32 to vector<8x128xf32>
    %186 = arith.cmpf ogt, %184, %185 : vector<8x128xf32>
    %187 = arith.extui %186 : vector<8x128xi1> to vector<8x128xi32>
    %188 = arith.sitofp %187 : vector<8x128xi32> to vector<8x128xf32>
    %cst_76 = arith.constant 1.000000e+00 : f32
    %189 = vector.broadcast %cst_76 : f32 to vector<8x128xf32>
    %190 = arith.cmpf ogt, %184, %189 : vector<8x128xf32>
    %cst_77 = arith.constant 1.000000e+00 : f32
    %cst_78 = arith.constant 0.000000e+00 : f32
    %191 = vector.broadcast %cst_77 : f32 to vector<8x128xf32>
    %192 = vector.broadcast %cst_78 : f32 to vector<8x128xf32>
    %193 = arith.select %190, %191, %192 : vector<8x128xi1>, vector<8x128xf32>
    %cst_79 = arith.constant 8.500000e-01 : f32
    %194 = vector.broadcast %cst_79 : f32 to vector<8x128xf32>
    %195 = arith.mulf %194, %184 : vector<8x128xf32>
    %196 = arith.addf %195, %5 : vector<8x128xf32>
    %197 = arith.subf %196, %193 : vector<8x128xf32>
    %cst_80 = arith.constant 1.000000e+00 : f32
    %198 = vector.broadcast %cst_80 : f32 to vector<8x128xf32>
    %199 = arith.cmpf ogt, %197, %198 : vector<8x128xf32>
    %200 = arith.extui %199 : vector<8x128xi1> to vector<8x128xi32>
    %201 = arith.sitofp %200 : vector<8x128xi32> to vector<8x128xf32>
    %cst_81 = arith.constant 1.000000e+00 : f32
    %202 = vector.broadcast %cst_81 : f32 to vector<8x128xf32>
    %203 = arith.cmpf ogt, %197, %202 : vector<8x128xf32>
    %cst_82 = arith.constant 1.000000e+00 : f32
    %cst_83 = arith.constant 0.000000e+00 : f32
    %204 = vector.broadcast %cst_82 : f32 to vector<8x128xf32>
    %205 = vector.broadcast %cst_83 : f32 to vector<8x128xf32>
    %206 = arith.select %203, %204, %205 : vector<8x128xi1>, vector<8x128xf32>
    %cst_84 = arith.constant 8.500000e-01 : f32
    %207 = vector.broadcast %cst_84 : f32 to vector<8x128xf32>
    %208 = arith.mulf %207, %197 : vector<8x128xf32>
    %209 = arith.addf %208, %5 : vector<8x128xf32>
    %210 = arith.subf %209, %206 : vector<8x128xf32>
    %cst_85 = arith.constant 1.000000e+00 : f32
    %211 = vector.broadcast %cst_85 : f32 to vector<8x128xf32>
    %212 = arith.cmpf ogt, %210, %211 : vector<8x128xf32>
    %213 = arith.extui %212 : vector<8x128xi1> to vector<8x128xi32>
    %214 = arith.sitofp %213 : vector<8x128xi32> to vector<8x128xf32>
    %cst_86 = arith.constant 1.000000e+00 : f32
    %215 = vector.broadcast %cst_86 : f32 to vector<8x128xf32>
    %216 = arith.cmpf ogt, %210, %215 : vector<8x128xf32>
    %cst_87 = arith.constant 1.000000e+00 : f32
    %cst_88 = arith.constant 0.000000e+00 : f32
    %217 = vector.broadcast %cst_87 : f32 to vector<8x128xf32>
    %218 = vector.broadcast %cst_88 : f32 to vector<8x128xf32>
    %219 = arith.select %216, %217, %218 : vector<8x128xi1>, vector<8x128xf32>
    %cst_89 = arith.constant 8.500000e-01 : f32
    %220 = vector.broadcast %cst_89 : f32 to vector<8x128xf32>
    %221 = arith.mulf %220, %210 : vector<8x128xf32>
    %222 = arith.addf %221, %5 : vector<8x128xf32>
    %223 = arith.subf %222, %219 : vector<8x128xf32>
    %cst_90 = arith.constant 1.000000e+00 : f32
    %224 = vector.broadcast %cst_90 : f32 to vector<8x128xf32>
    %225 = arith.cmpf ogt, %223, %224 : vector<8x128xf32>
    %226 = arith.extui %225 : vector<8x128xi1> to vector<8x128xi32>
    %227 = arith.sitofp %226 : vector<8x128xi32> to vector<8x128xf32>
    %cst_91 = arith.constant 1.000000e+00 : f32
    %228 = vector.broadcast %cst_91 : f32 to vector<8x128xf32>
    %229 = arith.cmpf ogt, %223, %228 : vector<8x128xf32>
    %cst_92 = arith.constant 1.000000e+00 : f32
    %cst_93 = arith.constant 0.000000e+00 : f32
    %230 = vector.broadcast %cst_92 : f32 to vector<8x128xf32>
    %231 = vector.broadcast %cst_93 : f32 to vector<8x128xf32>
    %232 = arith.select %229, %230, %231 : vector<8x128xi1>, vector<8x128xf32>
    %cst_94 = arith.constant 8.500000e-01 : f32
    %233 = vector.broadcast %cst_94 : f32 to vector<8x128xf32>
    %234 = arith.mulf %233, %223 : vector<8x128xf32>
    %235 = arith.addf %234, %5 : vector<8x128xf32>
    %236 = arith.subf %235, %232 : vector<8x128xf32>
    %cst_95 = arith.constant 1.000000e+00 : f32
    %237 = vector.broadcast %cst_95 : f32 to vector<8x128xf32>
    %238 = arith.cmpf ogt, %236, %237 : vector<8x128xf32>
    %239 = arith.extui %238 : vector<8x128xi1> to vector<8x128xi32>
    %240 = arith.sitofp %239 : vector<8x128xi32> to vector<8x128xf32>
    %cst_96 = arith.constant 1.000000e+00 : f32
    %241 = vector.broadcast %cst_96 : f32 to vector<8x128xf32>
    %242 = arith.cmpf ogt, %236, %241 : vector<8x128xf32>
    %cst_97 = arith.constant 1.000000e+00 : f32
    %cst_98 = arith.constant 0.000000e+00 : f32
    %243 = vector.broadcast %cst_97 : f32 to vector<8x128xf32>
    %244 = vector.broadcast %cst_98 : f32 to vector<8x128xf32>
    %245 = arith.select %242, %243, %244 : vector<8x128xi1>, vector<8x128xf32>
    %cst_99 = arith.constant 8.500000e-01 : f32
    %246 = vector.broadcast %cst_99 : f32 to vector<8x128xf32>
    %247 = arith.mulf %246, %236 : vector<8x128xf32>
    %248 = arith.addf %247, %5 : vector<8x128xf32>
    %249 = arith.subf %248, %245 : vector<8x128xf32>
    %cst_100 = arith.constant 1.000000e+00 : f32
    %250 = vector.broadcast %cst_100 : f32 to vector<8x128xf32>
    %251 = arith.cmpf ogt, %249, %250 : vector<8x128xf32>
    %252 = arith.extui %251 : vector<8x128xi1> to vector<8x128xi32>
    %253 = arith.sitofp %252 : vector<8x128xi32> to vector<8x128xf32>
    %cst_101 = arith.constant 1.000000e+00 : f32
    %254 = vector.broadcast %cst_101 : f32 to vector<8x128xf32>
    %255 = arith.cmpf ogt, %249, %254 : vector<8x128xf32>
    %cst_102 = arith.constant 1.000000e+00 : f32
    %cst_103 = arith.constant 0.000000e+00 : f32
    %256 = vector.broadcast %cst_102 : f32 to vector<8x128xf32>
    %257 = vector.broadcast %cst_103 : f32 to vector<8x128xf32>
    %258 = arith.select %255, %256, %257 : vector<8x128xi1>, vector<8x128xf32>
    %cst_104 = arith.constant 8.500000e-01 : f32
    %259 = vector.broadcast %cst_104 : f32 to vector<8x128xf32>
    %260 = arith.mulf %259, %249 : vector<8x128xf32>
    %261 = arith.addf %260, %5 : vector<8x128xf32>
    %262 = arith.subf %261, %258 : vector<8x128xf32>
    %cst_105 = arith.constant 1.000000e+00 : f32
    %263 = vector.broadcast %cst_105 : f32 to vector<8x128xf32>
    %264 = arith.cmpf ogt, %262, %263 : vector<8x128xf32>
    %265 = arith.extui %264 : vector<8x128xi1> to vector<8x128xi32>
    %266 = arith.sitofp %265 : vector<8x128xi32> to vector<8x128xf32>
    %cst_106 = arith.constant 1.000000e+00 : f32
    %267 = vector.broadcast %cst_106 : f32 to vector<8x128xf32>
    %268 = arith.cmpf ogt, %262, %267 : vector<8x128xf32>
    %cst_107 = arith.constant 1.000000e+00 : f32
    %cst_108 = arith.constant 0.000000e+00 : f32
    %269 = vector.broadcast %cst_107 : f32 to vector<8x128xf32>
    %270 = vector.broadcast %cst_108 : f32 to vector<8x128xf32>
    %271 = arith.select %268, %269, %270 : vector<8x128xi1>, vector<8x128xf32>
    %cst_109 = arith.constant 8.500000e-01 : f32
    %272 = vector.broadcast %cst_109 : f32 to vector<8x128xf32>
    %273 = arith.mulf %272, %262 : vector<8x128xf32>
    %274 = arith.addf %273, %5 : vector<8x128xf32>
    %275 = arith.subf %274, %271 : vector<8x128xf32>
    %cst_110 = arith.constant 1.000000e+00 : f32
    %276 = vector.broadcast %cst_110 : f32 to vector<8x128xf32>
    %277 = arith.cmpf ogt, %275, %276 : vector<8x128xf32>
    %278 = arith.extui %277 : vector<8x128xi1> to vector<8x128xi32>
    %279 = arith.sitofp %278 : vector<8x128xi32> to vector<8x128xf32>
    %cst_111 = arith.constant 1.000000e+00 : f32
    %280 = vector.broadcast %cst_111 : f32 to vector<8x128xf32>
    %281 = arith.cmpf ogt, %275, %280 : vector<8x128xf32>
    %cst_112 = arith.constant 1.000000e+00 : f32
    %cst_113 = arith.constant 0.000000e+00 : f32
    %282 = vector.broadcast %cst_112 : f32 to vector<8x128xf32>
    %283 = vector.broadcast %cst_113 : f32 to vector<8x128xf32>
    %284 = arith.select %281, %282, %283 : vector<8x128xi1>, vector<8x128xf32>
    %cst_114 = arith.constant 8.500000e-01 : f32
    %285 = vector.broadcast %cst_114 : f32 to vector<8x128xf32>
    %286 = arith.mulf %285, %275 : vector<8x128xf32>
    %287 = arith.addf %286, %5 : vector<8x128xf32>
    %288 = arith.subf %287, %284 : vector<8x128xf32>
    %cst_115 = arith.constant 1.000000e+00 : f32
    %289 = vector.broadcast %cst_115 : f32 to vector<8x128xf32>
    %290 = arith.cmpf ogt, %288, %289 : vector<8x128xf32>
    %291 = arith.extui %290 : vector<8x128xi1> to vector<8x128xi32>
    %292 = arith.sitofp %291 : vector<8x128xi32> to vector<8x128xf32>
    %cst_116 = arith.constant 1.000000e+00 : f32
    %293 = vector.broadcast %cst_116 : f32 to vector<8x128xf32>
    %294 = arith.cmpf ogt, %288, %293 : vector<8x128xf32>
    %cst_117 = arith.constant 1.000000e+00 : f32
    %cst_118 = arith.constant 0.000000e+00 : f32
    %295 = vector.broadcast %cst_117 : f32 to vector<8x128xf32>
    %296 = vector.broadcast %cst_118 : f32 to vector<8x128xf32>
    %297 = arith.select %294, %295, %296 : vector<8x128xi1>, vector<8x128xf32>
    %cst_119 = arith.constant 8.500000e-01 : f32
    %298 = vector.broadcast %cst_119 : f32 to vector<8x128xf32>
    %299 = arith.mulf %298, %288 : vector<8x128xf32>
    %300 = arith.addf %299, %5 : vector<8x128xf32>
    %301 = arith.subf %300, %297 : vector<8x128xf32>
    %cst_120 = arith.constant 1.000000e+00 : f32
    %302 = vector.broadcast %cst_120 : f32 to vector<8x128xf32>
    %303 = arith.cmpf ogt, %301, %302 : vector<8x128xf32>
    %304 = arith.extui %303 : vector<8x128xi1> to vector<8x128xi32>
    %305 = arith.sitofp %304 : vector<8x128xi32> to vector<8x128xf32>
    %cst_121 = arith.constant 1.000000e+00 : f32
    %306 = vector.broadcast %cst_121 : f32 to vector<8x128xf32>
    %307 = arith.cmpf ogt, %301, %306 : vector<8x128xf32>
    %cst_122 = arith.constant 1.000000e+00 : f32
    %cst_123 = arith.constant 0.000000e+00 : f32
    %308 = vector.broadcast %cst_122 : f32 to vector<8x128xf32>
    %309 = vector.broadcast %cst_123 : f32 to vector<8x128xf32>
    %310 = arith.select %307, %308, %309 : vector<8x128xi1>, vector<8x128xf32>
    %cst_124 = arith.constant 8.500000e-01 : f32
    %311 = vector.broadcast %cst_124 : f32 to vector<8x128xf32>
    %312 = arith.mulf %311, %301 : vector<8x128xf32>
    %313 = arith.addf %312, %5 : vector<8x128xf32>
    %314 = arith.subf %313, %310 : vector<8x128xf32>
    %cst_125 = arith.constant 1.000000e+00 : f32
    %315 = vector.broadcast %cst_125 : f32 to vector<8x128xf32>
    %316 = arith.cmpf ogt, %314, %315 : vector<8x128xf32>
    %317 = arith.extui %316 : vector<8x128xi1> to vector<8x128xi32>
    %318 = arith.sitofp %317 : vector<8x128xi32> to vector<8x128xf32>
    %cst_126 = arith.constant 1.000000e+00 : f32
    %319 = vector.broadcast %cst_126 : f32 to vector<8x128xf32>
    %320 = arith.cmpf ogt, %314, %319 : vector<8x128xf32>
    %cst_127 = arith.constant 1.000000e+00 : f32
    %cst_128 = arith.constant 0.000000e+00 : f32
    %321 = vector.broadcast %cst_127 : f32 to vector<8x128xf32>
    %322 = vector.broadcast %cst_128 : f32 to vector<8x128xf32>
    %323 = arith.select %320, %321, %322 : vector<8x128xi1>, vector<8x128xf32>
    %cst_129 = arith.constant 8.500000e-01 : f32
    %324 = vector.broadcast %cst_129 : f32 to vector<8x128xf32>
    %325 = arith.mulf %324, %314 : vector<8x128xf32>
    %326 = arith.addf %325, %5 : vector<8x128xf32>
    %327 = arith.subf %326, %323 : vector<8x128xf32>
    %cst_130 = arith.constant 1.000000e+00 : f32
    %328 = vector.broadcast %cst_130 : f32 to vector<8x128xf32>
    %329 = arith.cmpf ogt, %327, %328 : vector<8x128xf32>
    %330 = arith.extui %329 : vector<8x128xi1> to vector<8x128xi32>
    %331 = arith.sitofp %330 : vector<8x128xi32> to vector<8x128xf32>
    %332 = tpu.concatenate %19, %32, %45, %58, %71, %84, %97, %110, %123, %136, %149, %162, %175, %188, %201, %214 in 0 : vector<8x128xf32>, vector<8x128xf32>, vector<8x128xf32>, vector<8x128xf32>, vector<8x128xf32>, vector<8x128xf32>, vector<8x128xf32>, vector<8x128xf32>, vector<8x128xf32>, vector<8x128xf32>, vector<8x128xf32>, vector<8x128xf32>, vector<8x128xf32>, vector<8x128xf32>, vector<8x128xf32>, vector<8x128xf32> -> vector<128x128xf32>
    %333 = tpu.concatenate %227, %240, %253, %266, %279, %292, %305, %318, %331 in 0 : vector<8x128xf32>, vector<8x128xf32>, vector<8x128xf32>, vector<8x128xf32>, vector<8x128xf32>, vector<8x128xf32>, vector<8x128xf32>, vector<8x128xf32>, vector<8x128xf32> -> vector<72x128xf32>
    %334 = tpu.concatenate %332, %333 in 0 : vector<128x128xf32>, vector<72x128xf32> -> vector<200x128xf32>
    %c0_131 = arith.constant 0 : index
    %c0_132 = arith.constant 0 : index
    %335 = vector.load %arg4[%c0_131, %c0_132] : memref<128x128xf32, #tpu.memory_space<vmem>>, vector<128x128xf32>
    %cst_133 = arith.constant dense<0.000000e+00> : vector<200x128xf32>
    %336 = tpu.matmul %334, %335, %cst_133 {dimension_numbers = #tpu.dot_dimension_numbers<[1], [0], [0], [1], [0, 0, 1, 1], [], []>} : vector<200x128xf32>, vector<128x128xf32>, vector<200x128xf32> -> vector<200x128xf32>
    %c0_134 = arith.constant 0 : index
    %c0_135 = arith.constant 0 : index
    %337 = vector.load %arg5[%c0_134, %c0_135] : memref<1x128xf32, #tpu.memory_space<vmem>>, vector<1x128xf32>
    %338 = vector.broadcast %337 : vector<1x128xf32> to vector<200x128xf32>
    %339 = arith.addf %336, %338 : vector<200x128xf32>
    %cst_136 = arith.constant 0.000000e+00 : f32
    %340 = vector.broadcast %cst_136 : f32 to vector<8x128xf32>
    %341 = vector.extract_strided_slice %339 {offsets = [0, 0], sizes = [8, 128], strides = [1, 1]} : vector<200x128xf32> to vector<8x128xf32>
    %cst_137 = arith.constant 1.000000e+00 : f32
    %342 = vector.broadcast %cst_137 : f32 to vector<8x128xf32>
    %343 = arith.cmpf ogt, %340, %342 : vector<8x128xf32>
    %cst_138 = arith.constant 1.000000e+00 : f32
    %cst_139 = arith.constant 0.000000e+00 : f32
    %344 = vector.broadcast %cst_138 : f32 to vector<8x128xf32>
    %345 = vector.broadcast %cst_139 : f32 to vector<8x128xf32>
    %346 = arith.select %343, %344, %345 : vector<8x128xi1>, vector<8x128xf32>
    %cst_140 = arith.constant 8.500000e-01 : f32
    %347 = vector.broadcast %cst_140 : f32 to vector<8x128xf32>
    %348 = arith.mulf %347, %340 : vector<8x128xf32>
    %349 = arith.addf %348, %341 : vector<8x128xf32>
    %350 = arith.subf %349, %346 : vector<8x128xf32>
    %cst_141 = arith.constant 1.000000e+00 : f32
    %351 = vector.broadcast %cst_141 : f32 to vector<8x128xf32>
    %352 = arith.cmpf ogt, %350, %351 : vector<8x128xf32>
    %353 = arith.extui %352 : vector<8x128xi1> to vector<8x128xi32>
    %354 = arith.sitofp %353 : vector<8x128xi32> to vector<8x128xf32>
    %355 = vector.extract_strided_slice %339 {offsets = [8, 0], sizes = [8, 128], strides = [1, 1]} : vector<200x128xf32> to vector<8x128xf32>
    %cst_142 = arith.constant 1.000000e+00 : f32
    %356 = vector.broadcast %cst_142 : f32 to vector<8x128xf32>
    %357 = arith.cmpf ogt, %350, %356 : vector<8x128xf32>
    %cst_143 = arith.constant 1.000000e+00 : f32
    %cst_144 = arith.constant 0.000000e+00 : f32
    %358 = vector.broadcast %cst_143 : f32 to vector<8x128xf32>
    %359 = vector.broadcast %cst_144 : f32 to vector<8x128xf32>
    %360 = arith.select %357, %358, %359 : vector<8x128xi1>, vector<8x128xf32>
    %cst_145 = arith.constant 8.500000e-01 : f32
    %361 = vector.broadcast %cst_145 : f32 to vector<8x128xf32>
    %362 = arith.mulf %361, %350 : vector<8x128xf32>
    %363 = arith.addf %362, %355 : vector<8x128xf32>
    %364 = arith.subf %363, %360 : vector<8x128xf32>
    %cst_146 = arith.constant 1.000000e+00 : f32
    %365 = vector.broadcast %cst_146 : f32 to vector<8x128xf32>
    %366 = arith.cmpf ogt, %364, %365 : vector<8x128xf32>
    %367 = arith.extui %366 : vector<8x128xi1> to vector<8x128xi32>
    %368 = arith.sitofp %367 : vector<8x128xi32> to vector<8x128xf32>
    %369 = vector.extract_strided_slice %339 {offsets = [16, 0], sizes = [8, 128], strides = [1, 1]} : vector<200x128xf32> to vector<8x128xf32>
    %cst_147 = arith.constant 1.000000e+00 : f32
    %370 = vector.broadcast %cst_147 : f32 to vector<8x128xf32>
    %371 = arith.cmpf ogt, %364, %370 : vector<8x128xf32>
    %cst_148 = arith.constant 1.000000e+00 : f32
    %cst_149 = arith.constant 0.000000e+00 : f32
    %372 = vector.broadcast %cst_148 : f32 to vector<8x128xf32>
    %373 = vector.broadcast %cst_149 : f32 to vector<8x128xf32>
    %374 = arith.select %371, %372, %373 : vector<8x128xi1>, vector<8x128xf32>
    %cst_150 = arith.constant 8.500000e-01 : f32
    %375 = vector.broadcast %cst_150 : f32 to vector<8x128xf32>
    %376 = arith.mulf %375, %364 : vector<8x128xf32>
    %377 = arith.addf %376, %369 : vector<8x128xf32>
    %378 = arith.subf %377, %374 : vector<8x128xf32>
    %cst_151 = arith.constant 1.000000e+00 : f32
    %379 = vector.broadcast %cst_151 : f32 to vector<8x128xf32>
    %380 = arith.cmpf ogt, %378, %379 : vector<8x128xf32>
    %381 = arith.extui %380 : vector<8x128xi1> to vector<8x128xi32>
    %382 = arith.sitofp %381 : vector<8x128xi32> to vector<8x128xf32>
    %383 = vector.extract_strided_slice %339 {offsets = [24, 0], sizes = [8, 128], strides = [1, 1]} : vector<200x128xf32> to vector<8x128xf32>
    %cst_152 = arith.constant 1.000000e+00 : f32
    %384 = vector.broadcast %cst_152 : f32 to vector<8x128xf32>
    %385 = arith.cmpf ogt, %378, %384 : vector<8x128xf32>
    %cst_153 = arith.constant 1.000000e+00 : f32
    %cst_154 = arith.constant 0.000000e+00 : f32
    %386 = vector.broadcast %cst_153 : f32 to vector<8x128xf32>
    %387 = vector.broadcast %cst_154 : f32 to vector<8x128xf32>
    %388 = arith.select %385, %386, %387 : vector<8x128xi1>, vector<8x128xf32>
    %cst_155 = arith.constant 8.500000e-01 : f32
    %389 = vector.broadcast %cst_155 : f32 to vector<8x128xf32>
    %390 = arith.mulf %389, %378 : vector<8x128xf32>
    %391 = arith.addf %390, %383 : vector<8x128xf32>
    %392 = arith.subf %391, %388 : vector<8x128xf32>
    %cst_156 = arith.constant 1.000000e+00 : f32
    %393 = vector.broadcast %cst_156 : f32 to vector<8x128xf32>
    %394 = arith.cmpf ogt, %392, %393 : vector<8x128xf32>
    %395 = arith.extui %394 : vector<8x128xi1> to vector<8x128xi32>
    %396 = arith.sitofp %395 : vector<8x128xi32> to vector<8x128xf32>
    %397 = vector.extract_strided_slice %339 {offsets = [32, 0], sizes = [8, 128], strides = [1, 1]} : vector<200x128xf32> to vector<8x128xf32>
    %cst_157 = arith.constant 1.000000e+00 : f32
    %398 = vector.broadcast %cst_157 : f32 to vector<8x128xf32>
    %399 = arith.cmpf ogt, %392, %398 : vector<8x128xf32>
    %cst_158 = arith.constant 1.000000e+00 : f32
    %cst_159 = arith.constant 0.000000e+00 : f32
    %400 = vector.broadcast %cst_158 : f32 to vector<8x128xf32>
    %401 = vector.broadcast %cst_159 : f32 to vector<8x128xf32>
    %402 = arith.select %399, %400, %401 : vector<8x128xi1>, vector<8x128xf32>
    %cst_160 = arith.constant 8.500000e-01 : f32
    %403 = vector.broadcast %cst_160 : f32 to vector<8x128xf32>
    %404 = arith.mulf %403, %392 : vector<8x128xf32>
    %405 = arith.addf %404, %397 : vector<8x128xf32>
    %406 = arith.subf %405, %402 : vector<8x128xf32>
    %cst_161 = arith.constant 1.000000e+00 : f32
    %407 = vector.broadcast %cst_161 : f32 to vector<8x128xf32>
    %408 = arith.cmpf ogt, %406, %407 : vector<8x128xf32>
    %409 = arith.extui %408 : vector<8x128xi1> to vector<8x128xi32>
    %410 = arith.sitofp %409 : vector<8x128xi32> to vector<8x128xf32>
    %411 = vector.extract_strided_slice %339 {offsets = [40, 0], sizes = [8, 128], strides = [1, 1]} : vector<200x128xf32> to vector<8x128xf32>
    %cst_162 = arith.constant 1.000000e+00 : f32
    %412 = vector.broadcast %cst_162 : f32 to vector<8x128xf32>
    %413 = arith.cmpf ogt, %406, %412 : vector<8x128xf32>
    %cst_163 = arith.constant 1.000000e+00 : f32
    %cst_164 = arith.constant 0.000000e+00 : f32
    %414 = vector.broadcast %cst_163 : f32 to vector<8x128xf32>
    %415 = vector.broadcast %cst_164 : f32 to vector<8x128xf32>
    %416 = arith.select %413, %414, %415 : vector<8x128xi1>, vector<8x128xf32>
    %cst_165 = arith.constant 8.500000e-01 : f32
    %417 = vector.broadcast %cst_165 : f32 to vector<8x128xf32>
    %418 = arith.mulf %417, %406 : vector<8x128xf32>
    %419 = arith.addf %418, %411 : vector<8x128xf32>
    %420 = arith.subf %419, %416 : vector<8x128xf32>
    %cst_166 = arith.constant 1.000000e+00 : f32
    %421 = vector.broadcast %cst_166 : f32 to vector<8x128xf32>
    %422 = arith.cmpf ogt, %420, %421 : vector<8x128xf32>
    %423 = arith.extui %422 : vector<8x128xi1> to vector<8x128xi32>
    %424 = arith.sitofp %423 : vector<8x128xi32> to vector<8x128xf32>
    %425 = vector.extract_strided_slice %339 {offsets = [48, 0], sizes = [8, 128], strides = [1, 1]} : vector<200x128xf32> to vector<8x128xf32>
    %cst_167 = arith.constant 1.000000e+00 : f32
    %426 = vector.broadcast %cst_167 : f32 to vector<8x128xf32>
    %427 = arith.cmpf ogt, %420, %426 : vector<8x128xf32>
    %cst_168 = arith.constant 1.000000e+00 : f32
    %cst_169 = arith.constant 0.000000e+00 : f32
    %428 = vector.broadcast %cst_168 : f32 to vector<8x128xf32>
    %429 = vector.broadcast %cst_169 : f32 to vector<8x128xf32>
    %430 = arith.select %427, %428, %429 : vector<8x128xi1>, vector<8x128xf32>
    %cst_170 = arith.constant 8.500000e-01 : f32
    %431 = vector.broadcast %cst_170 : f32 to vector<8x128xf32>
    %432 = arith.mulf %431, %420 : vector<8x128xf32>
    %433 = arith.addf %432, %425 : vector<8x128xf32>
    %434 = arith.subf %433, %430 : vector<8x128xf32>
    %cst_171 = arith.constant 1.000000e+00 : f32
    %435 = vector.broadcast %cst_171 : f32 to vector<8x128xf32>
    %436 = arith.cmpf ogt, %434, %435 : vector<8x128xf32>
    %437 = arith.extui %436 : vector<8x128xi1> to vector<8x128xi32>
    %438 = arith.sitofp %437 : vector<8x128xi32> to vector<8x128xf32>
    %439 = vector.extract_strided_slice %339 {offsets = [56, 0], sizes = [8, 128], strides = [1, 1]} : vector<200x128xf32> to vector<8x128xf32>
    %cst_172 = arith.constant 1.000000e+00 : f32
    %440 = vector.broadcast %cst_172 : f32 to vector<8x128xf32>
    %441 = arith.cmpf ogt, %434, %440 : vector<8x128xf32>
    %cst_173 = arith.constant 1.000000e+00 : f32
    %cst_174 = arith.constant 0.000000e+00 : f32
    %442 = vector.broadcast %cst_173 : f32 to vector<8x128xf32>
    %443 = vector.broadcast %cst_174 : f32 to vector<8x128xf32>
    %444 = arith.select %441, %442, %443 : vector<8x128xi1>, vector<8x128xf32>
    %cst_175 = arith.constant 8.500000e-01 : f32
    %445 = vector.broadcast %cst_175 : f32 to vector<8x128xf32>
    %446 = arith.mulf %445, %434 : vector<8x128xf32>
    %447 = arith.addf %446, %439 : vector<8x128xf32>
    %448 = arith.subf %447, %444 : vector<8x128xf32>
    %cst_176 = arith.constant 1.000000e+00 : f32
    %449 = vector.broadcast %cst_176 : f32 to vector<8x128xf32>
    %450 = arith.cmpf ogt, %448, %449 : vector<8x128xf32>
    %451 = arith.extui %450 : vector<8x128xi1> to vector<8x128xi32>
    %452 = arith.sitofp %451 : vector<8x128xi32> to vector<8x128xf32>
    %453 = vector.extract_strided_slice %339 {offsets = [64, 0], sizes = [8, 128], strides = [1, 1]} : vector<200x128xf32> to vector<8x128xf32>
    %cst_177 = arith.constant 1.000000e+00 : f32
    %454 = vector.broadcast %cst_177 : f32 to vector<8x128xf32>
    %455 = arith.cmpf ogt, %448, %454 : vector<8x128xf32>
    %cst_178 = arith.constant 1.000000e+00 : f32
    %cst_179 = arith.constant 0.000000e+00 : f32
    %456 = vector.broadcast %cst_178 : f32 to vector<8x128xf32>
    %457 = vector.broadcast %cst_179 : f32 to vector<8x128xf32>
    %458 = arith.select %455, %456, %457 : vector<8x128xi1>, vector<8x128xf32>
    %cst_180 = arith.constant 8.500000e-01 : f32
    %459 = vector.broadcast %cst_180 : f32 to vector<8x128xf32>
    %460 = arith.mulf %459, %448 : vector<8x128xf32>
    %461 = arith.addf %460, %453 : vector<8x128xf32>
    %462 = arith.subf %461, %458 : vector<8x128xf32>
    %cst_181 = arith.constant 1.000000e+00 : f32
    %463 = vector.broadcast %cst_181 : f32 to vector<8x128xf32>
    %464 = arith.cmpf ogt, %462, %463 : vector<8x128xf32>
    %465 = arith.extui %464 : vector<8x128xi1> to vector<8x128xi32>
    %466 = arith.sitofp %465 : vector<8x128xi32> to vector<8x128xf32>
    %467 = vector.extract_strided_slice %339 {offsets = [72, 0], sizes = [8, 128], strides = [1, 1]} : vector<200x128xf32> to vector<8x128xf32>
    %cst_182 = arith.constant 1.000000e+00 : f32
    %468 = vector.broadcast %cst_182 : f32 to vector<8x128xf32>
    %469 = arith.cmpf ogt, %462, %468 : vector<8x128xf32>
    %cst_183 = arith.constant 1.000000e+00 : f32
    %cst_184 = arith.constant 0.000000e+00 : f32
    %470 = vector.broadcast %cst_183 : f32 to vector<8x128xf32>
    %471 = vector.broadcast %cst_184 : f32 to vector<8x128xf32>
    %472 = arith.select %469, %470, %471 : vector<8x128xi1>, vector<8x128xf32>
    %cst_185 = arith.constant 8.500000e-01 : f32
    %473 = vector.broadcast %cst_185 : f32 to vector<8x128xf32>
    %474 = arith.mulf %473, %462 : vector<8x128xf32>
    %475 = arith.addf %474, %467 : vector<8x128xf32>
    %476 = arith.subf %475, %472 : vector<8x128xf32>
    %cst_186 = arith.constant 1.000000e+00 : f32
    %477 = vector.broadcast %cst_186 : f32 to vector<8x128xf32>
    %478 = arith.cmpf ogt, %476, %477 : vector<8x128xf32>
    %479 = arith.extui %478 : vector<8x128xi1> to vector<8x128xi32>
    %480 = arith.sitofp %479 : vector<8x128xi32> to vector<8x128xf32>
    %481 = vector.extract_strided_slice %339 {offsets = [80, 0], sizes = [8, 128], strides = [1, 1]} : vector<200x128xf32> to vector<8x128xf32>
    %cst_187 = arith.constant 1.000000e+00 : f32
    %482 = vector.broadcast %cst_187 : f32 to vector<8x128xf32>
    %483 = arith.cmpf ogt, %476, %482 : vector<8x128xf32>
    %cst_188 = arith.constant 1.000000e+00 : f32
    %cst_189 = arith.constant 0.000000e+00 : f32
    %484 = vector.broadcast %cst_188 : f32 to vector<8x128xf32>
    %485 = vector.broadcast %cst_189 : f32 to vector<8x128xf32>
    %486 = arith.select %483, %484, %485 : vector<8x128xi1>, vector<8x128xf32>
    %cst_190 = arith.constant 8.500000e-01 : f32
    %487 = vector.broadcast %cst_190 : f32 to vector<8x128xf32>
    %488 = arith.mulf %487, %476 : vector<8x128xf32>
    %489 = arith.addf %488, %481 : vector<8x128xf32>
    %490 = arith.subf %489, %486 : vector<8x128xf32>
    %cst_191 = arith.constant 1.000000e+00 : f32
    %491 = vector.broadcast %cst_191 : f32 to vector<8x128xf32>
    %492 = arith.cmpf ogt, %490, %491 : vector<8x128xf32>
    %493 = arith.extui %492 : vector<8x128xi1> to vector<8x128xi32>
    %494 = arith.sitofp %493 : vector<8x128xi32> to vector<8x128xf32>
    %495 = vector.extract_strided_slice %339 {offsets = [88, 0], sizes = [8, 128], strides = [1, 1]} : vector<200x128xf32> to vector<8x128xf32>
    %cst_192 = arith.constant 1.000000e+00 : f32
    %496 = vector.broadcast %cst_192 : f32 to vector<8x128xf32>
    %497 = arith.cmpf ogt, %490, %496 : vector<8x128xf32>
    %cst_193 = arith.constant 1.000000e+00 : f32
    %cst_194 = arith.constant 0.000000e+00 : f32
    %498 = vector.broadcast %cst_193 : f32 to vector<8x128xf32>
    %499 = vector.broadcast %cst_194 : f32 to vector<8x128xf32>
    %500 = arith.select %497, %498, %499 : vector<8x128xi1>, vector<8x128xf32>
    %cst_195 = arith.constant 8.500000e-01 : f32
    %501 = vector.broadcast %cst_195 : f32 to vector<8x128xf32>
    %502 = arith.mulf %501, %490 : vector<8x128xf32>
    %503 = arith.addf %502, %495 : vector<8x128xf32>
    %504 = arith.subf %503, %500 : vector<8x128xf32>
    %cst_196 = arith.constant 1.000000e+00 : f32
    %505 = vector.broadcast %cst_196 : f32 to vector<8x128xf32>
    %506 = arith.cmpf ogt, %504, %505 : vector<8x128xf32>
    %507 = arith.extui %506 : vector<8x128xi1> to vector<8x128xi32>
    %508 = arith.sitofp %507 : vector<8x128xi32> to vector<8x128xf32>
    %509 = vector.extract_strided_slice %339 {offsets = [96, 0], sizes = [8, 128], strides = [1, 1]} : vector<200x128xf32> to vector<8x128xf32>
    %cst_197 = arith.constant 1.000000e+00 : f32
    %510 = vector.broadcast %cst_197 : f32 to vector<8x128xf32>
    %511 = arith.cmpf ogt, %504, %510 : vector<8x128xf32>
    %cst_198 = arith.constant 1.000000e+00 : f32
    %cst_199 = arith.constant 0.000000e+00 : f32
    %512 = vector.broadcast %cst_198 : f32 to vector<8x128xf32>
    %513 = vector.broadcast %cst_199 : f32 to vector<8x128xf32>
    %514 = arith.select %511, %512, %513 : vector<8x128xi1>, vector<8x128xf32>
    %cst_200 = arith.constant 8.500000e-01 : f32
    %515 = vector.broadcast %cst_200 : f32 to vector<8x128xf32>
    %516 = arith.mulf %515, %504 : vector<8x128xf32>
    %517 = arith.addf %516, %509 : vector<8x128xf32>
    %518 = arith.subf %517, %514 : vector<8x128xf32>
    %cst_201 = arith.constant 1.000000e+00 : f32
    %519 = vector.broadcast %cst_201 : f32 to vector<8x128xf32>
    %520 = arith.cmpf ogt, %518, %519 : vector<8x128xf32>
    %521 = arith.extui %520 : vector<8x128xi1> to vector<8x128xi32>
    %522 = arith.sitofp %521 : vector<8x128xi32> to vector<8x128xf32>
    %523 = vector.extract_strided_slice %339 {offsets = [104, 0], sizes = [8, 128], strides = [1, 1]} : vector<200x128xf32> to vector<8x128xf32>
    %cst_202 = arith.constant 1.000000e+00 : f32
    %524 = vector.broadcast %cst_202 : f32 to vector<8x128xf32>
    %525 = arith.cmpf ogt, %518, %524 : vector<8x128xf32>
    %cst_203 = arith.constant 1.000000e+00 : f32
    %cst_204 = arith.constant 0.000000e+00 : f32
    %526 = vector.broadcast %cst_203 : f32 to vector<8x128xf32>
    %527 = vector.broadcast %cst_204 : f32 to vector<8x128xf32>
    %528 = arith.select %525, %526, %527 : vector<8x128xi1>, vector<8x128xf32>
    %cst_205 = arith.constant 8.500000e-01 : f32
    %529 = vector.broadcast %cst_205 : f32 to vector<8x128xf32>
    %530 = arith.mulf %529, %518 : vector<8x128xf32>
    %531 = arith.addf %530, %523 : vector<8x128xf32>
    %532 = arith.subf %531, %528 : vector<8x128xf32>
    %cst_206 = arith.constant 1.000000e+00 : f32
    %533 = vector.broadcast %cst_206 : f32 to vector<8x128xf32>
    %534 = arith.cmpf ogt, %532, %533 : vector<8x128xf32>
    %535 = arith.extui %534 : vector<8x128xi1> to vector<8x128xi32>
    %536 = arith.sitofp %535 : vector<8x128xi32> to vector<8x128xf32>
    %537 = vector.extract_strided_slice %339 {offsets = [112, 0], sizes = [8, 128], strides = [1, 1]} : vector<200x128xf32> to vector<8x128xf32>
    %cst_207 = arith.constant 1.000000e+00 : f32
    %538 = vector.broadcast %cst_207 : f32 to vector<8x128xf32>
    %539 = arith.cmpf ogt, %532, %538 : vector<8x128xf32>
    %cst_208 = arith.constant 1.000000e+00 : f32
    %cst_209 = arith.constant 0.000000e+00 : f32
    %540 = vector.broadcast %cst_208 : f32 to vector<8x128xf32>
    %541 = vector.broadcast %cst_209 : f32 to vector<8x128xf32>
    %542 = arith.select %539, %540, %541 : vector<8x128xi1>, vector<8x128xf32>
    %cst_210 = arith.constant 8.500000e-01 : f32
    %543 = vector.broadcast %cst_210 : f32 to vector<8x128xf32>
    %544 = arith.mulf %543, %532 : vector<8x128xf32>
    %545 = arith.addf %544, %537 : vector<8x128xf32>
    %546 = arith.subf %545, %542 : vector<8x128xf32>
    %cst_211 = arith.constant 1.000000e+00 : f32
    %547 = vector.broadcast %cst_211 : f32 to vector<8x128xf32>
    %548 = arith.cmpf ogt, %546, %547 : vector<8x128xf32>
    %549 = arith.extui %548 : vector<8x128xi1> to vector<8x128xi32>
    %550 = arith.sitofp %549 : vector<8x128xi32> to vector<8x128xf32>
    %551 = vector.extract_strided_slice %339 {offsets = [120, 0], sizes = [8, 128], strides = [1, 1]} : vector<200x128xf32> to vector<8x128xf32>
    %cst_212 = arith.constant 1.000000e+00 : f32
    %552 = vector.broadcast %cst_212 : f32 to vector<8x128xf32>
    %553 = arith.cmpf ogt, %546, %552 : vector<8x128xf32>
    %cst_213 = arith.constant 1.000000e+00 : f32
    %cst_214 = arith.constant 0.000000e+00 : f32
    %554 = vector.broadcast %cst_213 : f32 to vector<8x128xf32>
    %555 = vector.broadcast %cst_214 : f32 to vector<8x128xf32>
    %556 = arith.select %553, %554, %555 : vector<8x128xi1>, vector<8x128xf32>
    %cst_215 = arith.constant 8.500000e-01 : f32
    %557 = vector.broadcast %cst_215 : f32 to vector<8x128xf32>
    %558 = arith.mulf %557, %546 : vector<8x128xf32>
    %559 = arith.addf %558, %551 : vector<8x128xf32>
    %560 = arith.subf %559, %556 : vector<8x128xf32>
    %cst_216 = arith.constant 1.000000e+00 : f32
    %561 = vector.broadcast %cst_216 : f32 to vector<8x128xf32>
    %562 = arith.cmpf ogt, %560, %561 : vector<8x128xf32>
    %563 = arith.extui %562 : vector<8x128xi1> to vector<8x128xi32>
    %564 = arith.sitofp %563 : vector<8x128xi32> to vector<8x128xf32>
    %565 = vector.extract_strided_slice %339 {offsets = [128, 0], sizes = [8, 128], strides = [1, 1]} : vector<200x128xf32> to vector<8x128xf32>
    %cst_217 = arith.constant 1.000000e+00 : f32
    %566 = vector.broadcast %cst_217 : f32 to vector<8x128xf32>
    %567 = arith.cmpf ogt, %560, %566 : vector<8x128xf32>
    %cst_218 = arith.constant 1.000000e+00 : f32
    %cst_219 = arith.constant 0.000000e+00 : f32
    %568 = vector.broadcast %cst_218 : f32 to vector<8x128xf32>
    %569 = vector.broadcast %cst_219 : f32 to vector<8x128xf32>
    %570 = arith.select %567, %568, %569 : vector<8x128xi1>, vector<8x128xf32>
    %cst_220 = arith.constant 8.500000e-01 : f32
    %571 = vector.broadcast %cst_220 : f32 to vector<8x128xf32>
    %572 = arith.mulf %571, %560 : vector<8x128xf32>
    %573 = arith.addf %572, %565 : vector<8x128xf32>
    %574 = arith.subf %573, %570 : vector<8x128xf32>
    %cst_221 = arith.constant 1.000000e+00 : f32
    %575 = vector.broadcast %cst_221 : f32 to vector<8x128xf32>
    %576 = arith.cmpf ogt, %574, %575 : vector<8x128xf32>
    %577 = arith.extui %576 : vector<8x128xi1> to vector<8x128xi32>
    %578 = arith.sitofp %577 : vector<8x128xi32> to vector<8x128xf32>
    %579 = vector.extract_strided_slice %339 {offsets = [136, 0], sizes = [8, 128], strides = [1, 1]} : vector<200x128xf32> to vector<8x128xf32>
    %cst_222 = arith.constant 1.000000e+00 : f32
    %580 = vector.broadcast %cst_222 : f32 to vector<8x128xf32>
    %581 = arith.cmpf ogt, %574, %580 : vector<8x128xf32>
    %cst_223 = arith.constant 1.000000e+00 : f32
    %cst_224 = arith.constant 0.000000e+00 : f32
    %582 = vector.broadcast %cst_223 : f32 to vector<8x128xf32>
    %583 = vector.broadcast %cst_224 : f32 to vector<8x128xf32>
    %584 = arith.select %581, %582, %583 : vector<8x128xi1>, vector<8x128xf32>
    %cst_225 = arith.constant 8.500000e-01 : f32
    %585 = vector.broadcast %cst_225 : f32 to vector<8x128xf32>
    %586 = arith.mulf %585, %574 : vector<8x128xf32>
    %587 = arith.addf %586, %579 : vector<8x128xf32>
    %588 = arith.subf %587, %584 : vector<8x128xf32>
    %cst_226 = arith.constant 1.000000e+00 : f32
    %589 = vector.broadcast %cst_226 : f32 to vector<8x128xf32>
    %590 = arith.cmpf ogt, %588, %589 : vector<8x128xf32>
    %591 = arith.extui %590 : vector<8x128xi1> to vector<8x128xi32>
    %592 = arith.sitofp %591 : vector<8x128xi32> to vector<8x128xf32>
    %593 = vector.extract_strided_slice %339 {offsets = [144, 0], sizes = [8, 128], strides = [1, 1]} : vector<200x128xf32> to vector<8x128xf32>
    %cst_227 = arith.constant 1.000000e+00 : f32
    %594 = vector.broadcast %cst_227 : f32 to vector<8x128xf32>
    %595 = arith.cmpf ogt, %588, %594 : vector<8x128xf32>
    %cst_228 = arith.constant 1.000000e+00 : f32
    %cst_229 = arith.constant 0.000000e+00 : f32
    %596 = vector.broadcast %cst_228 : f32 to vector<8x128xf32>
    %597 = vector.broadcast %cst_229 : f32 to vector<8x128xf32>
    %598 = arith.select %595, %596, %597 : vector<8x128xi1>, vector<8x128xf32>
    %cst_230 = arith.constant 8.500000e-01 : f32
    %599 = vector.broadcast %cst_230 : f32 to vector<8x128xf32>
    %600 = arith.mulf %599, %588 : vector<8x128xf32>
    %601 = arith.addf %600, %593 : vector<8x128xf32>
    %602 = arith.subf %601, %598 : vector<8x128xf32>
    %cst_231 = arith.constant 1.000000e+00 : f32
    %603 = vector.broadcast %cst_231 : f32 to vector<8x128xf32>
    %604 = arith.cmpf ogt, %602, %603 : vector<8x128xf32>
    %605 = arith.extui %604 : vector<8x128xi1> to vector<8x128xi32>
    %606 = arith.sitofp %605 : vector<8x128xi32> to vector<8x128xf32>
    %607 = vector.extract_strided_slice %339 {offsets = [152, 0], sizes = [8, 128], strides = [1, 1]} : vector<200x128xf32> to vector<8x128xf32>
    %cst_232 = arith.constant 1.000000e+00 : f32
    %608 = vector.broadcast %cst_232 : f32 to vector<8x128xf32>
    %609 = arith.cmpf ogt, %602, %608 : vector<8x128xf32>
    %cst_233 = arith.constant 1.000000e+00 : f32
    %cst_234 = arith.constant 0.000000e+00 : f32
    %610 = vector.broadcast %cst_233 : f32 to vector<8x128xf32>
    %611 = vector.broadcast %cst_234 : f32 to vector<8x128xf32>
    %612 = arith.select %609, %610, %611 : vector<8x128xi1>, vector<8x128xf32>
    %cst_235 = arith.constant 8.500000e-01 : f32
    %613 = vector.broadcast %cst_235 : f32 to vector<8x128xf32>
    %614 = arith.mulf %613, %602 : vector<8x128xf32>
    %615 = arith.addf %614, %607 : vector<8x128xf32>
    %616 = arith.subf %615, %612 : vector<8x128xf32>
    %cst_236 = arith.constant 1.000000e+00 : f32
    %617 = vector.broadcast %cst_236 : f32 to vector<8x128xf32>
    %618 = arith.cmpf ogt, %616, %617 : vector<8x128xf32>
    %619 = arith.extui %618 : vector<8x128xi1> to vector<8x128xi32>
    %620 = arith.sitofp %619 : vector<8x128xi32> to vector<8x128xf32>
    %621 = vector.extract_strided_slice %339 {offsets = [160, 0], sizes = [8, 128], strides = [1, 1]} : vector<200x128xf32> to vector<8x128xf32>
    %cst_237 = arith.constant 1.000000e+00 : f32
    %622 = vector.broadcast %cst_237 : f32 to vector<8x128xf32>
    %623 = arith.cmpf ogt, %616, %622 : vector<8x128xf32>
    %cst_238 = arith.constant 1.000000e+00 : f32
    %cst_239 = arith.constant 0.000000e+00 : f32
    %624 = vector.broadcast %cst_238 : f32 to vector<8x128xf32>
    %625 = vector.broadcast %cst_239 : f32 to vector<8x128xf32>
    %626 = arith.select %623, %624, %625 : vector<8x128xi1>, vector<8x128xf32>
    %cst_240 = arith.constant 8.500000e-01 : f32
    %627 = vector.broadcast %cst_240 : f32 to vector<8x128xf32>
    %628 = arith.mulf %627, %616 : vector<8x128xf32>
    %629 = arith.addf %628, %621 : vector<8x128xf32>
    %630 = arith.subf %629, %626 : vector<8x128xf32>
    %cst_241 = arith.constant 1.000000e+00 : f32
    %631 = vector.broadcast %cst_241 : f32 to vector<8x128xf32>
    %632 = arith.cmpf ogt, %630, %631 : vector<8x128xf32>
    %633 = arith.extui %632 : vector<8x128xi1> to vector<8x128xi32>
    %634 = arith.sitofp %633 : vector<8x128xi32> to vector<8x128xf32>
    %635 = vector.extract_strided_slice %339 {offsets = [168, 0], sizes = [8, 128], strides = [1, 1]} : vector<200x128xf32> to vector<8x128xf32>
    %cst_242 = arith.constant 1.000000e+00 : f32
    %636 = vector.broadcast %cst_242 : f32 to vector<8x128xf32>
    %637 = arith.cmpf ogt, %630, %636 : vector<8x128xf32>
    %cst_243 = arith.constant 1.000000e+00 : f32
    %cst_244 = arith.constant 0.000000e+00 : f32
    %638 = vector.broadcast %cst_243 : f32 to vector<8x128xf32>
    %639 = vector.broadcast %cst_244 : f32 to vector<8x128xf32>
    %640 = arith.select %637, %638, %639 : vector<8x128xi1>, vector<8x128xf32>
    %cst_245 = arith.constant 8.500000e-01 : f32
    %641 = vector.broadcast %cst_245 : f32 to vector<8x128xf32>
    %642 = arith.mulf %641, %630 : vector<8x128xf32>
    %643 = arith.addf %642, %635 : vector<8x128xf32>
    %644 = arith.subf %643, %640 : vector<8x128xf32>
    %cst_246 = arith.constant 1.000000e+00 : f32
    %645 = vector.broadcast %cst_246 : f32 to vector<8x128xf32>
    %646 = arith.cmpf ogt, %644, %645 : vector<8x128xf32>
    %647 = arith.extui %646 : vector<8x128xi1> to vector<8x128xi32>
    %648 = arith.sitofp %647 : vector<8x128xi32> to vector<8x128xf32>
    %649 = vector.extract_strided_slice %339 {offsets = [176, 0], sizes = [8, 128], strides = [1, 1]} : vector<200x128xf32> to vector<8x128xf32>
    %cst_247 = arith.constant 1.000000e+00 : f32
    %650 = vector.broadcast %cst_247 : f32 to vector<8x128xf32>
    %651 = arith.cmpf ogt, %644, %650 : vector<8x128xf32>
    %cst_248 = arith.constant 1.000000e+00 : f32
    %cst_249 = arith.constant 0.000000e+00 : f32
    %652 = vector.broadcast %cst_248 : f32 to vector<8x128xf32>
    %653 = vector.broadcast %cst_249 : f32 to vector<8x128xf32>
    %654 = arith.select %651, %652, %653 : vector<8x128xi1>, vector<8x128xf32>
    %cst_250 = arith.constant 8.500000e-01 : f32
    %655 = vector.broadcast %cst_250 : f32 to vector<8x128xf32>
    %656 = arith.mulf %655, %644 : vector<8x128xf32>
    %657 = arith.addf %656, %649 : vector<8x128xf32>
    %658 = arith.subf %657, %654 : vector<8x128xf32>
    %cst_251 = arith.constant 1.000000e+00 : f32
    %659 = vector.broadcast %cst_251 : f32 to vector<8x128xf32>
    %660 = arith.cmpf ogt, %658, %659 : vector<8x128xf32>
    %661 = arith.extui %660 : vector<8x128xi1> to vector<8x128xi32>
    %662 = arith.sitofp %661 : vector<8x128xi32> to vector<8x128xf32>
    %663 = vector.extract_strided_slice %339 {offsets = [184, 0], sizes = [8, 128], strides = [1, 1]} : vector<200x128xf32> to vector<8x128xf32>
    %cst_252 = arith.constant 1.000000e+00 : f32
    %664 = vector.broadcast %cst_252 : f32 to vector<8x128xf32>
    %665 = arith.cmpf ogt, %658, %664 : vector<8x128xf32>
    %cst_253 = arith.constant 1.000000e+00 : f32
    %cst_254 = arith.constant 0.000000e+00 : f32
    %666 = vector.broadcast %cst_253 : f32 to vector<8x128xf32>
    %667 = vector.broadcast %cst_254 : f32 to vector<8x128xf32>
    %668 = arith.select %665, %666, %667 : vector<8x128xi1>, vector<8x128xf32>
    %cst_255 = arith.constant 8.500000e-01 : f32
    %669 = vector.broadcast %cst_255 : f32 to vector<8x128xf32>
    %670 = arith.mulf %669, %658 : vector<8x128xf32>
    %671 = arith.addf %670, %663 : vector<8x128xf32>
    %672 = arith.subf %671, %668 : vector<8x128xf32>
    %cst_256 = arith.constant 1.000000e+00 : f32
    %673 = vector.broadcast %cst_256 : f32 to vector<8x128xf32>
    %674 = arith.cmpf ogt, %672, %673 : vector<8x128xf32>
    %675 = arith.extui %674 : vector<8x128xi1> to vector<8x128xi32>
    %676 = arith.sitofp %675 : vector<8x128xi32> to vector<8x128xf32>
    %677 = vector.extract_strided_slice %339 {offsets = [192, 0], sizes = [8, 128], strides = [1, 1]} : vector<200x128xf32> to vector<8x128xf32>
    %cst_257 = arith.constant 1.000000e+00 : f32
    %678 = vector.broadcast %cst_257 : f32 to vector<8x128xf32>
    %679 = arith.cmpf ogt, %672, %678 : vector<8x128xf32>
    %cst_258 = arith.constant 1.000000e+00 : f32
    %cst_259 = arith.constant 0.000000e+00 : f32
    %680 = vector.broadcast %cst_258 : f32 to vector<8x128xf32>
    %681 = vector.broadcast %cst_259 : f32 to vector<8x128xf32>
    %682 = arith.select %679, %680, %681 : vector<8x128xi1>, vector<8x128xf32>
    %cst_260 = arith.constant 8.500000e-01 : f32
    %683 = vector.broadcast %cst_260 : f32 to vector<8x128xf32>
    %684 = arith.mulf %683, %672 : vector<8x128xf32>
    %685 = arith.addf %684, %677 : vector<8x128xf32>
    %686 = arith.subf %685, %682 : vector<8x128xf32>
    %cst_261 = arith.constant 1.000000e+00 : f32
    %687 = vector.broadcast %cst_261 : f32 to vector<8x128xf32>
    %688 = arith.cmpf ogt, %686, %687 : vector<8x128xf32>
    %689 = arith.extui %688 : vector<8x128xi1> to vector<8x128xi32>
    %690 = arith.sitofp %689 : vector<8x128xi32> to vector<8x128xf32>
    %691 = tpu.concatenate %354, %368, %382, %396, %410, %424, %438, %452, %466, %480, %494, %508, %522, %536, %550, %564 in 0 : vector<8x128xf32>, vector<8x128xf32>, vector<8x128xf32>, vector<8x128xf32>, vector<8x128xf32>, vector<8x128xf32>, vector<8x128xf32>, vector<8x128xf32>, vector<8x128xf32>, vector<8x128xf32>, vector<8x128xf32>, vector<8x128xf32>, vector<8x128xf32>, vector<8x128xf32>, vector<8x128xf32>, vector<8x128xf32> -> vector<128x128xf32>
    %692 = tpu.concatenate %578, %592, %606, %620, %634, %648, %662, %676, %690 in 0 : vector<8x128xf32>, vector<8x128xf32>, vector<8x128xf32>, vector<8x128xf32>, vector<8x128xf32>, vector<8x128xf32>, vector<8x128xf32>, vector<8x128xf32>, vector<8x128xf32> -> vector<72x128xf32>
    %693 = tpu.concatenate %691, %692 in 0 : vector<128x128xf32>, vector<72x128xf32> -> vector<200x128xf32>
    %c0_262 = arith.constant 0 : index
    %c0_263 = arith.constant 0 : index
    %694 = vector.load %arg6[%c0_262, %c0_263] : memref<128x128xf32, #tpu.memory_space<vmem>>, vector<128x128xf32>
    %cst_264 = arith.constant dense<0.000000e+00> : vector<200x128xf32>
    %695 = tpu.matmul %693, %694, %cst_264 {dimension_numbers = #tpu.dot_dimension_numbers<[1], [0], [0], [1], [0, 0, 1, 1], [], []>} : vector<200x128xf32>, vector<128x128xf32>, vector<200x128xf32> -> vector<200x128xf32>
    %c0_265 = arith.constant 0 : index
    %c0_266 = arith.constant 0 : index
    %696 = vector.load %arg7[%c0_265, %c0_266] : memref<1x128xf32, #tpu.memory_space<vmem>>, vector<1x128xf32>
    %697 = vector.broadcast %696 : vector<1x128xf32> to vector<200x128xf32>
    %698 = arith.addf %695, %697 : vector<200x128xf32>
    %cst_267 = arith.constant 0.000000e+00 : f32
    %699 = vector.broadcast %cst_267 : f32 to vector<8x128xf32>
    %700 = vector.extract_strided_slice %698 {offsets = [0, 0], sizes = [8, 128], strides = [1, 1]} : vector<200x128xf32> to vector<8x128xf32>
    %cst_268 = arith.constant 1.000000e+00 : f32
    %701 = vector.broadcast %cst_268 : f32 to vector<8x128xf32>
    %702 = arith.cmpf ogt, %699, %701 : vector<8x128xf32>
    %cst_269 = arith.constant 1.000000e+00 : f32
    %cst_270 = arith.constant 0.000000e+00 : f32
    %703 = vector.broadcast %cst_269 : f32 to vector<8x128xf32>
    %704 = vector.broadcast %cst_270 : f32 to vector<8x128xf32>
    %705 = arith.select %702, %703, %704 : vector<8x128xi1>, vector<8x128xf32>
    %cst_271 = arith.constant 8.500000e-01 : f32
    %706 = vector.broadcast %cst_271 : f32 to vector<8x128xf32>
    %707 = arith.mulf %706, %699 : vector<8x128xf32>
    %708 = arith.addf %707, %700 : vector<8x128xf32>
    %709 = arith.subf %708, %705 : vector<8x128xf32>
    %cst_272 = arith.constant 1.000000e+00 : f32
    %710 = vector.broadcast %cst_272 : f32 to vector<8x128xf32>
    %711 = arith.cmpf ogt, %709, %710 : vector<8x128xf32>
    %712 = arith.extui %711 : vector<8x128xi1> to vector<8x128xi32>
    %713 = arith.sitofp %712 : vector<8x128xi32> to vector<8x128xf32>
    %714 = vector.extract_strided_slice %698 {offsets = [8, 0], sizes = [8, 128], strides = [1, 1]} : vector<200x128xf32> to vector<8x128xf32>
    %cst_273 = arith.constant 1.000000e+00 : f32
    %715 = vector.broadcast %cst_273 : f32 to vector<8x128xf32>
    %716 = arith.cmpf ogt, %709, %715 : vector<8x128xf32>
    %cst_274 = arith.constant 1.000000e+00 : f32
    %cst_275 = arith.constant 0.000000e+00 : f32
    %717 = vector.broadcast %cst_274 : f32 to vector<8x128xf32>
    %718 = vector.broadcast %cst_275 : f32 to vector<8x128xf32>
    %719 = arith.select %716, %717, %718 : vector<8x128xi1>, vector<8x128xf32>
    %cst_276 = arith.constant 8.500000e-01 : f32
    %720 = vector.broadcast %cst_276 : f32 to vector<8x128xf32>
    %721 = arith.mulf %720, %709 : vector<8x128xf32>
    %722 = arith.addf %721, %714 : vector<8x128xf32>
    %723 = arith.subf %722, %719 : vector<8x128xf32>
    %cst_277 = arith.constant 1.000000e+00 : f32
    %724 = vector.broadcast %cst_277 : f32 to vector<8x128xf32>
    %725 = arith.cmpf ogt, %723, %724 : vector<8x128xf32>
    %726 = arith.extui %725 : vector<8x128xi1> to vector<8x128xi32>
    %727 = arith.sitofp %726 : vector<8x128xi32> to vector<8x128xf32>
    %728 = vector.extract_strided_slice %698 {offsets = [16, 0], sizes = [8, 128], strides = [1, 1]} : vector<200x128xf32> to vector<8x128xf32>
    %cst_278 = arith.constant 1.000000e+00 : f32
    %729 = vector.broadcast %cst_278 : f32 to vector<8x128xf32>
    %730 = arith.cmpf ogt, %723, %729 : vector<8x128xf32>
    %cst_279 = arith.constant 1.000000e+00 : f32
    %cst_280 = arith.constant 0.000000e+00 : f32
    %731 = vector.broadcast %cst_279 : f32 to vector<8x128xf32>
    %732 = vector.broadcast %cst_280 : f32 to vector<8x128xf32>
    %733 = arith.select %730, %731, %732 : vector<8x128xi1>, vector<8x128xf32>
    %cst_281 = arith.constant 8.500000e-01 : f32
    %734 = vector.broadcast %cst_281 : f32 to vector<8x128xf32>
    %735 = arith.mulf %734, %723 : vector<8x128xf32>
    %736 = arith.addf %735, %728 : vector<8x128xf32>
    %737 = arith.subf %736, %733 : vector<8x128xf32>
    %cst_282 = arith.constant 1.000000e+00 : f32
    %738 = vector.broadcast %cst_282 : f32 to vector<8x128xf32>
    %739 = arith.cmpf ogt, %737, %738 : vector<8x128xf32>
    %740 = arith.extui %739 : vector<8x128xi1> to vector<8x128xi32>
    %741 = arith.sitofp %740 : vector<8x128xi32> to vector<8x128xf32>
    %742 = vector.extract_strided_slice %698 {offsets = [24, 0], sizes = [8, 128], strides = [1, 1]} : vector<200x128xf32> to vector<8x128xf32>
    %cst_283 = arith.constant 1.000000e+00 : f32
    %743 = vector.broadcast %cst_283 : f32 to vector<8x128xf32>
    %744 = arith.cmpf ogt, %737, %743 : vector<8x128xf32>
    %cst_284 = arith.constant 1.000000e+00 : f32
    %cst_285 = arith.constant 0.000000e+00 : f32
    %745 = vector.broadcast %cst_284 : f32 to vector<8x128xf32>
    %746 = vector.broadcast %cst_285 : f32 to vector<8x128xf32>
    %747 = arith.select %744, %745, %746 : vector<8x128xi1>, vector<8x128xf32>
    %cst_286 = arith.constant 8.500000e-01 : f32
    %748 = vector.broadcast %cst_286 : f32 to vector<8x128xf32>
    %749 = arith.mulf %748, %737 : vector<8x128xf32>
    %750 = arith.addf %749, %742 : vector<8x128xf32>
    %751 = arith.subf %750, %747 : vector<8x128xf32>
    %cst_287 = arith.constant 1.000000e+00 : f32
    %752 = vector.broadcast %cst_287 : f32 to vector<8x128xf32>
    %753 = arith.cmpf ogt, %751, %752 : vector<8x128xf32>
    %754 = arith.extui %753 : vector<8x128xi1> to vector<8x128xi32>
    %755 = arith.sitofp %754 : vector<8x128xi32> to vector<8x128xf32>
    %756 = vector.extract_strided_slice %698 {offsets = [32, 0], sizes = [8, 128], strides = [1, 1]} : vector<200x128xf32> to vector<8x128xf32>
    %cst_288 = arith.constant 1.000000e+00 : f32
    %757 = vector.broadcast %cst_288 : f32 to vector<8x128xf32>
    %758 = arith.cmpf ogt, %751, %757 : vector<8x128xf32>
    %cst_289 = arith.constant 1.000000e+00 : f32
    %cst_290 = arith.constant 0.000000e+00 : f32
    %759 = vector.broadcast %cst_289 : f32 to vector<8x128xf32>
    %760 = vector.broadcast %cst_290 : f32 to vector<8x128xf32>
    %761 = arith.select %758, %759, %760 : vector<8x128xi1>, vector<8x128xf32>
    %cst_291 = arith.constant 8.500000e-01 : f32
    %762 = vector.broadcast %cst_291 : f32 to vector<8x128xf32>
    %763 = arith.mulf %762, %751 : vector<8x128xf32>
    %764 = arith.addf %763, %756 : vector<8x128xf32>
    %765 = arith.subf %764, %761 : vector<8x128xf32>
    %cst_292 = arith.constant 1.000000e+00 : f32
    %766 = vector.broadcast %cst_292 : f32 to vector<8x128xf32>
    %767 = arith.cmpf ogt, %765, %766 : vector<8x128xf32>
    %768 = arith.extui %767 : vector<8x128xi1> to vector<8x128xi32>
    %769 = arith.sitofp %768 : vector<8x128xi32> to vector<8x128xf32>
    %770 = vector.extract_strided_slice %698 {offsets = [40, 0], sizes = [8, 128], strides = [1, 1]} : vector<200x128xf32> to vector<8x128xf32>
    %cst_293 = arith.constant 1.000000e+00 : f32
    %771 = vector.broadcast %cst_293 : f32 to vector<8x128xf32>
    %772 = arith.cmpf ogt, %765, %771 : vector<8x128xf32>
    %cst_294 = arith.constant 1.000000e+00 : f32
    %cst_295 = arith.constant 0.000000e+00 : f32
    %773 = vector.broadcast %cst_294 : f32 to vector<8x128xf32>
    %774 = vector.broadcast %cst_295 : f32 to vector<8x128xf32>
    %775 = arith.select %772, %773, %774 : vector<8x128xi1>, vector<8x128xf32>
    %cst_296 = arith.constant 8.500000e-01 : f32
    %776 = vector.broadcast %cst_296 : f32 to vector<8x128xf32>
    %777 = arith.mulf %776, %765 : vector<8x128xf32>
    %778 = arith.addf %777, %770 : vector<8x128xf32>
    %779 = arith.subf %778, %775 : vector<8x128xf32>
    %cst_297 = arith.constant 1.000000e+00 : f32
    %780 = vector.broadcast %cst_297 : f32 to vector<8x128xf32>
    %781 = arith.cmpf ogt, %779, %780 : vector<8x128xf32>
    %782 = arith.extui %781 : vector<8x128xi1> to vector<8x128xi32>
    %783 = arith.sitofp %782 : vector<8x128xi32> to vector<8x128xf32>
    %784 = vector.extract_strided_slice %698 {offsets = [48, 0], sizes = [8, 128], strides = [1, 1]} : vector<200x128xf32> to vector<8x128xf32>
    %cst_298 = arith.constant 1.000000e+00 : f32
    %785 = vector.broadcast %cst_298 : f32 to vector<8x128xf32>
    %786 = arith.cmpf ogt, %779, %785 : vector<8x128xf32>
    %cst_299 = arith.constant 1.000000e+00 : f32
    %cst_300 = arith.constant 0.000000e+00 : f32
    %787 = vector.broadcast %cst_299 : f32 to vector<8x128xf32>
    %788 = vector.broadcast %cst_300 : f32 to vector<8x128xf32>
    %789 = arith.select %786, %787, %788 : vector<8x128xi1>, vector<8x128xf32>
    %cst_301 = arith.constant 8.500000e-01 : f32
    %790 = vector.broadcast %cst_301 : f32 to vector<8x128xf32>
    %791 = arith.mulf %790, %779 : vector<8x128xf32>
    %792 = arith.addf %791, %784 : vector<8x128xf32>
    %793 = arith.subf %792, %789 : vector<8x128xf32>
    %cst_302 = arith.constant 1.000000e+00 : f32
    %794 = vector.broadcast %cst_302 : f32 to vector<8x128xf32>
    %795 = arith.cmpf ogt, %793, %794 : vector<8x128xf32>
    %796 = arith.extui %795 : vector<8x128xi1> to vector<8x128xi32>
    %797 = arith.sitofp %796 : vector<8x128xi32> to vector<8x128xf32>
    %798 = vector.extract_strided_slice %698 {offsets = [56, 0], sizes = [8, 128], strides = [1, 1]} : vector<200x128xf32> to vector<8x128xf32>
    %cst_303 = arith.constant 1.000000e+00 : f32
    %799 = vector.broadcast %cst_303 : f32 to vector<8x128xf32>
    %800 = arith.cmpf ogt, %793, %799 : vector<8x128xf32>
    %cst_304 = arith.constant 1.000000e+00 : f32
    %cst_305 = arith.constant 0.000000e+00 : f32
    %801 = vector.broadcast %cst_304 : f32 to vector<8x128xf32>
    %802 = vector.broadcast %cst_305 : f32 to vector<8x128xf32>
    %803 = arith.select %800, %801, %802 : vector<8x128xi1>, vector<8x128xf32>
    %cst_306 = arith.constant 8.500000e-01 : f32
    %804 = vector.broadcast %cst_306 : f32 to vector<8x128xf32>
    %805 = arith.mulf %804, %793 : vector<8x128xf32>
    %806 = arith.addf %805, %798 : vector<8x128xf32>
    %807 = arith.subf %806, %803 : vector<8x128xf32>
    %cst_307 = arith.constant 1.000000e+00 : f32
    %808 = vector.broadcast %cst_307 : f32 to vector<8x128xf32>
    %809 = arith.cmpf ogt, %807, %808 : vector<8x128xf32>
    %810 = arith.extui %809 : vector<8x128xi1> to vector<8x128xi32>
    %811 = arith.sitofp %810 : vector<8x128xi32> to vector<8x128xf32>
    %812 = vector.extract_strided_slice %698 {offsets = [64, 0], sizes = [8, 128], strides = [1, 1]} : vector<200x128xf32> to vector<8x128xf32>
    %cst_308 = arith.constant 1.000000e+00 : f32
    %813 = vector.broadcast %cst_308 : f32 to vector<8x128xf32>
    %814 = arith.cmpf ogt, %807, %813 : vector<8x128xf32>
    %cst_309 = arith.constant 1.000000e+00 : f32
    %cst_310 = arith.constant 0.000000e+00 : f32
    %815 = vector.broadcast %cst_309 : f32 to vector<8x128xf32>
    %816 = vector.broadcast %cst_310 : f32 to vector<8x128xf32>
    %817 = arith.select %814, %815, %816 : vector<8x128xi1>, vector<8x128xf32>
    %cst_311 = arith.constant 8.500000e-01 : f32
    %818 = vector.broadcast %cst_311 : f32 to vector<8x128xf32>
    %819 = arith.mulf %818, %807 : vector<8x128xf32>
    %820 = arith.addf %819, %812 : vector<8x128xf32>
    %821 = arith.subf %820, %817 : vector<8x128xf32>
    %cst_312 = arith.constant 1.000000e+00 : f32
    %822 = vector.broadcast %cst_312 : f32 to vector<8x128xf32>
    %823 = arith.cmpf ogt, %821, %822 : vector<8x128xf32>
    %824 = arith.extui %823 : vector<8x128xi1> to vector<8x128xi32>
    %825 = arith.sitofp %824 : vector<8x128xi32> to vector<8x128xf32>
    %826 = vector.extract_strided_slice %698 {offsets = [72, 0], sizes = [8, 128], strides = [1, 1]} : vector<200x128xf32> to vector<8x128xf32>
    %cst_313 = arith.constant 1.000000e+00 : f32
    %827 = vector.broadcast %cst_313 : f32 to vector<8x128xf32>
    %828 = arith.cmpf ogt, %821, %827 : vector<8x128xf32>
    %cst_314 = arith.constant 1.000000e+00 : f32
    %cst_315 = arith.constant 0.000000e+00 : f32
    %829 = vector.broadcast %cst_314 : f32 to vector<8x128xf32>
    %830 = vector.broadcast %cst_315 : f32 to vector<8x128xf32>
    %831 = arith.select %828, %829, %830 : vector<8x128xi1>, vector<8x128xf32>
    %cst_316 = arith.constant 8.500000e-01 : f32
    %832 = vector.broadcast %cst_316 : f32 to vector<8x128xf32>
    %833 = arith.mulf %832, %821 : vector<8x128xf32>
    %834 = arith.addf %833, %826 : vector<8x128xf32>
    %835 = arith.subf %834, %831 : vector<8x128xf32>
    %cst_317 = arith.constant 1.000000e+00 : f32
    %836 = vector.broadcast %cst_317 : f32 to vector<8x128xf32>
    %837 = arith.cmpf ogt, %835, %836 : vector<8x128xf32>
    %838 = arith.extui %837 : vector<8x128xi1> to vector<8x128xi32>
    %839 = arith.sitofp %838 : vector<8x128xi32> to vector<8x128xf32>
    %840 = vector.extract_strided_slice %698 {offsets = [80, 0], sizes = [8, 128], strides = [1, 1]} : vector<200x128xf32> to vector<8x128xf32>
    %cst_318 = arith.constant 1.000000e+00 : f32
    %841 = vector.broadcast %cst_318 : f32 to vector<8x128xf32>
    %842 = arith.cmpf ogt, %835, %841 : vector<8x128xf32>
    %cst_319 = arith.constant 1.000000e+00 : f32
    %cst_320 = arith.constant 0.000000e+00 : f32
    %843 = vector.broadcast %cst_319 : f32 to vector<8x128xf32>
    %844 = vector.broadcast %cst_320 : f32 to vector<8x128xf32>
    %845 = arith.select %842, %843, %844 : vector<8x128xi1>, vector<8x128xf32>
    %cst_321 = arith.constant 8.500000e-01 : f32
    %846 = vector.broadcast %cst_321 : f32 to vector<8x128xf32>
    %847 = arith.mulf %846, %835 : vector<8x128xf32>
    %848 = arith.addf %847, %840 : vector<8x128xf32>
    %849 = arith.subf %848, %845 : vector<8x128xf32>
    %cst_322 = arith.constant 1.000000e+00 : f32
    %850 = vector.broadcast %cst_322 : f32 to vector<8x128xf32>
    %851 = arith.cmpf ogt, %849, %850 : vector<8x128xf32>
    %852 = arith.extui %851 : vector<8x128xi1> to vector<8x128xi32>
    %853 = arith.sitofp %852 : vector<8x128xi32> to vector<8x128xf32>
    %854 = vector.extract_strided_slice %698 {offsets = [88, 0], sizes = [8, 128], strides = [1, 1]} : vector<200x128xf32> to vector<8x128xf32>
    %cst_323 = arith.constant 1.000000e+00 : f32
    %855 = vector.broadcast %cst_323 : f32 to vector<8x128xf32>
    %856 = arith.cmpf ogt, %849, %855 : vector<8x128xf32>
    %cst_324 = arith.constant 1.000000e+00 : f32
    %cst_325 = arith.constant 0.000000e+00 : f32
    %857 = vector.broadcast %cst_324 : f32 to vector<8x128xf32>
    %858 = vector.broadcast %cst_325 : f32 to vector<8x128xf32>
    %859 = arith.select %856, %857, %858 : vector<8x128xi1>, vector<8x128xf32>
    %cst_326 = arith.constant 8.500000e-01 : f32
    %860 = vector.broadcast %cst_326 : f32 to vector<8x128xf32>
    %861 = arith.mulf %860, %849 : vector<8x128xf32>
    %862 = arith.addf %861, %854 : vector<8x128xf32>
    %863 = arith.subf %862, %859 : vector<8x128xf32>
    %cst_327 = arith.constant 1.000000e+00 : f32
    %864 = vector.broadcast %cst_327 : f32 to vector<8x128xf32>
    %865 = arith.cmpf ogt, %863, %864 : vector<8x128xf32>
    %866 = arith.extui %865 : vector<8x128xi1> to vector<8x128xi32>
    %867 = arith.sitofp %866 : vector<8x128xi32> to vector<8x128xf32>
    %868 = vector.extract_strided_slice %698 {offsets = [96, 0], sizes = [8, 128], strides = [1, 1]} : vector<200x128xf32> to vector<8x128xf32>
    %cst_328 = arith.constant 1.000000e+00 : f32
    %869 = vector.broadcast %cst_328 : f32 to vector<8x128xf32>
    %870 = arith.cmpf ogt, %863, %869 : vector<8x128xf32>
    %cst_329 = arith.constant 1.000000e+00 : f32
    %cst_330 = arith.constant 0.000000e+00 : f32
    %871 = vector.broadcast %cst_329 : f32 to vector<8x128xf32>
    %872 = vector.broadcast %cst_330 : f32 to vector<8x128xf32>
    %873 = arith.select %870, %871, %872 : vector<8x128xi1>, vector<8x128xf32>
    %cst_331 = arith.constant 8.500000e-01 : f32
    %874 = vector.broadcast %cst_331 : f32 to vector<8x128xf32>
    %875 = arith.mulf %874, %863 : vector<8x128xf32>
    %876 = arith.addf %875, %868 : vector<8x128xf32>
    %877 = arith.subf %876, %873 : vector<8x128xf32>
    %cst_332 = arith.constant 1.000000e+00 : f32
    %878 = vector.broadcast %cst_332 : f32 to vector<8x128xf32>
    %879 = arith.cmpf ogt, %877, %878 : vector<8x128xf32>
    %880 = arith.extui %879 : vector<8x128xi1> to vector<8x128xi32>
    %881 = arith.sitofp %880 : vector<8x128xi32> to vector<8x128xf32>
    %882 = vector.extract_strided_slice %698 {offsets = [104, 0], sizes = [8, 128], strides = [1, 1]} : vector<200x128xf32> to vector<8x128xf32>
    %cst_333 = arith.constant 1.000000e+00 : f32
    %883 = vector.broadcast %cst_333 : f32 to vector<8x128xf32>
    %884 = arith.cmpf ogt, %877, %883 : vector<8x128xf32>
    %cst_334 = arith.constant 1.000000e+00 : f32
    %cst_335 = arith.constant 0.000000e+00 : f32
    %885 = vector.broadcast %cst_334 : f32 to vector<8x128xf32>
    %886 = vector.broadcast %cst_335 : f32 to vector<8x128xf32>
    %887 = arith.select %884, %885, %886 : vector<8x128xi1>, vector<8x128xf32>
    %cst_336 = arith.constant 8.500000e-01 : f32
    %888 = vector.broadcast %cst_336 : f32 to vector<8x128xf32>
    %889 = arith.mulf %888, %877 : vector<8x128xf32>
    %890 = arith.addf %889, %882 : vector<8x128xf32>
    %891 = arith.subf %890, %887 : vector<8x128xf32>
    %cst_337 = arith.constant 1.000000e+00 : f32
    %892 = vector.broadcast %cst_337 : f32 to vector<8x128xf32>
    %893 = arith.cmpf ogt, %891, %892 : vector<8x128xf32>
    %894 = arith.extui %893 : vector<8x128xi1> to vector<8x128xi32>
    %895 = arith.sitofp %894 : vector<8x128xi32> to vector<8x128xf32>
    %896 = vector.extract_strided_slice %698 {offsets = [112, 0], sizes = [8, 128], strides = [1, 1]} : vector<200x128xf32> to vector<8x128xf32>
    %cst_338 = arith.constant 1.000000e+00 : f32
    %897 = vector.broadcast %cst_338 : f32 to vector<8x128xf32>
    %898 = arith.cmpf ogt, %891, %897 : vector<8x128xf32>
    %cst_339 = arith.constant 1.000000e+00 : f32
    %cst_340 = arith.constant 0.000000e+00 : f32
    %899 = vector.broadcast %cst_339 : f32 to vector<8x128xf32>
    %900 = vector.broadcast %cst_340 : f32 to vector<8x128xf32>
    %901 = arith.select %898, %899, %900 : vector<8x128xi1>, vector<8x128xf32>
    %cst_341 = arith.constant 8.500000e-01 : f32
    %902 = vector.broadcast %cst_341 : f32 to vector<8x128xf32>
    %903 = arith.mulf %902, %891 : vector<8x128xf32>
    %904 = arith.addf %903, %896 : vector<8x128xf32>
    %905 = arith.subf %904, %901 : vector<8x128xf32>
    %cst_342 = arith.constant 1.000000e+00 : f32
    %906 = vector.broadcast %cst_342 : f32 to vector<8x128xf32>
    %907 = arith.cmpf ogt, %905, %906 : vector<8x128xf32>
    %908 = arith.extui %907 : vector<8x128xi1> to vector<8x128xi32>
    %909 = arith.sitofp %908 : vector<8x128xi32> to vector<8x128xf32>
    %910 = vector.extract_strided_slice %698 {offsets = [120, 0], sizes = [8, 128], strides = [1, 1]} : vector<200x128xf32> to vector<8x128xf32>
    %cst_343 = arith.constant 1.000000e+00 : f32
    %911 = vector.broadcast %cst_343 : f32 to vector<8x128xf32>
    %912 = arith.cmpf ogt, %905, %911 : vector<8x128xf32>
    %cst_344 = arith.constant 1.000000e+00 : f32
    %cst_345 = arith.constant 0.000000e+00 : f32
    %913 = vector.broadcast %cst_344 : f32 to vector<8x128xf32>
    %914 = vector.broadcast %cst_345 : f32 to vector<8x128xf32>
    %915 = arith.select %912, %913, %914 : vector<8x128xi1>, vector<8x128xf32>
    %cst_346 = arith.constant 8.500000e-01 : f32
    %916 = vector.broadcast %cst_346 : f32 to vector<8x128xf32>
    %917 = arith.mulf %916, %905 : vector<8x128xf32>
    %918 = arith.addf %917, %910 : vector<8x128xf32>
    %919 = arith.subf %918, %915 : vector<8x128xf32>
    %cst_347 = arith.constant 1.000000e+00 : f32
    %920 = vector.broadcast %cst_347 : f32 to vector<8x128xf32>
    %921 = arith.cmpf ogt, %919, %920 : vector<8x128xf32>
    %922 = arith.extui %921 : vector<8x128xi1> to vector<8x128xi32>
    %923 = arith.sitofp %922 : vector<8x128xi32> to vector<8x128xf32>
    %924 = vector.extract_strided_slice %698 {offsets = [128, 0], sizes = [8, 128], strides = [1, 1]} : vector<200x128xf32> to vector<8x128xf32>
    %cst_348 = arith.constant 1.000000e+00 : f32
    %925 = vector.broadcast %cst_348 : f32 to vector<8x128xf32>
    %926 = arith.cmpf ogt, %919, %925 : vector<8x128xf32>
    %cst_349 = arith.constant 1.000000e+00 : f32
    %cst_350 = arith.constant 0.000000e+00 : f32
    %927 = vector.broadcast %cst_349 : f32 to vector<8x128xf32>
    %928 = vector.broadcast %cst_350 : f32 to vector<8x128xf32>
    %929 = arith.select %926, %927, %928 : vector<8x128xi1>, vector<8x128xf32>
    %cst_351 = arith.constant 8.500000e-01 : f32
    %930 = vector.broadcast %cst_351 : f32 to vector<8x128xf32>
    %931 = arith.mulf %930, %919 : vector<8x128xf32>
    %932 = arith.addf %931, %924 : vector<8x128xf32>
    %933 = arith.subf %932, %929 : vector<8x128xf32>
    %cst_352 = arith.constant 1.000000e+00 : f32
    %934 = vector.broadcast %cst_352 : f32 to vector<8x128xf32>
    %935 = arith.cmpf ogt, %933, %934 : vector<8x128xf32>
    %936 = arith.extui %935 : vector<8x128xi1> to vector<8x128xi32>
    %937 = arith.sitofp %936 : vector<8x128xi32> to vector<8x128xf32>
    %938 = vector.extract_strided_slice %698 {offsets = [136, 0], sizes = [8, 128], strides = [1, 1]} : vector<200x128xf32> to vector<8x128xf32>
    %cst_353 = arith.constant 1.000000e+00 : f32
    %939 = vector.broadcast %cst_353 : f32 to vector<8x128xf32>
    %940 = arith.cmpf ogt, %933, %939 : vector<8x128xf32>
    %cst_354 = arith.constant 1.000000e+00 : f32
    %cst_355 = arith.constant 0.000000e+00 : f32
    %941 = vector.broadcast %cst_354 : f32 to vector<8x128xf32>
    %942 = vector.broadcast %cst_355 : f32 to vector<8x128xf32>
    %943 = arith.select %940, %941, %942 : vector<8x128xi1>, vector<8x128xf32>
    %cst_356 = arith.constant 8.500000e-01 : f32
    %944 = vector.broadcast %cst_356 : f32 to vector<8x128xf32>
    %945 = arith.mulf %944, %933 : vector<8x128xf32>
    %946 = arith.addf %945, %938 : vector<8x128xf32>
    %947 = arith.subf %946, %943 : vector<8x128xf32>
    %cst_357 = arith.constant 1.000000e+00 : f32
    %948 = vector.broadcast %cst_357 : f32 to vector<8x128xf32>
    %949 = arith.cmpf ogt, %947, %948 : vector<8x128xf32>
    %950 = arith.extui %949 : vector<8x128xi1> to vector<8x128xi32>
    %951 = arith.sitofp %950 : vector<8x128xi32> to vector<8x128xf32>
    %952 = vector.extract_strided_slice %698 {offsets = [144, 0], sizes = [8, 128], strides = [1, 1]} : vector<200x128xf32> to vector<8x128xf32>
    %cst_358 = arith.constant 1.000000e+00 : f32
    %953 = vector.broadcast %cst_358 : f32 to vector<8x128xf32>
    %954 = arith.cmpf ogt, %947, %953 : vector<8x128xf32>
    %cst_359 = arith.constant 1.000000e+00 : f32
    %cst_360 = arith.constant 0.000000e+00 : f32
    %955 = vector.broadcast %cst_359 : f32 to vector<8x128xf32>
    %956 = vector.broadcast %cst_360 : f32 to vector<8x128xf32>
    %957 = arith.select %954, %955, %956 : vector<8x128xi1>, vector<8x128xf32>
    %cst_361 = arith.constant 8.500000e-01 : f32
    %958 = vector.broadcast %cst_361 : f32 to vector<8x128xf32>
    %959 = arith.mulf %958, %947 : vector<8x128xf32>
    %960 = arith.addf %959, %952 : vector<8x128xf32>
    %961 = arith.subf %960, %957 : vector<8x128xf32>
    %cst_362 = arith.constant 1.000000e+00 : f32
    %962 = vector.broadcast %cst_362 : f32 to vector<8x128xf32>
    %963 = arith.cmpf ogt, %961, %962 : vector<8x128xf32>
    %964 = arith.extui %963 : vector<8x128xi1> to vector<8x128xi32>
    %965 = arith.sitofp %964 : vector<8x128xi32> to vector<8x128xf32>
    %966 = vector.extract_strided_slice %698 {offsets = [152, 0], sizes = [8, 128], strides = [1, 1]} : vector<200x128xf32> to vector<8x128xf32>
    %cst_363 = arith.constant 1.000000e+00 : f32
    %967 = vector.broadcast %cst_363 : f32 to vector<8x128xf32>
    %968 = arith.cmpf ogt, %961, %967 : vector<8x128xf32>
    %cst_364 = arith.constant 1.000000e+00 : f32
    %cst_365 = arith.constant 0.000000e+00 : f32
    %969 = vector.broadcast %cst_364 : f32 to vector<8x128xf32>
    %970 = vector.broadcast %cst_365 : f32 to vector<8x128xf32>
    %971 = arith.select %968, %969, %970 : vector<8x128xi1>, vector<8x128xf32>
    %cst_366 = arith.constant 8.500000e-01 : f32
    %972 = vector.broadcast %cst_366 : f32 to vector<8x128xf32>
    %973 = arith.mulf %972, %961 : vector<8x128xf32>
    %974 = arith.addf %973, %966 : vector<8x128xf32>
    %975 = arith.subf %974, %971 : vector<8x128xf32>
    %cst_367 = arith.constant 1.000000e+00 : f32
    %976 = vector.broadcast %cst_367 : f32 to vector<8x128xf32>
    %977 = arith.cmpf ogt, %975, %976 : vector<8x128xf32>
    %978 = arith.extui %977 : vector<8x128xi1> to vector<8x128xi32>
    %979 = arith.sitofp %978 : vector<8x128xi32> to vector<8x128xf32>
    %980 = vector.extract_strided_slice %698 {offsets = [160, 0], sizes = [8, 128], strides = [1, 1]} : vector<200x128xf32> to vector<8x128xf32>
    %cst_368 = arith.constant 1.000000e+00 : f32
    %981 = vector.broadcast %cst_368 : f32 to vector<8x128xf32>
    %982 = arith.cmpf ogt, %975, %981 : vector<8x128xf32>
    %cst_369 = arith.constant 1.000000e+00 : f32
    %cst_370 = arith.constant 0.000000e+00 : f32
    %983 = vector.broadcast %cst_369 : f32 to vector<8x128xf32>
    %984 = vector.broadcast %cst_370 : f32 to vector<8x128xf32>
    %985 = arith.select %982, %983, %984 : vector<8x128xi1>, vector<8x128xf32>
    %cst_371 = arith.constant 8.500000e-01 : f32
    %986 = vector.broadcast %cst_371 : f32 to vector<8x128xf32>
    %987 = arith.mulf %986, %975 : vector<8x128xf32>
    %988 = arith.addf %987, %980 : vector<8x128xf32>
    %989 = arith.subf %988, %985 : vector<8x128xf32>
    %cst_372 = arith.constant 1.000000e+00 : f32
    %990 = vector.broadcast %cst_372 : f32 to vector<8x128xf32>
    %991 = arith.cmpf ogt, %989, %990 : vector<8x128xf32>
    %992 = arith.extui %991 : vector<8x128xi1> to vector<8x128xi32>
    %993 = arith.sitofp %992 : vector<8x128xi32> to vector<8x128xf32>
    %994 = vector.extract_strided_slice %698 {offsets = [168, 0], sizes = [8, 128], strides = [1, 1]} : vector<200x128xf32> to vector<8x128xf32>
    %cst_373 = arith.constant 1.000000e+00 : f32
    %995 = vector.broadcast %cst_373 : f32 to vector<8x128xf32>
    %996 = arith.cmpf ogt, %989, %995 : vector<8x128xf32>
    %cst_374 = arith.constant 1.000000e+00 : f32
    %cst_375 = arith.constant 0.000000e+00 : f32
    %997 = vector.broadcast %cst_374 : f32 to vector<8x128xf32>
    %998 = vector.broadcast %cst_375 : f32 to vector<8x128xf32>
    %999 = arith.select %996, %997, %998 : vector<8x128xi1>, vector<8x128xf32>
    %cst_376 = arith.constant 8.500000e-01 : f32
    %1000 = vector.broadcast %cst_376 : f32 to vector<8x128xf32>
    %1001 = arith.mulf %1000, %989 : vector<8x128xf32>
    %1002 = arith.addf %1001, %994 : vector<8x128xf32>
    %1003 = arith.subf %1002, %999 : vector<8x128xf32>
    %cst_377 = arith.constant 1.000000e+00 : f32
    %1004 = vector.broadcast %cst_377 : f32 to vector<8x128xf32>
    %1005 = arith.cmpf ogt, %1003, %1004 : vector<8x128xf32>
    %1006 = arith.extui %1005 : vector<8x128xi1> to vector<8x128xi32>
    %1007 = arith.sitofp %1006 : vector<8x128xi32> to vector<8x128xf32>
    %1008 = vector.extract_strided_slice %698 {offsets = [176, 0], sizes = [8, 128], strides = [1, 1]} : vector<200x128xf32> to vector<8x128xf32>
    %cst_378 = arith.constant 1.000000e+00 : f32
    %1009 = vector.broadcast %cst_378 : f32 to vector<8x128xf32>
    %1010 = arith.cmpf ogt, %1003, %1009 : vector<8x128xf32>
    %cst_379 = arith.constant 1.000000e+00 : f32
    %cst_380 = arith.constant 0.000000e+00 : f32
    %1011 = vector.broadcast %cst_379 : f32 to vector<8x128xf32>
    %1012 = vector.broadcast %cst_380 : f32 to vector<8x128xf32>
    %1013 = arith.select %1010, %1011, %1012 : vector<8x128xi1>, vector<8x128xf32>
    %cst_381 = arith.constant 8.500000e-01 : f32
    %1014 = vector.broadcast %cst_381 : f32 to vector<8x128xf32>
    %1015 = arith.mulf %1014, %1003 : vector<8x128xf32>
    %1016 = arith.addf %1015, %1008 : vector<8x128xf32>
    %1017 = arith.subf %1016, %1013 : vector<8x128xf32>
    %cst_382 = arith.constant 1.000000e+00 : f32
    %1018 = vector.broadcast %cst_382 : f32 to vector<8x128xf32>
    %1019 = arith.cmpf ogt, %1017, %1018 : vector<8x128xf32>
    %1020 = arith.extui %1019 : vector<8x128xi1> to vector<8x128xi32>
    %1021 = arith.sitofp %1020 : vector<8x128xi32> to vector<8x128xf32>
    %1022 = vector.extract_strided_slice %698 {offsets = [184, 0], sizes = [8, 128], strides = [1, 1]} : vector<200x128xf32> to vector<8x128xf32>
    %cst_383 = arith.constant 1.000000e+00 : f32
    %1023 = vector.broadcast %cst_383 : f32 to vector<8x128xf32>
    %1024 = arith.cmpf ogt, %1017, %1023 : vector<8x128xf32>
    %cst_384 = arith.constant 1.000000e+00 : f32
    %cst_385 = arith.constant 0.000000e+00 : f32
    %1025 = vector.broadcast %cst_384 : f32 to vector<8x128xf32>
    %1026 = vector.broadcast %cst_385 : f32 to vector<8x128xf32>
    %1027 = arith.select %1024, %1025, %1026 : vector<8x128xi1>, vector<8x128xf32>
    %cst_386 = arith.constant 8.500000e-01 : f32
    %1028 = vector.broadcast %cst_386 : f32 to vector<8x128xf32>
    %1029 = arith.mulf %1028, %1017 : vector<8x128xf32>
    %1030 = arith.addf %1029, %1022 : vector<8x128xf32>
    %1031 = arith.subf %1030, %1027 : vector<8x128xf32>
    %cst_387 = arith.constant 1.000000e+00 : f32
    %1032 = vector.broadcast %cst_387 : f32 to vector<8x128xf32>
    %1033 = arith.cmpf ogt, %1031, %1032 : vector<8x128xf32>
    %1034 = arith.extui %1033 : vector<8x128xi1> to vector<8x128xi32>
    %1035 = arith.sitofp %1034 : vector<8x128xi32> to vector<8x128xf32>
    %1036 = vector.extract_strided_slice %698 {offsets = [192, 0], sizes = [8, 128], strides = [1, 1]} : vector<200x128xf32> to vector<8x128xf32>
    %cst_388 = arith.constant 1.000000e+00 : f32
    %1037 = vector.broadcast %cst_388 : f32 to vector<8x128xf32>
    %1038 = arith.cmpf ogt, %1031, %1037 : vector<8x128xf32>
    %cst_389 = arith.constant 1.000000e+00 : f32
    %cst_390 = arith.constant 0.000000e+00 : f32
    %1039 = vector.broadcast %cst_389 : f32 to vector<8x128xf32>
    %1040 = vector.broadcast %cst_390 : f32 to vector<8x128xf32>
    %1041 = arith.select %1038, %1039, %1040 : vector<8x128xi1>, vector<8x128xf32>
    %cst_391 = arith.constant 8.500000e-01 : f32
    %1042 = vector.broadcast %cst_391 : f32 to vector<8x128xf32>
    %1043 = arith.mulf %1042, %1031 : vector<8x128xf32>
    %1044 = arith.addf %1043, %1036 : vector<8x128xf32>
    %1045 = arith.subf %1044, %1041 : vector<8x128xf32>
    %cst_392 = arith.constant 1.000000e+00 : f32
    %1046 = vector.broadcast %cst_392 : f32 to vector<8x128xf32>
    %1047 = arith.cmpf ogt, %1045, %1046 : vector<8x128xf32>
    %1048 = arith.extui %1047 : vector<8x128xi1> to vector<8x128xi32>
    %1049 = arith.sitofp %1048 : vector<8x128xi32> to vector<8x128xf32>
    %1050 = tpu.concatenate %713, %727, %741, %755, %769, %783, %797, %811, %825, %839, %853, %867, %881, %895, %909, %923 in 0 : vector<8x128xf32>, vector<8x128xf32>, vector<8x128xf32>, vector<8x128xf32>, vector<8x128xf32>, vector<8x128xf32>, vector<8x128xf32>, vector<8x128xf32>, vector<8x128xf32>, vector<8x128xf32>, vector<8x128xf32>, vector<8x128xf32>, vector<8x128xf32>, vector<8x128xf32>, vector<8x128xf32>, vector<8x128xf32> -> vector<128x128xf32>
    %1051 = tpu.concatenate %937, %951, %965, %979, %993, %1007, %1021, %1035, %1049 in 0 : vector<8x128xf32>, vector<8x128xf32>, vector<8x128xf32>, vector<8x128xf32>, vector<8x128xf32>, vector<8x128xf32>, vector<8x128xf32>, vector<8x128xf32>, vector<8x128xf32> -> vector<72x128xf32>
    %1052 = tpu.concatenate %1050, %1051 in 0 : vector<128x128xf32>, vector<72x128xf32> -> vector<200x128xf32>
    %1053 = vector.shape_cast %1052 : vector<200x128xf32> to vector<25x8x128xf32>
    %c0_393 = arith.constant 0 : index
    %c0_394 = arith.constant 0 : index
    %c0_395 = arith.constant 0 : index
    %1054 = vector.load %arg8[%c0_393, %c0_394, %c0_395] : memref<25x8x128xf32, #tpu.memory_space<vmem>>, vector<25x8x128xf32>
    tpu.vector_store %arg8[%c0_393, %c0_394, %c0_395], %1053 {strides = array<i32>} : memref<25x8x128xf32, #tpu.memory_space<vmem>>, vector<25x8x128xf32>,
    %1055 = tpu.concatenate %709, %723, %737, %751, %765, %779, %793, %807, %821, %835, %849, %863, %877, %891, %905, %919 in 0 : vector<8x128xf32>, vector<8x128xf32>, vector<8x128xf32>, vector<8x128xf32>, vector<8x128xf32>, vector<8x128xf32>, vector<8x128xf32>, vector<8x128xf32>, vector<8x128xf32>, vector<8x128xf32>, vector<8x128xf32>, vector<8x128xf32>, vector<8x128xf32>, vector<8x128xf32>, vector<8x128xf32>, vector<8x128xf32> -> vector<128x128xf32>
    %1056 = tpu.concatenate %933, %947, %961, %975, %989, %1003, %1017, %1031, %1045 in 0 : vector<8x128xf32>, vector<8x128xf32>, vector<8x128xf32>, vector<8x128xf32>, vector<8x128xf32>, vector<8x128xf32>, vector<8x128xf32>, vector<8x128xf32>, vector<8x128xf32> -> vector<72x128xf32>
    %1057 = tpu.concatenate %1055, %1056 in 0 : vector<128x128xf32>, vector<72x128xf32> -> vector<200x128xf32>
    %1058 = vector.shape_cast %1057 : vector<200x128xf32> to vector<25x8x128xf32>
    %c0_396 = arith.constant 0 : index
    %c0_397 = arith.constant 0 : index
    %c0_398 = arith.constant 0 : index
    %1059 = vector.load %arg9[%c0_396, %c0_397, %c0_398] : memref<25x8x128xf32, #tpu.memory_space<vmem>>, vector<25x8x128xf32>
    tpu.vector_store %arg9[%c0_396, %c0_397, %c0_398], %1058 {strides = array<i32>} : memref<25x8x128xf32, #tpu.memory_space<vmem>>, vector<25x8x128xf32>,
    return
  }
  func.func @transform_0(%arg0: i32) -> (i32, i32) {
    %c0_i32 = arith.constant 0 : i32
    %c0_i32_0 = arith.constant 0 : i32
    %c0_i32_1 = arith.constant 0 : i32
    return %c0_i32, %c0_i32_0 : i32, i32
  }
  func.func @transform_1(%arg0: i32) -> (i32, i32) {
    %c0_i32 = arith.constant 0 : i32
    %c0_i32_0 = arith.constant 0 : i32
    %c0_i32_1 = arith.constant 0 : i32
    return %c0_i32, %c0_i32_0 : i32, i32
  }
  func.func @transform_2(%arg0: i32) -> (i32, i32) {
    %c0_i32 = arith.constant 0 : i32
    %c0_i32_0 = arith.constant 0 : i32
    %c0_i32_1 = arith.constant 0 : i32
    return %c0_i32, %c0_i32_0 : i32, i32
  }
  func.func @transform_3(%arg0: i32) -> (i32, i32) {
    %c0_i32 = arith.constant 0 : i32
    %c0_i32_0 = arith.constant 0 : i32
    %c0_i32_1 = arith.constant 0 : i32
    return %c0_i32, %c0_i32_0 : i32, i32
  }
  func.func @transform_4(%arg0: i32) -> (i32, i32) {
    %c0_i32 = arith.constant 0 : i32
    %c0_i32_0 = arith.constant 0 : i32
    %c0_i32_1 = arith.constant 0 : i32
    return %c0_i32, %c0_i32_0 : i32, i32
  }
  func.func @transform_5(%arg0: i32) -> (i32, i32) {
    %c0_i32 = arith.constant 0 : i32
    %c0_i32_0 = arith.constant 0 : i32
    %c0_i32_1 = arith.constant 0 : i32
    return %c0_i32, %c0_i32_0 : i32, i32
  }
  func.func @transform_6(%arg0: i32) -> (i32, i32) {
    %c0_i32 = arith.constant 0 : i32
    %c0_i32_0 = arith.constant 0 : i32
    %c0_i32_1 = arith.constant 0 : i32
    return %c0_i32, %c0_i32_0 : i32, i32
  }
  func.func @transform_7(%arg0: i32) -> (i32, i32, i32) {
    %c0_i32 = arith.constant 0 : i32
    %c0_i32_0 = arith.constant 0 : i32
    %c0_i32_1 = arith.constant 0 : i32
    %c0_i32_2 = arith.constant 0 : i32
    return %c0_i32, %c0_i32_0, %c0_i32_1 : i32, i32, i32
  }
  func.func @transform_8(%arg0: i32) -> (i32, i32, i32) {
    %c0_i32 = arith.constant 0 : i32
    %c0_i32_0 = arith.constant 0 : i32
    %c0_i32_1 = arith.constant 0 : i32
    %c0_i32_2 = arith.constant 0 : i32
    return %c0_i32, %c0_i32_0, %c0_i32_1 : i32, i32, i32
  }
}

</mosaic_0001>

<bundles_post_ra>
// kernel: spiked_dqn_forward.1
= control target key start
LH: loop header
LB: loop body
LE: loop exit
PB: predicated region body
PF: predicated region fallthrough
CT: control target
= control target key end

     0   :  { %14 = vsyncpa [#allocation3], 0  ;;  %s2278_s0 = inlined_call_operand.hbm [shape: f32[8,16], index: 0, kind: input, shape index: {}]   ;;  %s2279_s1 = inlined_call_operand.hbm [shape: f32[16,128], index: 1, kind: input, shape index: {}]   ;;  %s2280_s2 = inlined_call_operand.vmem [shape: f32[1,128], index: 2, kind: input, shape index: {}]   ;;  %s2281_s3 = inlined_call_operand.hbm [shape: f32[128,128], index: 3, kind: input, shape index: {}]   ;;  %s2282_s4 = inlined_call_operand.vmem [shape: f32[1,128], index: 4, kind: input, shape index: {}]   ;;  %s2283_s5 = inlined_call_operand.hbm [shape: f32[128,128], index: 5, kind: input, shape index: {}]   ;;  %s2284_s6 = inlined_call_operand.vmem [shape: f32[1,128], index: 6, kind: input, shape index: {}]   ;;  %s2285_s7 = inlined_call_operand.vmem [shape: f32[25,8,128], index: 7, kind: output, shape index: {0}]   ;;  %s2286_s8 = inlined_call_operand.vmem [shape: f32[25,8,128], index: 8, kind: output, shape index: {1}]  }
   0x1   :  { %15 = vsyncpa [#allocation5], 0 }
   0x2   :  { %16 = vsyncpa [#allocation8], 0  ;;  %s1703_s27 = smov [#allocation4]  }
   0x3   :  { %s32_s28 = sshll.u32 %s1703_s27, 4  ;;  %s33_s28 = int_to_ptr.vmem [resolvable:$true] %s32_s28 }
   0x4   :  { %s1625_s29 = scalar_lea.vmem %s33_s28, 256  ;;  %p1630_p1 = scmp.lt.s32.totalorder %s33_s28, %s33_s28 }
   0x5   :  { %p1626_p0 = scmp.ne.s32.totalorder %s33_s28, %s1625_s29  ;;  %p1631_p2 = scmp.lt.s32.totalorder %s1625_s29, %s1625_s29 }
   0x7   :  { %p1632_p3 = por %p1631_p2, %p1630_p1 }
   0x9   :  { %p1633_p4 = pnand %p1632_p3, %p1626_p0 }
   0xb   :  { %1636 = shalt.err (!%p1633_p4)
}
   0xc   :  { %s1704_s30 = smov 128   ;;  %s1705_s9 = smov 8  }
   0xd   :  { %38 = dma.hbm_to_vmem [thread:$0]  %s2279_s1, 256, %s33_s28, [#allocation5], %s1704_s30, %s1704_s30, %s1705_s9  }
   0xe   :  { %s1706_s12 = smov [#allocation2]   ;;  %s1707_s14 = smov [#allocation6]  }
   0xf   :  { %s23_s13 = sshll.u32 %s1706_s12, 4  ;;  %s46_s15 = sshll.u32 %s1707_s14, 4  ;;  %s24_s13 = int_to_ptr.vmem [resolvable:$true] %s23_s13  ;;  %s47_s15 = int_to_ptr.vmem [resolvable:$true] %s46_s15 }
  0x10   :  { %s1645_s16 = scalar_lea.vmem %s24_s13, 128  ;;  %p1650_p6 = scmp.lt.s32.totalorder %s24_s13, %s24_s13 }
  0x11   :  { %p1646_p5 = scmp.ne.s32.totalorder %s24_s13, %s1645_s16  ;;  %p1651_p7 = scmp.lt.s32.totalorder %s1645_s16, %s1645_s16 }
  0x13   :  { %p1652_p8 = por %p1651_p7, %p1650_p6 }
  0x15   :  { %p1653_p9 = pnand %p1652_p8, %p1646_p5 }
  0x17   :  { %1656 = shalt.err (!%p1653_p9)
}
  0x18   :  { %26 = dma.hbm_to_vmem [thread:$0]  %s2278_s0, 128, %s24_s13, [#allocation3]  }
  0x19   :  { %s1665_s19 = scalar_lea.vmem %s47_s15, 2048  ;;  %p1670_p11 = scmp.lt.s32.totalorder %s47_s15, %s47_s15 }
  0x1a   :  { %p1666_p10 = scmp.ne.s32.totalorder %s47_s15, %s1665_s19  ;;  %p1671_p12 = scmp.lt.s32.totalorder %s1665_s19, %s1665_s19 }
  0x1c   :  { %p1672_p13 = por %p1671_p12, %p1670_p11 }
  0x1e   :  { %p1673_p0 = pnand %p1672_p13, %p1666_p10 }
  0x20   :  { %1676 = shalt.err (!%p1673_p0)
}
  0x21   :  { %52 = dma.hbm_to_vmem [thread:$0]  %s2281_s3, 2048, %s47_s15, [#allocation5], %s1704_s30, %s1704_s30, %s1705_s9  }
  0x22   :  { %s1708_s21 = smov [#allocation7]  }
  0x23   :  { %s60_s22 = sshll.u32 %s1708_s21, 4  ;;  %s61_s22 = int_to_ptr.vmem [resolvable:$true] %s60_s22 }
  0x24   :  { %s1685_s23 = scalar_lea.vmem %s61_s22, 2048  ;;  %p1690_p2 = scmp.lt.s32.totalorder %s61_s22, %s61_s22 }
  0x25   :  { %p1686_p1 = scmp.ne.s32.totalorder %s61_s22, %s1685_s23  ;;  %p1691_p3 = scmp.lt.s32.totalorder %s1685_s23, %s1685_s23 }
  0x27   :  { %p1692_p4 = por %p1691_p3, %p1690_p2 }
  0x29   :  { %p1693_p5 = pnand %p1692_p4, %p1686_p1 }
  0x2b   :  { %1696 = shalt.err (!%p1693_p5)
}
  0x2c   :  { %66 = dma.hbm_to_vmem [thread:$0]  %s2283_s5, 2048, %s61_s22, [#allocation8], %s1704_s30, %s1704_s30, %s1705_s9  }
  0x2d   :  { %1697 = dma.done.wait [#allocation3], 128  }
  0x2e   :  { %1698 = vsyncadd [#allocation3], 4294967168 }
  0x2f   :  { %1699 = dma.done.wait [#allocation5], 2304  }
  0x30   :  { %1700 = vsyncadd [#allocation5], 4294964992 }
  0x31   :  { %1701 = dma.done.wait [#allocation8], 2048  }
  0x32   :  { %1702 = vsyncadd [#allocation8], 4294965248  ;;  %v1709_v0 = vmov 0.0   ;;  %vm1710_vm0 = vmmov 0   ;;  %v83_v1 = vld [vmem:[#allocation4 + $0x8] sm:$0xff]  ;;  %v82_v2 = vld [vmem:[#allocation4] sm:$0xff] }
  0x33   :  { %1387 = vmatprep.subr.mxu0 %v1709_v0  ;;  %1391 = vmatprep.mubr.msk.f32.mxu0 %vm1710_vm0, %v1709_v0  ;;  %v81_v3 = vld [vmem:[#allocation2] sm:$0xff]  ;;  %vm91_vm1 = vcmask 130048   ;;  %v355_v4 = vld [vmem:[#allocation6 + $0x78] sm:$0xff]  ;;  %v354_v5 = vld [vmem:[#allocation6 + $0x70] sm:$0xff]  ;;  %v1711_v25 = vmov 1.0  }
  0x34   :  { %1394 = vmatprep.subr.mxu1 %v1709_v0  ;;  %1426 = vmatprep.mubr.msk.f32.mxu1 %vm1710_vm0, %v1709_v0  ;;  %v353_v6 = vld [vmem:[#allocation6 + $0x68] sm:$0xff]  ;;  %v352_v7 = vld [vmem:[#allocation6 + $0x60] sm:$0xff]  ;;  %v351_v8 = vld [vmem:[#allocation6 + $0x58] sm:$0xff] }
  0x35   :  { %1388 = vmatpush3.msra.mxu0 %v83_v1  ;;  %1395 = vmatpush3.msra.mxu1 %v355_v4  ;;  %v350_v9 = vld [vmem:[#allocation6 + $0x50] sm:$0xff]  ;;  %v349_v10 = vld [vmem:[#allocation6 + $0x48] sm:$0xff]  ;;  %v348_v11 = vld [vmem:[#allocation6 + $0x40] sm:$0xff] }
  0x36   :  { %1389 = vmatprep.subr.mxu0 %v1709_v0  ;;  %1396 = vmatprep.subr.mxu1 %v1709_v0  ;;  %v347_v12 = vld [vmem:[#allocation6 + $0x38] sm:$0xff]  ;;  %v346_v13 = vld [vmem:[#allocation6 + $0x30] sm:$0xff]  ;;  %v345_v14 = vld [vmem:[#allocation6 + $0x28] sm:$0xff] }
  0x37   :  { %1390 = vmatpush3.msra.mxu0 %v82_v2  ;;  %1397 = vmatpush3.msra.mxu1 %v354_v5  ;;  %v344_v15 = vld [vmem:[#allocation6 + $0x20] sm:$0xff]  ;;  %v343_v16 = vld [vmem:[#allocation6 + $0x18] sm:$0xff]  ;;  %v342_v17 = vld [vmem:[#allocation6 + $0x10] sm:$0xff] }
  0x38   :  { %1392 = vmatmul.mubr.msk.f32.vlgmr.msra.gmra.mxu0 %vm91_vm1, %v81_v3  ;;  %1398 = vmatprep.subr.mxu1 %v1709_v0  ;;  %v341_v18 = vld [vmem:[#allocation6 + $0x8] sm:$0xff]  ;;  %v340_v19 = vld [vmem:[#allocation6] sm:$0xff]  ;;  %v741_v37 = vld [vmem:[#allocation7 + $0x78] sm:$0xff] }
  0x39   :  { %1501 = vmatprep.subr.mxu0 %v1709_v0  ;;  %1399 = vmatpush3.msra.mxu1 %v353_v6  ;;  %v1173_v20 = vld [vmem:[%s2280_s2] ss:$0 sm:$0xff]  ;;  %v740_v38 = vld [vmem:[#allocation7 + $0x70] sm:$0xff]  ;;  %v738_v43 = vld [vmem:[#allocation7 + $0x60] sm:$0xff] }
  0x3a   :  { %1533 = vmatprep.mubr.msk.f32.mxu0 %vm1710_vm0, %v1709_v0  ;;  %1400 = vmatprep.subr.mxu1 %v1709_v0  ;;  %v739_v40 = vld [vmem:[#allocation7 + $0x68] sm:$0xff]  ;;  %v737_v45 = vld [vmem:[#allocation7 + $0x58] sm:$0xff]  ;;  %v736_v47 = vld [vmem:[#allocation7 + $0x50] sm:$0xff] }
  0x3b   :  { %1401 = vmatpush3.msra.mxu1 %v352_v7  ;;  %1502 = vmatpush3.msra.mxu0 %v741_v37  ;;  %v735_v50 = vld [vmem:[#allocation7 + $0x48] sm:$0xff]  ;;  %v734_v52 = vld [vmem:[#allocation7 + $0x40] sm:$0xff]  ;;  %v733_v54 = vld [vmem:[#allocation7 + $0x38] sm:$0xff] }
  0x3c   :  { %1402 = vmatprep.subr.mxu1 %v1709_v0  ;;  %1503 = vmatprep.subr.mxu0 %v1709_v0  ;;  %v732_v57 = vld [vmem:[#allocation7 + $0x30] sm:$0xff]  ;;  %v731_v59 = vld [vmem:[#allocation7 + $0x28] sm:$0xff]  ;;  %v730_v61 = vld [vmem:[#allocation7 + $0x20] sm:$0xff] }
  0x3d   :  { %1403 = vmatpush3.msra.mxu1 %v351_v8  ;;  %1504 = vmatpush3.msra.mxu0 %v740_v38  ;;  %v729_v1 = vld [vmem:[#allocation7 + $0x18] sm:$0xff]  ;;  %v728_v3 = vld [vmem:[#allocation7 + $0x10] sm:$0xff] }
  0x3e   :  { %1404 = vmatprep.subr.mxu1 %v1709_v0  ;;  %1505 = vmatprep.subr.mxu0 %v1709_v0 }
  0x3f   :  { %1405 = vmatpush3.msra.mxu1 %v350_v9  ;;  %1506 = vmatpush3.msra.mxu0 %v739_v40 }
  0x40   :  { %1406 = vmatprep.subr.mxu1 %v1709_v0  ;;  %1507 = vmatprep.subr.mxu0 %v1709_v0 }
  0x41   :  { %1407 = vmatpush3.msra.mxu1 %v349_v10  ;;  %1508 = vmatpush3.msra.mxu0 %v738_v43 }
  0x42   :  { %1408 = vmatprep.subr.mxu1 %v1709_v0  ;;  %1509 = vmatprep.subr.mxu0 %v1709_v0 }
  0x43   :  { %1409 = vmatpush3.msra.mxu1 %v348_v11  ;;  %1510 = vmatpush3.msra.mxu0 %v737_v45 }
  0x44   :  { %1410 = vmatprep.subr.mxu1 %v1709_v0  ;;  %1511 = vmatprep.subr.mxu0 %v1709_v0 }
  0x45   :  { %1411 = vmatpush3.msra.mxu1 %v347_v12  ;;  %1512 = vmatpush3.msra.mxu0 %v736_v47 }
  0x46   :  { %1412 = vmatprep.subr.mxu1 %v1709_v0  ;;  %1513 = vmatprep.subr.mxu0 %v1709_v0 }
  0x47   :  { %1413 = vmatpush3.msra.mxu1 %v346_v13  ;;  %1514 = vmatpush3.msra.mxu0 %v735_v50 }
  0x48   :  { %1414 = vmatprep.subr.mxu1 %v1709_v0  ;;  %1515 = vmatprep.subr.mxu0 %v1709_v0 }
  0x49   :  { %1415 = vmatpush3.msra.mxu1 %v345_v14  ;;  %1516 = vmatpush3.msra.mxu0 %v734_v52 }
  0x4a   :  { %1416 = vmatprep.subr.mxu1 %v1709_v0  ;;  %1517 = vmatprep.subr.mxu0 %v1709_v0 }
  0x4b   :  { %1417 = vmatpush3.msra.mxu1 %v344_v15  ;;  %1518 = vmatpush3.msra.mxu0 %v733_v54 }
  0x4c   :  { %1418 = vmatprep.subr.mxu1 %v1709_v0  ;;  %1519 = vmatprep.subr.mxu0 %v1709_v0 }
  0x4d   :  { %1419 = vmatpush3.msra.mxu1 %v343_v16  ;;  %1520 = vmatpush3.msra.mxu0 %v732_v57 }
  0x4e   :  { %1420 = vmatprep.subr.mxu1 %v1709_v0  ;;  %1521 = vmatprep.subr.mxu0 %v1709_v0 }
  0x4f   :  { %1421 = vmatpush3.msra.mxu1 %v342_v17  ;;  %1522 = vmatpush3.msra.mxu0 %v731_v59 }
  0x50   :  { %1422 = vmatprep.subr.mxu1 %v1709_v0  ;;  %1523 = vmatprep.subr.mxu0 %v1709_v0 }
  0x51   :  { %1423 = vmatpush3.msra.mxu1 %v341_v18  ;;  %1524 = vmatpush3.msra.mxu0 %v730_v61 }
  0x52   :  { %1424 = vmatprep.subr.mxu1 %v1709_v0  ;;  %1525 = vmatprep.subr.mxu0 %v1709_v0 }
  0x53   :  { %1425 = vmatpush3.msra.mxu1 %v340_v19  ;;  %1526 = vmatpush3.msra.mxu0 %v729_v1 }
  0x54   :  { %1527 = vmatprep.subr.mxu0 %v1709_v0 }
  0x55   :  { %1528 = vmatpush3.msra.mxu0 %v728_v3 }
  0x56   :  { %1529 = vmatprep.subr.mxu0 %v1709_v0 }
  0xf8   :  { %v161_v21 = vpop.f32.mrf.mxu0 }
  0xf9   :  { %v1806_v22 = vadd.f32 %v1173_v20, %v161_v21  ;;  %v727_v20 = vld [vmem:[#allocation7 + $0x8] sm:$0xff] }
  0xfa   :  { %v1393_v23 = vpop.f32.mrf.mxu0  ;;  %1530 = vmatpush3.msra.mxu0 %v727_v20 }
  0xfb   :  { %vm169_vm2 = vcmp.gt.f32.partialorder %v1806_v22, 1.0  ;;  %v173_v24 = vmul.f32 0.85, %v1806_v22  ;;  %1531 = vmatprep.subr.mxu0 %v1709_v0  ;;  %v726_v23 = vld [vmem:[#allocation7] sm:$0xff] }
  0xfc   :  { %1427 = vmatmul.mubr.msk.f32.vlgmr.msra.gmra.mxu1 %vm169_vm2, %v1711_v25  ;;  %v172_v27 = vsel %vm169_vm2, 1.0, %v1709_v0  ;;  %1532 = vmatpush3.msra.mxu0 %v726_v23 }
  0xfd   :  { %1429 = vmatprep.mubr.msk.f32.mxu1 %vm1710_vm0, %v1709_v0  ;;  %v174_v26 = vadd.f32 %v173_v24, %v1806_v22 }
  0xff   :  { %v175_v28 = vsub.f32 %v174_v26, %v172_v27 }
 0x101   :  { %vm176_vm3 = vcmp.gt.f32.partialorder %v175_v28, 1.0  ;;  %v180_v29 = vmul.f32 0.85, %v175_v28 }
 0x102   :  { %1430 = vmatmul.mubr.msk.f32.gmra.mxu1 %vm176_vm3, %v1711_v25  ;;  %v179_v31 = vsel %vm176_vm3, 1.0, %v1709_v0 }
 0x103   :  { %1432 = vmatprep.mubr.msk.f32.mxu1 %vm1710_vm0, %v1709_v0  ;;  %v181_v30 = vadd.f32 %v180_v29, %v1806_v22 }
 0x105   :  { %v182_v32 = vsub.f32 %v181_v30, %v179_v31 }
 0x107   :  { %vm183_vm4 = vcmp.gt.f32.partialorder %v182_v32, 1.0  ;;  %v187_v33 = vmul.f32 0.85, %v182_v32 }
 0x108   :  { %1433 = vmatmul.mubr.msk.f32.gmra.mxu1 %vm183_vm4, %v1711_v25  ;;  %v186_v35 = vsel %vm183_vm4, 1.0, %v1709_v0 }
 0x109   :  { %1435 = vmatprep.mubr.msk.f32.mxu1 %vm1710_vm0, %v1709_v0  ;;  %v188_v34 = vadd.f32 %v187_v33, %v1806_v22 }
 0x10b   :  { %v189_v36 = vsub.f32 %v188_v34, %v186_v35 }
 0x10d   :  { %vm190_vm5 = vcmp.gt.f32.partialorder %v189_v36, 1.0  ;;  %v194_v39 = vmul.f32 0.85, %v189_v36 }
 0x10e   :  { %1436 = vmatmul.mubr.msk.f32.gmra.mxu1 %vm190_vm5, %v1711_v25  ;;  %v193_v42 = vsel %vm190_vm5, 1.0, %v1709_v0 }
 0x10f   :  { %1438 = vmatprep.mubr.msk.f32.mxu1 %vm1710_vm0, %v1709_v0  ;;  %v195_v41 = vadd.f32 %v194_v39, %v1806_v22 }
 0x111   :  { %v196_v44 = vsub.f32 %v195_v41, %v193_v42 }
 0x113   :  { %vm197_vm6 = vcmp.gt.f32.partialorder %v196_v44, 1.0  ;;  %v201_v46 = vmul.f32 0.85, %v196_v44 }
 0x114   :  { %1439 = vmatmul.mubr.msk.f32.gmra.mxu1 %vm197_vm6, %v1711_v25  ;;  %v200_v49 = vsel %vm197_vm6, 1.0, %v1709_v0 }
 0x115   :  { %1441 = vmatprep.mubr.msk.f32.mxu1 %vm1710_vm0, %v1709_v0  ;;  %v202_v48 = vadd.f32 %v201_v46, %v1806_v22 }
 0x117   :  { %v203_v51 = vsub.f32 %v202_v48, %v200_v49 }
 0x119   :  { %vm204_vm7 = vcmp.gt.f32.partialorder %v203_v51, 1.0  ;;  %v208_v53 = vmul.f32 0.85, %v203_v51 }
 0x11a   :  { %1442 = vmatmul.mubr.msk.f32.gmra.mxu1 %vm204_vm7, %v1711_v25  ;;  %v207_v56 = vsel %vm204_vm7, 1.0, %v1709_v0 }
 0x11b   :  { %1444 = vmatprep.mubr.msk.f32.mxu1 %vm1710_vm0, %v1709_v0  ;;  %v209_v55 = vadd.f32 %v208_v53, %v1806_v22 }
 0x11d   :  { %v210_v58 = vsub.f32 %v209_v55, %v207_v56 }
 0x11f   :  { %vm211_vm8 = vcmp.gt.f32.partialorder %v210_v58, 1.0  ;;  %v215_v60 = vmul.f32 0.85, %v210_v58 }
 0x120   :  { %1445 = vmatmul.mubr.msk.f32.gmra.mxu1 %vm211_vm8, %v1711_v25  ;;  %v214_v63 = vsel %vm211_vm8, 1.0, %v1709_v0 }
 0x121   :  { %1447 = vmatprep.mubr.msk.f32.mxu1 %vm1710_vm0, %v1709_v0  ;;  %v216_v62 = vadd.f32 %v215_v60, %v1806_v22 }
 0x123   :  { %v217_v2 = vsub.f32 %v216_v62, %v214_v63 }
 0x125   :  { %vm218_vm9 = vcmp.gt.f32.partialorder %v217_v2, 1.0  ;;  %v222_v4 = vmul.f32 0.85, %v217_v2 }
 0x126   :  { %1448 = vmatmul.mubr.msk.f32.gmra.mxu1 %vm218_vm9, %v1711_v25  ;;  %v221_v6 = vsel %vm218_vm9, 1.0, %v1709_v0 }
 0x127   :  { %1450 = vmatprep.mubr.msk.f32.mxu1 %vm1710_vm0, %v1709_v0  ;;  %v223_v5 = vadd.f32 %v222_v4, %v1806_v22 }
 0x129   :  { %v224_v7 = vsub.f32 %v223_v5, %v221_v6 }
 0x12b   :  { %vm225_vm10 = vcmp.gt.f32.partialorder %v224_v7, 1.0  ;;  %v229_v8 = vmul.f32 0.85, %v224_v7 }
 0x12c   :  { %1451 = vmatmul.mubr.msk.f32.gmra.mxu1 %vm225_vm10, %v1711_v25  ;;  %v228_v10 = vsel %vm225_vm10, 1.0, %v1709_v0 }
 0x12d   :  { %1453 = vmatprep.mubr.msk.f32.mxu1 %vm1710_vm0, %v1709_v0  ;;  %v230_v9 = vadd.f32 %v229_v8, %v1806_v22 }
 0x12f   :  { %v231_v11 = vsub.f32 %v230_v9, %v228_v10 }
 0x131   :  { %vm232_vm11 = vcmp.gt.f32.partialorder %v231_v11, 1.0  ;;  %v236_v12 = vmul.f32 0.85, %v231_v11 }
 0x132   :  { %1454 = vmatmul.mubr.msk.f32.gmra.mxu1 %vm232_vm11, %v1711_v25  ;;  %v235_v14 = vsel %vm232_vm11, 1.0, %v1709_v0 }
 0x133   :  { %1456 = vmatprep.mubr.msk.f32.mxu1 %vm1710_vm0, %v1709_v0  ;;  %v237_v13 = vadd.f32 %v236_v12, %v1806_v22 }
 0x135   :  { %v238_v15 = vsub.f32 %v237_v13, %v235_v14  ;;  %v1949_v13 = vld [vmem:[%s2282_s4] ss:$0 sm:$0xff] }
 0x137   :  { %vm239_vm12 = vcmp.gt.f32.partialorder %v238_v15, 1.0  ;;  %v243_v16 = vmul.f32 0.85, %v238_v15 }
 0x138   :  { %1457 = vmatmul.mubr.msk.f32.gmra.mxu1 %vm239_vm12, %v1711_v25  ;;  %v242_v18 = vsel %vm239_vm12, 1.0, %v1709_v0 }
 0x139   :  { %1459 = vmatprep.mubr.msk.f32.mxu1 %vm1710_vm0, %v1709_v0  ;;  %v244_v17 = vadd.f32 %v243_v16, %v1806_v22 }
 0x13b   :  { %v245_v19 = vsub.f32 %v244_v17, %v242_v18 }
 0x13d   :  { %vm246_vm13 = vcmp.gt.f32.partialorder %v245_v19, 1.0  ;;  %v250_v21 = vmul.f32 0.85, %v245_v19 }
 0x13e   :  { %1460 = vmatmul.mubr.msk.f32.gmra.mxu1 %vm246_vm13, %v1711_v25  ;;  %v249_v26 = vsel %vm246_vm13, 1.0, %v1709_v0 }
 0x13f   :  { %1462 = vmatprep.mubr.msk.f32.mxu1 %vm1710_vm0, %v1709_v0  ;;  %v251_v24 = vadd.f32 %v250_v21, %v1806_v22 }
 0x141   :  { %v252_v27 = vsub.f32 %v251_v24, %v249_v26 }
 0x143   :  { %vm253_vm14 = vcmp.gt.f32.partialorder %v252_v27, 1.0  ;;  %v257_v28 = vmul.f32 0.85, %v252_v27 }
 0x144   :  { %1463 = vmatmul.mubr.msk.f32.gmra.mxu1 %vm253_vm14, %v1711_v25  ;;  %v256_v30 = vsel %vm253_vm14, 1.0, %v1709_v0 }
 0x145   :  { %1465 = vmatprep.mubr.msk.f32.mxu1 %vm1710_vm0, %v1709_v0  ;;  %v258_v29 = vadd.f32 %v257_v28, %v1806_v22 }
 0x147   :  { %v259_v31 = vsub.f32 %v258_v29, %v256_v30 }
 0x149   :  { %vm260_vm15 = vcmp.gt.f32.partialorder %v259_v31, 1.0  ;;  %v264_v32 = vmul.f32 0.85, %v259_v31 }
 0x14a   :  { %1466 = vmatmul.mubr.msk.f32.gmra.mxu1 %vm260_vm15, %v1711_v25  ;;  %v263_v34 = vsel %vm260_vm15, 1.0, %v1709_v0 }
 0x14b   :  { %1468 = vmatprep.mubr.msk.f32.mxu1 %vm1710_vm0, %v1709_v0  ;;  %v265_v33 = vadd.f32 %v264_v32, %v1806_v22 }
 0x14d   :  { %v266_v35 = vsub.f32 %v265_v33, %v263_v34 }
 0x14f   :  { %vm267_vm1 = vcmp.gt.f32.partialorder %v266_v35, 1.0  ;;  %v271_v36 = vmul.f32 0.85, %v266_v35 }
 0x150   :  { %1469 = vmatmul.mubr.msk.f32.gmra.mxu1 %vm267_vm1, %v1711_v25  ;;  %v270_v38 = vsel %vm267_vm1, 1.0, %v1709_v0 }
 0x151   :  { %1471 = vmatprep.mubr.msk.f32.mxu1 %vm1710_vm0, %v1709_v0  ;;  %v272_v37 = vadd.f32 %v271_v36, %v1806_v22 }
 0x153   :  { %v273_v39 = vsub.f32 %v272_v37, %v270_v38 }
 0x155   :  { %vm274_vm2 = vcmp.gt.f32.partialorder %v273_v39, 1.0  ;;  %v278_v40 = vmul.f32 0.85, %v273_v39 }
 0x156   :  { %1472 = vmatmul.mubr.msk.f32.gmra.mxu1 %vm274_vm2, %v1711_v25  ;;  %v277_v42 = vsel %vm274_vm2, 1.0, %v1709_v0 }
 0x157   :  { %1474 = vmatprep.mubr.msk.f32.mxu1 %vm1710_vm0, %v1709_v0  ;;  %v279_v41 = vadd.f32 %v278_v40, %v1806_v22 }
 0x159   :  { %v280_v43 = vsub.f32 %v279_v41, %v277_v42 }
 0x15b   :  { %vm281_vm3 = vcmp.gt.f32.partialorder %v280_v43, 1.0  ;;  %v285_v44 = vmul.f32 0.85, %v280_v43 }
 0x15c   :  { %1475 = vmatmul.mubr.msk.f32.gmra.mxu1 %vm281_vm3, %v1711_v25  ;;  %v284_v46 = vsel %vm281_vm3, 1.0, %v1709_v0 }
 0x15d   :  { %1477 = vmatprep.mubr.msk.f32.mxu1 %vm1710_vm0, %v1709_v0  ;;  %v286_v45 = vadd.f32 %v285_v44, %v1806_v22 }
 0x15f   :  { %v287_v47 = vsub.f32 %v286_v45, %v284_v46 }
 0x161   :  { %vm288_vm4 = vcmp.gt.f32.partialorder %v287_v47, 1.0  ;;  %v292_v48 = vmul.f32 0.85, %v287_v47 }
 0x162   :  { %1478 = vmatmul.mubr.msk.f32.gmra.mxu1 %vm288_vm4, %v1711_v25  ;;  %v291_v50 = vsel %vm288_vm4, 1.0, %v1709_v0 }
 0x163   :  { %1480 = vmatprep.mubr.msk.f32.mxu1 %vm1710_vm0, %v1709_v0  ;;  %v293_v49 = vadd.f32 %v292_v48, %v1806_v22 }
 0x165   :  { %v294_v51 = vsub.f32 %v293_v49, %v291_v50 }
 0x167   :  { %vm295_vm5 = vcmp.gt.f32.partialorder %v294_v51, 1.0  ;;  %v299_v52 = vmul.f32 0.85, %v294_v51 }
 0x168   :  { %1481 = vmatmul.mubr.msk.f32.gmra.mxu1 %vm295_vm5, %v1711_v25  ;;  %v298_v54 = vsel %vm295_vm5, 1.0, %v1709_v0 }
 0x169   :  { %1483 = vmatprep.mubr.msk.f32.mxu1 %vm1710_vm0, %v1709_v0  ;;  %v300_v53 = vadd.f32 %v299_v52, %v1806_v22 }
 0x16b   :  { %v301_v55 = vsub.f32 %v300_v53, %v298_v54 }
 0x16d   :  { %vm302_vm6 = vcmp.gt.f32.partialorder %v301_v55, 1.0  ;;  %v306_v56 = vmul.f32 0.85, %v301_v55 }
 0x16e   :  { %1484 = vmatmul.mubr.msk.f32.gmra.mxu1 %vm302_vm6, %v1711_v25  ;;  %v305_v58 = vsel %vm302_vm6, 1.0, %v1709_v0 }
 0x16f   :  { %1486 = vmatprep.mubr.msk.f32.mxu1 %vm1710_vm0, %v1709_v0  ;;  %v307_v57 = vadd.f32 %v306_v56, %v1806_v22 }
 0x171   :  { %v308_v59 = vsub.f32 %v307_v57, %v305_v58 }
 0x173   :  { %vm309_vm7 = vcmp.gt.f32.partialorder %v308_v59, 1.0  ;;  %v313_v60 = vmul.f32 0.85, %v308_v59 }
 0x174   :  { %1487 = vmatmul.mubr.msk.f32.gmra.mxu1 %vm309_vm7, %v1711_v25  ;;  %v312_v62 = vsel %vm309_vm7, 1.0, %v1709_v0 }
 0x175   :  { %1489 = vmatprep.mubr.msk.f32.mxu1 %vm1710_vm0, %v1709_v0  ;;  %v314_v61 = vadd.f32 %v313_v60, %v1806_v22 }
 0x177   :  { %v315_v63 = vsub.f32 %v314_v61, %v312_v62 }
 0x179   :  { %vm316_vm8 = vcmp.gt.f32.partialorder %v315_v63, 1.0  ;;  %v320_v1 = vmul.f32 0.85, %v315_v63 }
 0x17a   :  { %1490 = vmatmul.mubr.msk.f32.gmra.mxu1 %vm316_vm8, %v1711_v25  ;;  %v319_v3 = vsel %vm316_vm8, 1.0, %v1709_v0 }
 0x17b   :  { %1492 = vmatprep.mubr.msk.f32.mxu1 %vm1710_vm0, %v1709_v0  ;;  %v321_v2 = vadd.f32 %v320_v1, %v1806_v22 }
 0x17d   :  { %v322_v4 = vsub.f32 %v321_v2, %v319_v3 }
 0x17f   :  { %vm323_vm9 = vcmp.gt.f32.partialorder %v322_v4, 1.0  ;;  %v327_v5 = vmul.f32 0.85, %v322_v4 }
 0x180   :  { %1493 = vmatmul.mubr.msk.f32.gmra.mxu1 %vm323_vm9, %v1711_v25  ;;  %v326_v7 = vsel %vm323_vm9, 1.0, %v1709_v0 }
 0x181   :  { %1495 = vmatprep.mubr.msk.f32.mxu1 %vm1710_vm0, %v1709_v0  ;;  %v328_v6 = vadd.f32 %v327_v5, %v1806_v22 }
 0x183   :  { %v329_v8 = vsub.f32 %v328_v6, %v326_v7 }
 0x185   :  { %vm330_vm10 = vcmp.gt.f32.partialorder %v329_v8, 1.0  ;;  %v334_v9 = vmul.f32 0.85, %v329_v8 }
 0x186   :  { %1496 = vmatmul.mubr.msk.f32.gmra.mxu1 %vm330_vm10, %v1711_v25  ;;  %v333_v11 = vsel %vm330_vm10, 1.0, %v1709_v0 }
 0x187   :  { %1498 = vmatprep.mubr.msk.f32.mxu1 %vm1710_vm0, %v1709_v0  ;;  %v335_v10 = vadd.f32 %v334_v9, %v1806_v22 }
 0x189   :  { %v336_v12 = vsub.f32 %v335_v10, %v333_v11 }
 0x18b   :  { %vm337_vm11 = vcmp.gt.f32.partialorder %v336_v12, 1.0 }
 0x18c   :  { %1499 = vmatmul.mubr.msk.f32.gmra.mxu1 %vm337_vm11, %v1711_v25 }
 0x1bc   :  { %v429_v14 = vpop.f32.mrf.mxu1 }
 0x1bd   :  { %v430_v15 = vadd.f32 %v1949_v13, %v429_v14 }
 0x1be   :  { %v1428_v16 = vpop.f32.mrf.mxu1 }
 0x1bf   :  { %vm555_vm12 = vcmp.gt.f32.partialorder %v430_v15, 1.0  ;;  %v559_v17 = vmul.f32 0.85, %v430_v15 }
 0x1c0   :  { %1534 = vmatmul.mubr.msk.f32.vlgmr.msra.gmra.mxu0 %vm555_vm12, %v1711_v25  ;;  %v558_v21 = vsel %vm555_vm12, 1.0, %v1709_v0 }
 0x1c1   :  { %1536 = vmatprep.mubr.msk.f32.mxu0 %vm1710_vm0, %v1709_v0 }
 0x1c2   :  { %v434_v22 = vpop.f32.mrf.mxu1 }
 0x1c3   :  { %v435_v18 = vadd.f32 %v1949_v13, %v434_v22 }
 0x1c4   :  { %v1431_v19 = vpop.f32.mrf.mxu1 }
 0x1c5   :  { %v560_v20 = vadd.f32 %v559_v17, %v435_v18 }
 0x1c7   :  { %v561_v23 = vsub.f32 %v560_v20, %v558_v21 }
 0x1c8   :  { %v439_v24 = vpop.f32.mrf.mxu1 }
 0x1c9   :  { %v440_v26 = vadd.f32 %v1949_v13, %v439_v24  ;;  %v566_v27 = vmul.f32 0.85, %v561_v23  ;;  %vm562_vm13 = vcmp.gt.f32.partialorder %v561_v23, 1.0 }
 0x1ca   :  { %v1434_v28 = vpop.f32.mrf.mxu1  ;;  %1537 = vmatmul.mubr.msk.f32.gmra.mxu0 %vm562_vm13, %v1711_v25  ;;  %v565_v30 = vsel %vm562_vm13, 1.0, %v1709_v0 }
 0x1cb   :  { %v567_v29 = vadd.f32 %v566_v27, %v440_v26  ;;  %1539 = vmatprep.mubr.msk.f32.mxu0 %vm1710_vm0, %v1709_v0 }
 0x1cd   :  { %v568_v31 = vsub.f32 %v567_v29, %v565_v30 }
 0x1ce   :  { %v444_v32 = vpop.f32.mrf.mxu1 }
 0x1cf   :  { %v445_v33 = vadd.f32 %v1949_v13, %v444_v32  ;;  %v573_v34 = vmul.f32 0.85, %v568_v31  ;;  %vm569_vm14 = vcmp.gt.f32.partialorder %v568_v31, 1.0 }
 0x1d0   :  { %v1437_v35 = vpop.f32.mrf.mxu1  ;;  %1540 = vmatmul.mubr.msk.f32.gmra.mxu0 %vm569_vm14, %v1711_v25  ;;  %v572_v37 = vsel %vm569_vm14, 1.0, %v1709_v0 }
 0x1d1   :  { %v574_v36 = vadd.f32 %v573_v34, %v445_v33  ;;  %1542 = vmatprep.mubr.msk.f32.mxu0 %vm1710_vm0, %v1709_v0 }
 0x1d3   :  { %v575_v38 = vsub.f32 %v574_v36, %v572_v37 }
 0x1d4   :  { %v449_v39 = vpop.f32.mrf.mxu1 }
 0x1d5   :  { %v450_v40 = vadd.f32 %v1949_v13, %v449_v39  ;;  %v580_v41 = vmul.f32 0.85, %v575_v38  ;;  %vm576_vm15 = vcmp.gt.f32.partialorder %v575_v38, 1.0 }
 0x1d6   :  { %v1440_v42 = vpop.f32.mrf.mxu1  ;;  %1543 = vmatmul.mubr.msk.f32.gmra.mxu0 %vm576_vm15, %v1711_v25  ;;  %v579_v44 = vsel %vm576_vm15, 1.0, %v1709_v0 }
 0x1d7   :  { %v581_v43 = vadd.f32 %v580_v41, %v450_v40  ;;  %1545 = vmatprep.mubr.msk.f32.mxu0 %vm1710_vm0, %v1709_v0 }
 0x1d9   :  { %v582_v45 = vsub.f32 %v581_v43, %v579_v44 }
 0x1da   :  { %v454_v46 = vpop.f32.mrf.mxu1 }
 0x1db   :  { %v455_v47 = vadd.f32 %v1949_v13, %v454_v46  ;;  %v587_v48 = vmul.f32 0.85, %v582_v45  ;;  %vm583_vm1 = vcmp.gt.f32.partialorder %v582_v45, 1.0 }
 0x1dc   :  { %v1443_v49 = vpop.f32.mrf.mxu1  ;;  %1546 = vmatmul.mubr.msk.f32.gmra.mxu0 %vm583_vm1, %v1711_v25  ;;  %v586_v51 = vsel %vm583_vm1, 1.0, %v1709_v0 }
 0x1dd   :  { %v588_v50 = vadd.f32 %v587_v48, %v455_v47  ;;  %1548 = vmatprep.mubr.msk.f32.mxu0 %vm1710_vm0, %v1709_v0 }
 0x1df   :  { %v589_v52 = vsub.f32 %v588_v50, %v586_v51 }
 0x1e0   :  { %v459_v53 = vpop.f32.mrf.mxu1 }
 0x1e1   :  { %v460_v54 = vadd.f32 %v1949_v13, %v459_v53  ;;  %v594_v55 = vmul.f32 0.85, %v589_v52  ;;  %vm590_vm2 = vcmp.gt.f32.partialorder %v589_v52, 1.0 }
 0x1e2   :  { %v1446_v56 = vpop.f32.mrf.mxu1  ;;  %1549 = vmatmul.mubr.msk.f32.gmra.mxu0 %vm590_vm2, %v1711_v25  ;;  %v593_v58 = vsel %vm590_vm2, 1.0, %v1709_v0 }
 0x1e3   :  { %v595_v57 = vadd.f32 %v594_v55, %v460_v54  ;;  %1551 = vmatprep.mubr.msk.f32.mxu0 %vm1710_vm0, %v1709_v0 }
 0x1e5   :  { %v596_v59 = vsub.f32 %v595_v57, %v593_v58 }
 0x1e6   :  { %v464_v60 = vpop.f32.mrf.mxu1 }
 0x1e7   :  { %v465_v61 = vadd.f32 %v1949_v13, %v464_v60  ;;  %v601_v62 = vmul.f32 0.85, %v596_v59  ;;  %vm597_vm3 = vcmp.gt.f32.partialorder %v596_v59, 1.0 }
 0x1e8   :  { %v1449_v63 = vpop.f32.mrf.mxu1  ;;  %1552 = vmatmul.mubr.msk.f32.gmra.mxu0 %vm597_vm3, %v1711_v25  ;;  %v600_v2 = vsel %vm597_vm3, 1.0, %v1709_v0 }
 0x1e9   :  { %v602_v1 = vadd.f32 %v601_v62, %v465_v61  ;;  %1554 = vmatprep.mubr.msk.f32.mxu0 %vm1710_vm0, %v1709_v0 }
 0x1eb   :  { %v603_v3 = vsub.f32 %v602_v1, %v600_v2 }
 0x1ec   :  { %v469_v4 = vpop.f32.mrf.mxu1 }
 0x1ed   :  { %v470_v5 = vadd.f32 %v1949_v13, %v469_v4  ;;  %v608_v6 = vmul.f32 0.85, %v603_v3  ;;  %vm604_vm4 = vcmp.gt.f32.partialorder %v603_v3, 1.0 }
 0x1ee   :  { %v1452_v7 = vpop.f32.mrf.mxu1  ;;  %1555 = vmatmul.mubr.msk.f32.gmra.mxu0 %vm604_vm4, %v1711_v25  ;;  %v607_v9 = vsel %vm604_vm4, 1.0, %v1709_v0 }
 0x1ef   :  { %v609_v8 = vadd.f32 %v608_v6, %v470_v5  ;;  %1557 = vmatprep.mubr.msk.f32.mxu0 %vm1710_vm0, %v1709_v0 }
 0x1f1   :  { %v610_v10 = vsub.f32 %v609_v8, %v607_v9 }
 0x1f2   :  { %v474_v11 = vpop.f32.mrf.mxu1 }
 0x1f3   :  { %v475_v12 = vadd.f32 %v1949_v13, %v474_v11  ;;  %v615_v14 = vmul.f32 0.85, %v610_v10  ;;  %vm611_vm5 = vcmp.gt.f32.partialorder %v610_v10, 1.0 }
 0x1f4   :  { %v1455_v15 = vpop.f32.mrf.mxu1  ;;  %1558 = vmatmul.mubr.msk.f32.gmra.mxu0 %vm611_vm5, %v1711_v25  ;;  %v614_v22 = vsel %vm611_vm5, 1.0, %v1709_v0 }
 0x1f5   :  { %v616_v16 = vadd.f32 %v615_v14, %v475_v12  ;;  %1560 = vmatprep.mubr.msk.f32.mxu0 %vm1710_vm0, %v1709_v0 }
 0x1f7   :  { %v617_v17 = vsub.f32 %v616_v16, %v614_v22 }
 0x1f8   :  { %v479_v18 = vpop.f32.mrf.mxu1 }
 0x1f9   :  { %v480_v19 = vadd.f32 %v1949_v13, %v479_v18  ;;  %v622_v20 = vmul.f32 0.85, %v617_v17  ;;  %vm618_vm6 = vcmp.gt.f32.partialorder %v617_v17, 1.0 }
 0x1fa   :  { %v1458_v21 = vpop.f32.mrf.mxu1  ;;  %1561 = vmatmul.mubr.msk.f32.gmra.mxu0 %vm618_vm6, %v1711_v25  ;;  %v621_v24 = vsel %vm618_vm6, 1.0, %v1709_v0 }
 0x1fb   :  { %v623_v23 = vadd.f32 %v622_v20, %v480_v19  ;;  %1563 = vmatprep.mubr.msk.f32.mxu0 %vm1710_vm0, %v1709_v0 }
 0x1fd   :  { %v624_v26 = vsub.f32 %v623_v23, %v621_v24 }
 0x1fe   :  { %v484_v27 = vpop.f32.mrf.mxu1 }
 0x1ff   :  { %v485_v28 = vadd.f32 %v1949_v13, %v484_v27  ;;  %v629_v29 = vmul.f32 0.85, %v624_v26  ;;  %vm625_vm7 = vcmp.gt.f32.partialorder %v624_v26, 1.0 }
 0x200   :  { %v1461_v30 = vpop.f32.mrf.mxu1  ;;  %1564 = vmatmul.mubr.msk.f32.gmra.mxu0 %vm625_vm7, %v1711_v25  ;;  %v628_v32 = vsel %vm625_vm7, 1.0, %v1709_v0 }
 0x201   :  { %v630_v31 = vadd.f32 %v629_v29, %v485_v28  ;;  %1566 = vmatprep.mubr.msk.f32.mxu0 %vm1710_vm0, %v1709_v0 }
 0x203   :  { %v631_v33 = vsub.f32 %v630_v31, %v628_v32 }
 0x204   :  { %v489_v34 = vpop.f32.mrf.mxu1 }
 0x205   :  { %v490_v35 = vadd.f32 %v1949_v13, %v489_v34  ;;  %v636_v36 = vmul.f32 0.85, %v631_v33  ;;  %vm632_vm8 = vcmp.gt.f32.partialorder %v631_v33, 1.0 }
 0x206   :  { %v1464_v37 = vpop.f32.mrf.mxu1  ;;  %1567 = vmatmul.mubr.msk.f32.gmra.mxu0 %vm632_vm8, %v1711_v25  ;;  %v635_v39 = vsel %vm632_vm8, 1.0, %v1709_v0 }
 0x207   :  { %v637_v38 = vadd.f32 %v636_v36, %v490_v35  ;;  %1569 = vmatprep.mubr.msk.f32.mxu0 %vm1710_vm0, %v1709_v0 }
 0x209   :  { %v638_v40 = vsub.f32 %v637_v38, %v635_v39 }
 0x20a   :  { %v494_v41 = vpop.f32.mrf.mxu1 }
 0x20b   :  { %v495_v42 = vadd.f32 %v1949_v13, %v494_v41  ;;  %v643_v43 = vmul.f32 0.85, %v638_v40  ;;  %vm639_vm9 = vcmp.gt.f32.partialorder %v638_v40, 1.0 }
 0x20c   :  { %v1467_v44 = vpop.f32.mrf.mxu1  ;;  %1570 = vmatmul.mubr.msk.f32.gmra.mxu0 %vm639_vm9, %v1711_v25  ;;  %v642_v46 = vsel %vm639_vm9, 1.0, %v1709_v0 }
 0x20d   :  { %v644_v45 = vadd.f32 %v643_v43, %v495_v42  ;;  %1572 = vmatprep.mubr.msk.f32.mxu0 %vm1710_vm0, %v1709_v0 }
 0x20f   :  { %v645_v47 = vsub.f32 %v644_v45, %v642_v46 }
 0x210   :  { %v499_v48 = vpop.f32.mrf.mxu1 }
 0x211   :  { %v500_v49 = vadd.f32 %v1949_v13, %v499_v48  ;;  %v650_v50 = vmul.f32 0.85, %v645_v47  ;;  %vm646_vm10 = vcmp.gt.f32.partialorder %v645_v47, 1.0 }
 0x212   :  { %v1470_v51 = vpop.f32.mrf.mxu1  ;;  %1573 = vmatmul.mubr.msk.f32.gmra.mxu0 %vm646_vm10, %v1711_v25  ;;  %v649_v53 = vsel %vm646_vm10, 1.0, %v1709_v0 }
 0x213   :  { %v651_v52 = vadd.f32 %v650_v50, %v500_v49  ;;  %1575 = vmatprep.mubr.msk.f32.mxu0 %vm1710_vm0, %v1709_v0 }
 0x215   :  { %v652_v54 = vsub.f32 %v651_v52, %v649_v53 }
 0x216   :  { %v504_v55 = vpop.f32.mrf.mxu1 }
 0x217   :  { %v505_v56 = vadd.f32 %v1949_v13, %v504_v55  ;;  %v657_v57 = vmul.f32 0.85, %v652_v54  ;;  %vm653_vm11 = vcmp.gt.f32.partialorder %v652_v54, 1.0 }
 0x218   :  { %v1473_v58 = vpop.f32.mrf.mxu1  ;;  %1576 = vmatmul.mubr.msk.f32.gmra.mxu0 %vm653_vm11, %v1711_v25  ;;  %v656_v60 = vsel %vm653_vm11, 1.0, %v1709_v0 }
 0x219   :  { %v658_v59 = vadd.f32 %v657_v57, %v505_v56  ;;  %1578 = vmatprep.mubr.msk.f32.mxu0 %vm1710_vm0, %v1709_v0 }
 0x21b   :  { %v659_v61 = vsub.f32 %v658_v59, %v656_v60 }
 0x21c   :  { %v509_v62 = vpop.f32.mrf.mxu1 }
 0x21d   :  { %v510_v63 = vadd.f32 %v1949_v13, %v509_v62  ;;  %v664_v1 = vmul.f32 0.85, %v659_v61  ;;  %vm660_vm12 = vcmp.gt.f32.partialorder %v659_v61, 1.0 }
 0x21e   :  { %v1476_v2 = vpop.f32.mrf.mxu1  ;;  %1579 = vmatmul.mubr.msk.f32.gmra.mxu0 %vm660_vm12, %v1711_v25  ;;  %v663_v4 = vsel %vm660_vm12, 1.0, %v1709_v0 }
 0x21f   :  { %v665_v3 = vadd.f32 %v664_v1, %v510_v63  ;;  %1581 = vmatprep.mubr.msk.f32.mxu0 %vm1710_vm0, %v1709_v0  ;;  %v2076_v1 = vld [vmem:[%s2284_s6] ss:$0 sm:$0xff] }
 0x221   :  { %v666_v5 = vsub.f32 %v665_v3, %v663_v4 }
 0x222   :  { %v514_v6 = vpop.f32.mrf.mxu1 }
 0x223   :  { %v515_v7 = vadd.f32 %v1949_v13, %v514_v6  ;;  %v671_v8 = vmul.f32 0.85, %v666_v5  ;;  %vm667_vm13 = vcmp.gt.f32.partialorder %v666_v5, 1.0 }
 0x224   :  { %v1479_v9 = vpop.f32.mrf.mxu1  ;;  %1582 = vmatmul.mubr.msk.f32.gmra.mxu0 %vm667_vm13, %v1711_v25  ;;  %v670_v11 = vsel %vm667_vm13, 1.0, %v1709_v0 }
 0x225   :  { %v672_v10 = vadd.f32 %v671_v8, %v515_v7  ;;  %1584 = vmatprep.mubr.msk.f32.mxu0 %vm1710_vm0, %v1709_v0 }
 0x227   :  { %v673_v12 = vsub.f32 %v672_v10, %v670_v11 }
 0x228   :  { %v519_v14 = vpop.f32.mrf.mxu1 }
 0x229   :  { %v520_v15 = vadd.f32 %v1949_v13, %v519_v14  ;;  %v678_v16 = vmul.f32 0.85, %v673_v12  ;;  %vm674_vm14 = vcmp.gt.f32.partialorder %v673_v12, 1.0 }
 0x22a   :  { %v1482_v22 = vpop.f32.mrf.mxu1  ;;  %1585 = vmatmul.mubr.msk.f32.gmra.mxu0 %vm674_vm14, %v1711_v25  ;;  %v677_v18 = vsel %vm674_vm14, 1.0, %v1709_v0 }
 0x22b   :  { %v679_v17 = vadd.f32 %v678_v16, %v520_v15  ;;  %1587 = vmatprep.mubr.msk.f32.mxu0 %vm1710_vm0, %v1709_v0 }
 0x22d   :  { %v680_v19 = vsub.f32 %v679_v17, %v677_v18 }
 0x22e   :  { %v524_v20 = vpop.f32.mrf.mxu1 }
 0x22f   :  { %v525_v21 = vadd.f32 %v1949_v13, %v524_v20  ;;  %v685_v23 = vmul.f32 0.85, %v680_v19  ;;  %vm681_vm15 = vcmp.gt.f32.partialorder %v680_v19, 1.0 }
 0x230   :  { %v1485_v24 = vpop.f32.mrf.mxu1  ;;  %1588 = vmatmul.mubr.msk.f32.gmra.mxu0 %vm681_vm15, %v1711_v25  ;;  %v684_v27 = vsel %vm681_vm15, 1.0, %v1709_v0 }
 0x231   :  { %v686_v26 = vadd.f32 %v685_v23, %v525_v21  ;;  %1590 = vmatprep.mubr.msk.f32.mxu0 %vm1710_vm0, %v1709_v0 }
 0x233   :  { %v687_v28 = vsub.f32 %v686_v26, %v684_v27 }
 0x234   :  { %v529_v29 = vpop.f32.mrf.mxu1 }
 0x235   :  { %v530_v30 = vadd.f32 %v1949_v13, %v529_v29  ;;  %v692_v31 = vmul.f32 0.85, %v687_v28  ;;  %vm688_vm1 = vcmp.gt.f32.partialorder %v687_v28, 1.0 }
 0x236   :  { %v1488_v32 = vpop.f32.mrf.mxu1  ;;  %1591 = vmatmul.mubr.msk.f32.gmra.mxu0 %vm688_vm1, %v1711_v25  ;;  %v691_v34 = vsel %vm688_vm1, 1.0, %v1709_v0 }
 0x237   :  { %v693_v33 = vadd.f32 %v692_v31, %v530_v30  ;;  %1593 = vmatprep.mubr.msk.f32.mxu0 %vm1710_vm0, %v1709_v0 }
 0x239   :  { %v694_v35 = vsub.f32 %v693_v33, %v691_v34 }
 0x23a   :  { %v534_v36 = vpop.f32.mrf.mxu1 }
 0x23b   :  { %v535_v37 = vadd.f32 %v1949_v13, %v534_v36  ;;  %v699_v38 = vmul.f32 0.85, %v694_v35  ;;  %vm695_vm2 = vcmp.gt.f32.partialorder %v694_v35, 1.0 }
 0x23c   :  { %v1491_v39 = vpop.f32.mrf.mxu1  ;;  %1594 = vmatmul.mubr.msk.f32.gmra.mxu0 %vm695_vm2, %v1711_v25  ;;  %v698_v41 = vsel %vm695_vm2, 1.0, %v1709_v0 }
 0x23d   :  { %v700_v40 = vadd.f32 %v699_v38, %v535_v37  ;;  %1596 = vmatprep.mubr.msk.f32.mxu0 %vm1710_vm0, %v1709_v0 }
 0x23f   :  { %v701_v42 = vsub.f32 %v700_v40, %v698_v41 }
 0x240   :  { %v539_v43 = vpop.f32.mrf.mxu1 }
 0x241   :  { %v540_v44 = vadd.f32 %v1949_v13, %v539_v43  ;;  %v706_v45 = vmul.f32 0.85, %v701_v42  ;;  %vm702_vm3 = vcmp.gt.f32.partialorder %v701_v42, 1.0 }
 0x242   :  { %v1494_v46 = vpop.f32.mrf.mxu1  ;;  %1597 = vmatmul.mubr.msk.f32.gmra.mxu0 %vm702_vm3, %v1711_v25  ;;  %v705_v48 = vsel %vm702_vm3, 1.0, %v1709_v0 }
 0x243   :  { %v707_v47 = vadd.f32 %v706_v45, %v540_v44  ;;  %1599 = vmatprep.mubr.msk.f32.mxu0 %vm1710_vm0, %v1709_v0 }
 0x245   :  { %v708_v49 = vsub.f32 %v707_v47, %v705_v48 }
 0x246   :  { %v544_v50 = vpop.f32.mrf.mxu1 }
 0x247   :  { %v545_v51 = vadd.f32 %v1949_v13, %v544_v50  ;;  %v713_v52 = vmul.f32 0.85, %v708_v49  ;;  %vm709_vm4 = vcmp.gt.f32.partialorder %v708_v49, 1.0 }
 0x248   :  { %v1497_v53 = vpop.f32.mrf.mxu1  ;;  %1600 = vmatmul.mubr.msk.f32.gmra.mxu0 %vm709_vm4, %v1711_v25  ;;  %v712_v55 = vsel %vm709_vm4, 1.0, %v1709_v0 }
 0x249   :  { %v714_v54 = vadd.f32 %v713_v52, %v545_v51  ;;  %1602 = vmatprep.mubr.msk.f32.mxu0 %vm1710_vm0, %v1709_v0 }
 0x24b   :  { %v715_v56 = vsub.f32 %v714_v54, %v712_v55 }
 0x24c   :  { %v549_v57 = vpop.f32.mrf.mxu1 }
 0x24d   :  { %v550_v58 = vadd.f32 %v1949_v13, %v549_v57  ;;  %v720_v59 = vmul.f32 0.85, %v715_v56  ;;  %vm716_vm5 = vcmp.gt.f32.partialorder %v715_v56, 1.0 }
 0x24e   :  { %v1500_v60 = vpop.f32.mrf.mxu1  ;;  %1603 = vmatmul.mubr.msk.f32.gmra.mxu0 %vm716_vm5, %v1711_v25  ;;  %v719_v62 = vsel %vm716_vm5, 1.0, %v1709_v0 }
 0x24f   :  { %v721_v61 = vadd.f32 %v720_v59, %v550_v58  ;;  %1605 = vmatprep.mubr.msk.f32.mxu0 %vm1710_vm0, %v1709_v0 }
 0x251   :  { %v722_v63 = vsub.f32 %v721_v61, %v719_v62 }
 0x253   :  { %vm723_vm6 = vcmp.gt.f32.partialorder %v722_v63, 1.0 }
 0x254   :  { %1606 = vmatmul.mubr.msk.f32.gmra.mxu0 %vm723_vm6, %v1711_v25 }
 0x280   :  { %v815_v13 = vpop.f32.mrf.mxu0 }
 0x281   :  { %v816_v2 = vadd.f32 %v2076_v1, %v815_v13 }
 0x282   :  { %v1535_v3 = vpop.f32.mrf.mxu0 }
 0x283   :  { %vm941_vm7 = vcmp.gt.f32.partialorder %v816_v2, 1.0  ;;  %1137 = vst [vmem:[%s2286_s8] sm:$0xff] %v816_v2  ;;  %v945_v6 = vmul.f32 0.85, %v816_v2 }
 0x284   :  { %v1277_v4 = vsel %vm941_vm7, 1.0, %v1709_v0 }
 0x285   :  { %1112 = vst [vmem:[%s2285_s7] sm:$0xff] %v1277_v4 }
 0x28a   :  { %v820_v25 = vpop.f32.mrf.mxu0 }
 0x28b   :  { %v821_v5 = vadd.f32 %v2076_v1, %v820_v25 }
 0x28c   :  { %v1538_v7 = vpop.f32.mrf.mxu0 }
 0x28d   :  { %v946_v8 = vadd.f32 %v945_v6, %v821_v5 }
 0x28f   :  { %v947_v9 = vsub.f32 %v946_v8, %v1277_v4 }
 0x290   :  { %v825_v10 = vpop.f32.mrf.mxu0 }
 0x291   :  { %vm948_vm0 = vcmp.gt.f32.partialorder %v947_v9, 1.0  ;;  %1138 = vst [vmem:[%s2286_s8 + $0x8] sm:$0xff] %v947_v9  ;;  %v826_v11 = vadd.f32 %v2076_v1, %v825_v10  ;;  %v952_v12 = vmul.f32 0.85, %v947_v9 }
 0x292   :  { %v1278_v14 = vsel %vm948_vm0, 1.0, %v1709_v0  ;;  %v1541_v15 = vpop.f32.mrf.mxu0 }
 0x293   :  { %1113 = vst [vmem:[%s2285_s7 + $0x8] sm:$0xff] %v1278_v14  ;;  %v953_v16 = vadd.f32 %v952_v12, %v826_v11 }
 0x295   :  { %v954_v22 = vsub.f32 %v953_v16, %v1278_v14 }
 0x296   :  { %v830_v17 = vpop.f32.mrf.mxu0 }
 0x297   :  { %vm955_vm8 = vcmp.gt.f32.partialorder %v954_v22, 1.0  ;;  %1139 = vst [vmem:[%s2286_s8 + $0x10] sm:$0xff] %v954_v22  ;;  %v831_v18 = vadd.f32 %v2076_v1, %v830_v17  ;;  %v959_v19 = vmul.f32 0.85, %v954_v22 }
 0x298   :  { %v1279_v20 = vsel %vm955_vm8, 1.0, %v1709_v0  ;;  %v1544_v21 = vpop.f32.mrf.mxu0 }
 0x299   :  { %1114 = vst [vmem:[%s2285_s7 + $0x10] sm:$0xff] %v1279_v20  ;;  %v960_v23 = vadd.f32 %v959_v19, %v831_v18 }
 0x29b   :  { %v961_v24 = vsub.f32 %v960_v23, %v1279_v20 }
 0x29c   :  { %v835_v26 = vpop.f32.mrf.mxu0 }
 0x29d   :  { %vm962_vm9 = vcmp.gt.f32.partialorder %v961_v24, 1.0  ;;  %1140 = vst [vmem:[%s2286_s8 + $0x18] sm:$0xff] %v961_v24  ;;  %v836_v27 = vadd.f32 %v2076_v1, %v835_v26  ;;  %v966_v28 = vmul.f32 0.85, %v961_v24 }
 0x29e   :  { %v1280_v29 = vsel %vm962_vm9, 1.0, %v1709_v0  ;;  %v1547_v30 = vpop.f32.mrf.mxu0 }
 0x29f   :  { %1115 = vst [vmem:[%s2285_s7 + $0x18] sm:$0xff] %v1280_v29  ;;  %v967_v31 = vadd.f32 %v966_v28, %v836_v27 }
 0x2a1   :  { %v968_v32 = vsub.f32 %v967_v31, %v1280_v29 }
 0x2a2   :  { %v840_v33 = vpop.f32.mrf.mxu0 }
 0x2a3   :  { %vm969_vm10 = vcmp.gt.f32.partialorder %v968_v32, 1.0  ;;  %1141 = vst [vmem:[%s2286_s8 + $0x20] sm:$0xff] %v968_v32  ;;  %v841_v34 = vadd.f32 %v2076_v1, %v840_v33  ;;  %v973_v35 = vmul.f32 0.85, %v968_v32 }
 0x2a4   :  { %v1281_v36 = vsel %vm969_vm10, 1.0, %v1709_v0  ;;  %v1550_v37 = vpop.f32.mrf.mxu0 }
 0x2a5   :  { %1116 = vst [vmem:[%s2285_s7 + $0x20] sm:$0xff] %v1281_v36  ;;  %v974_v38 = vadd.f32 %v973_v35, %v841_v34 }
 0x2a7   :  { %v975_v39 = vsub.f32 %v974_v38, %v1281_v36 }
 0x2a8   :  { %v845_v40 = vpop.f32.mrf.mxu0 }
 0x2a9   :  { %vm976_vm11 = vcmp.gt.f32.partialorder %v975_v39, 1.0  ;;  %1142 = vst [vmem:[%s2286_s8 + $0x28] sm:$0xff] %v975_v39  ;;  %v846_v41 = vadd.f32 %v2076_v1, %v845_v40  ;;  %v980_v42 = vmul.f32 0.85, %v975_v39 }
 0x2aa   :  { %v1282_v43 = vsel %vm976_vm11, 1.0, %v1709_v0  ;;  %v1553_v44 = vpop.f32.mrf.mxu0 }
 0x2ab   :  { %1117 = vst [vmem:[%s2285_s7 + $0x28] sm:$0xff] %v1282_v43  ;;  %v981_v45 = vadd.f32 %v980_v42, %v846_v41 }
 0x2ad   :  { %v982_v46 = vsub.f32 %v981_v45, %v1282_v43 }
 0x2ae   :  { %v850_v47 = vpop.f32.mrf.mxu0 }
 0x2af   :  { %vm983_vm12 = vcmp.gt.f32.partialorder %v982_v46, 1.0  ;;  %1143 = vst [vmem:[%s2286_s8 + $0x30] sm:$0xff] %v982_v46  ;;  %v851_v48 = vadd.f32 %v2076_v1, %v850_v47  ;;  %v987_v49 = vmul.f32 0.85, %v982_v46 }
 0x2b0   :  { %v1283_v50 = vsel %vm983_vm12, 1.0, %v1709_v0  ;;  %v1556_v51 = vpop.f32.mrf.mxu0 }
 0x2b1   :  { %1118 = vst [vmem:[%s2285_s7 + $0x30] sm:$0xff] %v1283_v50  ;;  %v988_v52 = vadd.f32 %v987_v49, %v851_v48 }
 0x2b3   :  { %v989_v53 = vsub.f32 %v988_v52, %v1283_v50 }
 0x2b4   :  { %v855_v54 = vpop.f32.mrf.mxu0 }
 0x2b5   :  { %vm990_vm13 = vcmp.gt.f32.partialorder %v989_v53, 1.0  ;;  %1144 = vst [vmem:[%s2286_s8 + $0x38] sm:$0xff] %v989_v53  ;;  %v856_v55 = vadd.f32 %v2076_v1, %v855_v54  ;;  %v994_v56 = vmul.f32 0.85, %v989_v53 }
 0x2b6   :  { %v1284_v57 = vsel %vm990_vm13, 1.0, %v1709_v0  ;;  %v1559_v58 = vpop.f32.mrf.mxu0 }
 0x2b7   :  { %1119 = vst [vmem:[%s2285_s7 + $0x38] sm:$0xff] %v1284_v57  ;;  %v995_v59 = vadd.f32 %v994_v56, %v856_v55 }
 0x2b9   :  { %v996_v60 = vsub.f32 %v995_v59, %v1284_v57 }
 0x2ba   :  { %v860_v61 = vpop.f32.mrf.mxu0 }
 0x2bb   :  { %vm997_vm14 = vcmp.gt.f32.partialorder %v996_v60, 1.0  ;;  %1145 = vst [vmem:[%s2286_s8 + $0x40] sm:$0xff] %v996_v60  ;;  %v861_v62 = vadd.f32 %v2076_v1, %v860_v61  ;;  %v1001_v63 = vmul.f32 0.85, %v996_v60 }
 0x2bc   :  { %v1285_v13 = vsel %vm997_vm14, 1.0, %v1709_v0  ;;  %v1562_v2 = vpop.f32.mrf.mxu0 }
 0x2bd   :  { %v1002_v3 = vadd.f32 %v1001_v63, %v861_v62  ;;  %1120 = vst [vmem:[%s2285_s7 + $0x40] sm:$0xff] %v1285_v13 }
 0x2bf   :  { %v1003_v4 = vsub.f32 %v1002_v3, %v1285_v13 }
 0x2c0   :  { %v865_v25 = vpop.f32.mrf.mxu0 }
 0x2c1   :  { %1146 = vst [vmem:[%s2286_s8 + $0x48] sm:$0xff] %v1003_v4  ;;  %v866_v5 = vadd.f32 %v2076_v1, %v865_v25  ;;  %vm1004_vm15 = vcmp.gt.f32.partialorder %v1003_v4, 1.0  ;;  %v1008_v6 = vmul.f32 0.85, %v1003_v4 }
 0x2c2   :  { %v1286_v7 = vsel %vm1004_vm15, 1.0, %v1709_v0  ;;  %v1565_v8 = vpop.f32.mrf.mxu0 }
 0x2c3   :  { %v1009_v9 = vadd.f32 %v1008_v6, %v866_v5  ;;  %1121 = vst [vmem:[%s2285_s7 + $0x48] sm:$0xff] %v1286_v7 }
 0x2c5   :  { %v1010_v10 = vsub.f32 %v1009_v9, %v1286_v7 }
 0x2c6   :  { %v870_v11 = vpop.f32.mrf.mxu0 }
 0x2c7   :  { %1147 = vst [vmem:[%s2286_s8 + $0x50] sm:$0xff] %v1010_v10  ;;  %v871_v12 = vadd.f32 %v2076_v1, %v870_v11  ;;  %vm1011_vm1 = vcmp.gt.f32.partialorder %v1010_v10, 1.0  ;;  %v1015_v14 = vmul.f32 0.85, %v1010_v10 }
 0x2c8   :  { %v1287_v15 = vsel %vm1011_vm1, 1.0, %v1709_v0  ;;  %v1568_v16 = vpop.f32.mrf.mxu0 }
 0x2c9   :  { %v1016_v22 = vadd.f32 %v1015_v14, %v871_v12  ;;  %1122 = vst [vmem:[%s2285_s7 + $0x50] sm:$0xff] %v1287_v15 }
 0x2cb   :  { %v1017_v17 = vsub.f32 %v1016_v22, %v1287_v15 }
 0x2cc   :  { %v875_v18 = vpop.f32.mrf.mxu0 }
 0x2cd   :  { %1148 = vst [vmem:[%s2286_s8 + $0x58] sm:$0xff] %v1017_v17  ;;  %v876_v19 = vadd.f32 %v2076_v1, %v875_v18  ;;  %vm1018_vm2 = vcmp.gt.f32.partialorder %v1017_v17, 1.0  ;;  %v1022_v20 = vmul.f32 0.85, %v1017_v17 }
 0x2ce   :  { %v1288_v21 = vsel %vm1018_vm2, 1.0, %v1709_v0  ;;  %v1571_v23 = vpop.f32.mrf.mxu0 }
 0x2cf   :  { %v1023_v24 = vadd.f32 %v1022_v20, %v876_v19  ;;  %1123 = vst [vmem:[%s2285_s7 + $0x58] sm:$0xff] %v1288_v21 }
 0x2d1   :  { %v1024_v26 = vsub.f32 %v1023_v24, %v1288_v21 }
 0x2d2   :  { %v880_v27 = vpop.f32.mrf.mxu0 }
 0x2d3   :  { %1149 = vst [vmem:[%s2286_s8 + $0x60] sm:$0xff] %v1024_v26  ;;  %v881_v28 = vadd.f32 %v2076_v1, %v880_v27  ;;  %vm1025_vm3 = vcmp.gt.f32.partialorder %v1024_v26, 1.0  ;;  %v1029_v29 = vmul.f32 0.85, %v1024_v26 }
 0x2d4   :  { %v1289_v30 = vsel %vm1025_vm3, 1.0, %v1709_v0  ;;  %v1574_v31 = vpop.f32.mrf.mxu0 }
 0x2d5   :  { %v1030_v32 = vadd.f32 %v1029_v29, %v881_v28  ;;  %1124 = vst [vmem:[%s2285_s7 + $0x60] sm:$0xff] %v1289_v30 }
 0x2d7   :  { %v1031_v33 = vsub.f32 %v1030_v32, %v1289_v30 }
 0x2d8   :  { %v885_v34 = vpop.f32.mrf.mxu0 }
 0x2d9   :  { %1150 = vst [vmem:[%s2286_s8 + $0x68] sm:$0xff] %v1031_v33  ;;  %v886_v35 = vadd.f32 %v2076_v1, %v885_v34  ;;  %vm1032_vm4 = vcmp.gt.f32.partialorder %v1031_v33, 1.0  ;;  %v1036_v36 = vmul.f32 0.85, %v1031_v33 }
 0x2da   :  { %v1290_v37 = vsel %vm1032_vm4, 1.0, %v1709_v0  ;;  %v1577_v38 = vpop.f32.mrf.mxu0 }
 0x2db   :  { %v1037_v39 = vadd.f32 %v1036_v36, %v886_v35  ;;  %1125 = vst [vmem:[%s2285_s7 + $0x68] sm:$0xff] %v1290_v37 }
 0x2dd   :  { %v1038_v40 = vsub.f32 %v1037_v39, %v1290_v37 }
 0x2de   :  { %v890_v41 = vpop.f32.mrf.mxu0 }
 0x2df   :  { %1151 = vst [vmem:[%s2286_s8 + $0x70] sm:$0xff] %v1038_v40  ;;  %v891_v42 = vadd.f32 %v2076_v1, %v890_v41  ;;  %vm1039_vm5 = vcmp.gt.f32.partialorder %v1038_v40, 1.0  ;;  %v1043_v43 = vmul.f32 0.85, %v1038_v40 }
 0x2e0   :  { %v1291_v44 = vsel %vm1039_vm5, 1.0, %v1709_v0  ;;  %v1580_v45 = vpop.f32.mrf.mxu0 }
 0x2e1   :  { %v1044_v46 = vadd.f32 %v1043_v43, %v891_v42  ;;  %1126 = vst [vmem:[%s2285_s7 + $0x70] sm:$0xff] %v1291_v44 }
 0x2e3   :  { %v1045_v47 = vsub.f32 %v1044_v46, %v1291_v44 }
 0x2e4   :  { %v895_v48 = vpop.f32.mrf.mxu0 }
 0x2e5   :  { %1152 = vst [vmem:[%s2286_s8 + $0x78] sm:$0xff] %v1045_v47  ;;  %v896_v49 = vadd.f32 %v2076_v1, %v895_v48  ;;  %vm1046_vm6 = vcmp.gt.f32.partialorder %v1045_v47, 1.0  ;;  %v1050_v50 = vmul.f32 0.85, %v1045_v47 }
 0x2e6   :  { %v1292_v51 = vsel %vm1046_vm6, 1.0, %v1709_v0  ;;  %v1583_v52 = vpop.f32.mrf.mxu0 }
 0x2e7   :  { %v1051_v53 = vadd.f32 %v1050_v50, %v896_v49  ;;  %1127 = vst [vmem:[%s2285_s7 + $0x78] sm:$0xff] %v1292_v51 }
 0x2e9   :  { %v1052_v54 = vsub.f32 %v1051_v53, %v1292_v51 }
 0x2ea   :  { %v900_v55 = vpop.f32.mrf.mxu0 }
 0x2eb   :  { %1153 = vst [vmem:[%s2286_s8 + $0x80] sm:$0xff] %v1052_v54  ;;  %v901_v56 = vadd.f32 %v2076_v1, %v900_v55  ;;  %vm1053_vm7 = vcmp.gt.f32.partialorder %v1052_v54, 1.0  ;;  %v1057_v57 = vmul.f32 0.85, %v1052_v54 }
 0x2ec   :  { %v1293_v58 = vsel %vm1053_vm7, 1.0, %v1709_v0  ;;  %v1586_v59 = vpop.f32.mrf.mxu0 }
 0x2ed   :  { %v1058_v60 = vadd.f32 %v1057_v57, %v901_v56  ;;  %1128 = vst [vmem:[%s2285_s7 + $0x80] sm:$0xff] %v1293_v58 }
 0x2ef   :  { %v1059_v61 = vsub.f32 %v1058_v60, %v1293_v58 }
 0x2f0   :  { %v905_v62 = vpop.f32.mrf.mxu0 }
 0x2f1   :  { %1154 = vst [vmem:[%s2286_s8 + $0x88] sm:$0xff] %v1059_v61  ;;  %v906_v63 = vadd.f32 %v2076_v1, %v905_v62  ;;  %vm1060_vm0 = vcmp.gt.f32.partialorder %v1059_v61, 1.0  ;;  %v1064_v13 = vmul.f32 0.85, %v1059_v61 }
 0x2f2   :  { %v1294_v2 = vsel %vm1060_vm0, 1.0, %v1709_v0  ;;  %v1589_v3 = vpop.f32.mrf.mxu0 }
 0x2f3   :  { %v1065_v4 = vadd.f32 %v1064_v13, %v906_v63  ;;  %1129 = vst [vmem:[%s2285_s7 + $0x88] sm:$0xff] %v1294_v2 }
 0x2f5   :  { %v1066_v25 = vsub.f32 %v1065_v4, %v1294_v2 }
 0x2f6   :  { %v910_v5 = vpop.f32.mrf.mxu0 }
 0x2f7   :  { %1155 = vst [vmem:[%s2286_s8 + $0x90] sm:$0xff] %v1066_v25  ;;  %v911_v6 = vadd.f32 %v2076_v1, %v910_v5  ;;  %vm1067_vm8 = vcmp.gt.f32.partialorder %v1066_v25, 1.0  ;;  %v1071_v7 = vmul.f32 0.85, %v1066_v25 }
 0x2f8   :  { %v1295_v8 = vsel %vm1067_vm8, 1.0, %v1709_v0  ;;  %v1592_v9 = vpop.f32.mrf.mxu0 }
 0x2f9   :  { %v1072_v10 = vadd.f32 %v1071_v7, %v911_v6  ;;  %1130 = vst [vmem:[%s2285_s7 + $0x90] sm:$0xff] %v1295_v8 }
 0x2fb   :  { %v1073_v11 = vsub.f32 %v1072_v10, %v1295_v8 }
 0x2fc   :  { %v915_v12 = vpop.f32.mrf.mxu0 }
 0x2fd   :  { %1156 = vst [vmem:[%s2286_s8 + $0x98] sm:$0xff] %v1073_v11  ;;  %v916_v14 = vadd.f32 %v2076_v1, %v915_v12  ;;  %vm1074_vm9 = vcmp.gt.f32.partialorder %v1073_v11, 1.0  ;;  %v1078_v15 = vmul.f32 0.85, %v1073_v11 }
 0x2fe   :  { %v1296_v16 = vsel %vm1074_vm9, 1.0, %v1709_v0  ;;  %v1595_v22 = vpop.f32.mrf.mxu0 }
 0x2ff   :  { %v1079_v17 = vadd.f32 %v1078_v15, %v916_v14  ;;  %1131 = vst [vmem:[%s2285_s7 + $0x98] sm:$0xff] %v1296_v16 }
 0x301   :  { %v1080_v18 = vsub.f32 %v1079_v17, %v1296_v16 }
 0x302   :  { %v920_v19 = vpop.f32.mrf.mxu0 }
 0x303   :  { %1157 = vst [vmem:[%s2286_s8 + $0xa0] sm:$0xff] %v1080_v18  ;;  %v921_v20 = vadd.f32 %v2076_v1, %v920_v19  ;;  %vm1081_vm10 = vcmp.gt.f32.partialorder %v1080_v18, 1.0  ;;  %v1085_v21 = vmul.f32 0.85, %v1080_v18 }
 0x304   :  { %v1297_v23 = vsel %vm1081_vm10, 1.0, %v1709_v0  ;;  %v1598_v24 = vpop.f32.mrf.mxu0 }
 0x305   :  { %v1086_v26 = vadd.f32 %v1085_v21, %v921_v20  ;;  %1132 = vst [vmem:[%s2285_s7 + $0xa0] sm:$0xff] %v1297_v23 }
 0x307   :  { %v1087_v27 = vsub.f32 %v1086_v26, %v1297_v23 }
 0x308   :  { %v925_v28 = vpop.f32.mrf.mxu0 }
 0x309   :  { %1158 = vst [vmem:[%s2286_s8 + $0xa8] sm:$0xff] %v1087_v27  ;;  %v926_v29 = vadd.f32 %v2076_v1, %v925_v28  ;;  %vm1088_vm11 = vcmp.gt.f32.partialorder %v1087_v27, 1.0  ;;  %v1092_v30 = vmul.f32 0.85, %v1087_v27 }
 0x30a   :  { %v1298_v31 = vsel %vm1088_vm11, 1.0, %v1709_v0  ;;  %v1601_v32 = vpop.f32.mrf.mxu0 }
 0x30b   :  { %v1093_v33 = vadd.f32 %v1092_v30, %v926_v29  ;;  %1133 = vst [vmem:[%s2285_s7 + $0xa8] sm:$0xff] %v1298_v31 }
 0x30d   :  { %v1094_v34 = vsub.f32 %v1093_v33, %v1298_v31 }
 0x30e   :  { %v930_v35 = vpop.f32.mrf.mxu0 }
 0x30f   :  { %1159 = vst [vmem:[%s2286_s8 + $0xb0] sm:$0xff] %v1094_v34  ;;  %v931_v36 = vadd.f32 %v2076_v1, %v930_v35  ;;  %vm1095_vm12 = vcmp.gt.f32.partialorder %v1094_v34, 1.0  ;;  %v1099_v37 = vmul.f32 0.85, %v1094_v34 }
 0x310   :  { %v1299_v38 = vsel %vm1095_vm12, 1.0, %v1709_v0  ;;  %v1604_v39 = vpop.f32.mrf.mxu0 }
 0x311   :  { %v1100_v40 = vadd.f32 %v1099_v37, %v931_v36  ;;  %1134 = vst [vmem:[%s2285_s7 + $0xb0] sm:$0xff] %v1299_v38 }
 0x313   :  { %v1101_v41 = vsub.f32 %v1100_v40, %v1299_v38 }
 0x314   :  { %v935_v42 = vpop.f32.mrf.mxu0 }
 0x315   :  { %1160 = vst [vmem:[%s2286_s8 + $0xb8] sm:$0xff] %v1101_v41  ;;  %v936_v43 = vadd.f32 %v2076_v1, %v935_v42  ;;  %vm1102_vm13 = vcmp.gt.f32.partialorder %v1101_v41, 1.0  ;;  %v1106_v44 = vmul.f32 0.85, %v1101_v41 }
 0x316   :  { %v1300_v45 = vsel %vm1102_vm13, 1.0, %v1709_v0  ;;  %v1607_v46 = vpop.f32.mrf.mxu0 }
 0x317   :  { %v1107_v47 = vadd.f32 %v1106_v44, %v936_v43  ;;  %1135 = vst [vmem:[%s2285_s7 + $0xb8] sm:$0xff] %v1300_v45 }
 0x319   :  { %v1108_v48 = vsub.f32 %v1107_v47, %v1300_v45 }
 0x31b   :  { %vm1109_vm14 = vcmp.gt.f32.partialorder %v1108_v48, 1.0  ;;  %1161 = vst [vmem:[%s2286_s8 + $0xc0] sm:$0xff] %v1108_v48 }
 0x31c   :  { %v1301_v49 = vsel %vm1109_vm14, 1.0, %v1709_v0 }
 0x31d   :  { %1136 = vst [vmem:[%s2285_s7 + $0xc0] sm:$0xff] %v1301_v49 }
 0x31e   :  { %1170 = vsyncpa [#allocation3], 1 }
 0x31f   :  { %1171 = vsyncpa [#allocation5], 1 }
 0x320   :  { %1172 = vsyncpa [#allocation8], 1 }

</bundles_post_ra>
